<compile_context>
chip_gen: v5e
topology: v5e:2x2
jax: 0.10.0
libtpu: 0.0.40
codegen_flags: <defaults>
</compile_context>

<pallas_src>
import math

import jax
import jax.numpy as jnp
from jax.experimental import pallas as pl
from jax.experimental.pallas import tpu as pltpu

# ------------------------------- config -------------------------------------
BATCH = 2
SEQ = 16
HIDDEN = 256
NUM_HEADS = 2
HEAD_DIM = HIDDEN // NUM_HEADS          # 128 (native lane width)
INTERMEDIATE = 512
RMS_EPS = 1e-6
ROPE_THETA = 10000.0


# ------------------------------ Pallas kernel -------------------------------
def decoder_layer_kernel(x_ref, cos_ref, sin_ref,
                         wqkv_ref, wo_ref, wgu_ref, wd_ref,
                         ln1_ref, ln2_ref,
                         out_ref):
    B, S, H = x_ref.shape
    D = HEAD_DIM
    I = INTERMEDIATE

    x = x_ref[...].reshape(B * S, H)     # (B*S, H) f32, lane-dense
    cos = cos_ref[...]                   # (S, D) f32
    sin_s = sin_ref[...]                 # (S, D) f32, rotate_half sign folded

    def rms_norm(h, w):                  # fp32 throughout
        var = jnp.mean(h * h, axis=-1, keepdims=True)
        return h * jax.lax.rsqrt(var + RMS_EPS) * w

    def rope(t):                         # (S, D) -> (S, D)
        # rotate_half(t) == sign * roll(t, D/2) along the head_dim axis, with
        # the sign folded into sin_s = [-sin, sin].  Only valid because
        # HEAD_DIM == 128 (one full lane slice) -- asserted in the wrapper.
        return t * cos + pltpu.roll(t, D // 2, 1) * sin_s

    # ---------------- input layernorm + fused QKV projection ----------------
    hs = rms_norm(x, ln1_ref[...])                       # (B*S, H) f32
    hs_b = hs.astype(jnp.bfloat16)                       # bf16 MXU operands
    qkv = jnp.dot(hs_b, wqkv_ref[...],
                  preferred_element_type=jnp.float32)    # (B*S, 3H) f32
    # 1/sqrt(HEAD_DIM) is pre-folded into the Q columns of wqkv.

    # in-kernel additive causal mask (iota compare, no HBM mask input)
    row = jax.lax.broadcasted_iota(jnp.int32, (S, S), 0)
    col = jax.lax.broadcasted_iota(jnp.int32, (S, S), 1)
    causal_bias = jnp.where(col <= row, 0.0, -1e9)       # (S, S) f32

    wo = wo_ref[...]                                     # (H, H) bf16

    # ---------------- attention: per-(batch, head) lane slices --------------
    attn_rows = []
    for b in range(B):
        r0 = b * S
        acc = None
        for h in range(NUM_HEADS):
            c0 = h * D                                   # 128-aligned slices
            q_bh = rope(qkv[r0:r0 + S, c0:c0 + D])               # (S, D)
            k_bh = rope(qkv[r0:r0 + S, H + c0:H + c0 + D])       # (S, D)
            v_bh = qkv[r0:r0 + S, 2 * H + c0:2 * H + c0 + D]     # (S, D)

            scores = jax.lax.dot_general(
                q_bh.astype(jnp.bfloat16), k_bh.astype(jnp.bfloat16),
                (((1,), (1,)), ((), ())),
                preferred_element_type=jnp.float32) + causal_bias    # (S, S)

            m = jnp.max(scores, axis=-1, keepdims=True)
            e = jnp.exp(scores - m)
            probs = e / jnp.sum(e, axis=-1, keepdims=True)       # exact divide

            ctx = jnp.dot(probs.astype(jnp.bfloat16), v_bh.astype(jnp.bfloat16),
                          preferred_element_type=jnp.float32)        # (S, D)
            # output projection folded as per-head accumulation
            part = jnp.dot(ctx.astype(jnp.bfloat16), wo[c0:c0 + D, :],
                           preferred_element_type=jnp.float32)        # (S, H)
            acc = part if acc is None else acc + part
        attn_rows.append(acc)
    attn = jnp.concatenate(attn_rows, axis=0)            # (B*S, H) f32

    h1 = x + attn                                        # residual (f32)

    # ---------------- post-attention layernorm + fused SwiGLU MLP -----------
    h2 = rms_norm(h1, ln2_ref[...])
    h2_b = h2.astype(jnp.bfloat16)
    gu = jnp.dot(h2_b, wgu_ref[...],
                 preferred_element_type=jnp.float32)     # (B*S, 2I) f32
    gate = gu[:, :I]
    up = gu[:, I:]
    act = (jax.nn.silu(gate) * up).astype(jnp.bfloat16)
    mlp = jnp.dot(act, wd_ref[...], preferred_element_type=jnp.float32)

    out_ref[...] = (h1 + mlp).reshape(B, S, H)


# -------------------------------- wrapper ------------------------------------
def prepare_kernel_params(params):
    """One-time (outside the call path) weight fusion + bf16 cast."""
    assert HEAD_DIM == 128, "signed-sin roll trick assumes a full 128-lane head"
    inv_sqrt_d = 1.0 / math.sqrt(HEAD_DIM)
    wqkv = jnp.concatenate(
        [params["wq_t"] * inv_sqrt_d, params["wk_t"], params["wv_t"]], axis=1)
    wgu = jnp.concatenate([params["wg_t"], params["wu_t"]], axis=1)
    return {
        "wqkv_t": wqkv.astype(jnp.bfloat16),             # (H, 3H)
        "wo_t": params["wo_t"].astype(jnp.bfloat16),     # (H, H)
        "wgu_t": wgu.astype(jnp.bfloat16),               # (H, 2I)
        "wd_t": params["wd_t"].astype(jnp.bfloat16),     # (I, H)
        "ln1": params["ln1"],                            # (1, H) f32
        "ln2": params["ln2"],                            # (1, H) f32
    }


def llama_decoder_layer(x, cos_tab, sin_signed, kparams):
    B, S, H = x.shape
    # Single kernel invocation, everything resident in VMEM (no grid):
    # weights DMA'd exactly once, token matmuls over the flattened (B*S, H)
    # slab.  On v7x a 2-TC grid=(B,) split could be benchmarked, but it would
    # double the dominant weight DMA.
    return pl.pallas_call(
        decoder_layer_kernel,
        out_shape=jax.ShapeDtypeStruct((B, S, H), jnp.float32),
    )(x, cos_tab, sin_signed,
      kparams["wqkv_t"], kparams["wo_t"], kparams["wgu_t"], kparams["wd_t"],
      kparams["ln1"], kparams["ln2"])


# ------------------------- pure-JAX reference (check) ------------------------
def reference(x, cos_tab, sin_tab, params):
    B, S, H = x.shape

    def rms_norm(h, w):
        var = jnp.mean(h * h, axis=-1, keepdims=True)
        return h * jax.lax.rsqrt(var + RMS_EPS) * w

    def rot_half(t):
        half = t.shape[-1] // 2
        return jnp.concatenate([-t[..., half:], t[..., :half]], axis=-1)

    hs = rms_norm(x, params["ln1"])
    q = hs @ params["wq_t"]
    k = hs @ params["wk_t"]
    v = hs @ params["wv_t"]
    q = q.reshape(B, S, NUM_HEADS, HEAD_DIM).transpose(0, 2, 1, 3)
    k = k.reshape(B, S, NUM_HEADS, HEAD_DIM).transpose(0, 2, 1, 3)
    v = v.reshape(B, S, NUM_HEADS, HEAD_DIM).transpose(0, 2, 1, 3)
    c = cos_tab[None, None]
    s = sin_tab[None, None]
    q = q * c + rot_half(q) * s
    k = k * c + rot_half(k) * s
    scores = jnp.einsum("bhqd,bhkd->bhqk", q, k) / math.sqrt(HEAD_DIM)
    causal = jnp.tril(jnp.ones((S, S), jnp.float32))
    scores = scores + jnp.where(causal == 1.0, 0.0, -1e9)[None, None]
    probs = jax.nn.softmax(scores, axis=-1)
    attn = jnp.einsum("bhqk,bhkd->bhqd", probs, v)
    attn = attn.transpose(0, 2, 1, 3).reshape(B, S, H) @ params["wo_t"]
    h1 = x + attn
    h2 = rms_norm(h1, params["ln2"])
    mlp = (jax.nn.silu(h2 @ params["wg_t"]) * (h2 @ params["wu_t"])) @ params["wd_t"]
    return h1 + mlp


# ---------------------------------- main --------------------------------------
if __name__ == "__main__":
    key = jax.random.PRNGKey(0)
    keys = jax.random.split(key, 8)
    std = 0.02
    H, I = HIDDEN, INTERMEDIATE

    params = {
        # nn.Linear weight is (out, in); we store the transpose (in, out)
        "wq_t": jax.random.normal(keys[0], (H, H), jnp.float32) * std,
        "wk_t": jax.random.normal(keys[1], (H, H), jnp.float32) * std,
        "wv_t": jax.random.normal(keys[2], (H, H), jnp.float32) * std,
        "wo_t": jax.random.normal(keys[3], (H, H), jnp.float32) * std,
        "wg_t": jax.random.normal(keys[4], (H, I), jnp.float32) * std,
        "wu_t": jax.random.normal(keys[5], (H, I), jnp.float32) * std,
        "wd_t": jax.random.normal(keys[6], (I, H), jnp.float32) * std,
        "ln1": jnp.ones((1, H), jnp.float32),
        "ln2": jnp.ones((1, H), jnp.float32),
    }
    x = jax.random.normal(keys[7], (BATCH, SEQ, H), jnp.float32)

    # rotary tables (glue, as in LlamaRotaryPositionEmbedding); single (S, D)
    # table shared by every batch element + head.
    pos = jnp.arange(SEQ, dtype=jnp.float32)
    inv_freq = 1.0 / (ROPE_THETA ** (jnp.arange(0, HEAD_DIM, 2, dtype=jnp.float32)
                                     / HEAD_DIM))
    freqs = pos[:, None] * inv_freq[None, :]                      # (S, D/2)
    cosf, sinf = jnp.cos(freqs), jnp.sin(freqs)
    cos_tab = jnp.concatenate([cosf, cosf], axis=-1)              # (S, D)
    sin_tab = jnp.concatenate([sinf, sinf], axis=-1)              # reference
    sin_signed = jnp.concatenate([-sinf, sinf], axis=-1)          # kernel (sign folded)

    # one-time weight fusion + bf16 cast, outside the kernel call path
    kparams = prepare_kernel_params(params)
    kparams = jax.tree_util.tree_map(jax.block_until_ready, kparams)

    out = llama_decoder_layer(x, cos_tab, sin_signed, kparams)
    jax.block_until_ready(out)

    ref = reference(x, cos_tab, sin_tab, params)
    max_err = jnp.max(jnp.abs(out - ref))
    # bf16 matmul operands => slightly looser tolerance vs the f32 reference
    assert jnp.allclose(out, ref, rtol=5e-3, atol=5e-3), \
        f"mismatch vs reference, max abs err {max_err}"

    print("KERNEL_OK")
</pallas_src>

<mosaic_0001>
module attributes {stable_mosaic.version = 11 : i64} {
  func.func @decoder_layer_kernel(%arg0: memref<2x16x256xf32, #tpu.memory_space<vmem>>, %arg1: memref<16x128xf32, #tpu.memory_space<vmem>>, %arg2: memref<16x128xf32, #tpu.memory_space<vmem>>, %arg3: memref<256x768xbf16, #tpu.memory_space<vmem>>, %arg4: memref<256x256xbf16, #tpu.memory_space<vmem>>, %arg5: memref<256x1024xbf16, #tpu.memory_space<vmem>>, %arg6: memref<512x256xbf16, #tpu.memory_space<vmem>>, %arg7: memref<1x256xf32, #tpu.memory_space<vmem>>, %arg8: memref<1x256xf32, #tpu.memory_space<vmem>>, %arg9: memref<2x16x256xf32, #tpu.memory_space<vmem>>) attributes {dimension_semantics = [], scalar_prefetch = 0 : i64, scratch_operands = 0 : i64, tpu.core_type = #tpu.core_type<tc>} {
    %c0 = arith.constant 0 : index
    %c0_0 = arith.constant 0 : index
    %c0_1 = arith.constant 0 : index
    %0 = vector.load %arg0[%c0, %c0_0, %c0_1] : memref<2x16x256xf32, #tpu.memory_space<vmem>>, vector<2x16x256xf32>
    %1 = vector.shape_cast %0 : vector<2x16x256xf32> to vector<32x256xf32>
    %c0_2 = arith.constant 0 : index
    %c0_3 = arith.constant 0 : index
    %2 = vector.load %arg1[%c0_2, %c0_3] : memref<16x128xf32, #tpu.memory_space<vmem>>, vector<16x128xf32>
    %c0_4 = arith.constant 0 : index
    %c0_5 = arith.constant 0 : index
    %3 = vector.load %arg2[%c0_4, %c0_5] : memref<16x128xf32, #tpu.memory_space<vmem>>, vector<16x128xf32>
    %c0_6 = arith.constant 0 : index
    %c0_7 = arith.constant 0 : index
    %4 = vector.load %arg7[%c0_6, %c0_7] : memref<1x256xf32, #tpu.memory_space<vmem>>, vector<1x256xf32>
    %5 = arith.mulf %1, %1 : vector<32x256xf32>
    %cst = arith.constant dense<0.000000e+00> : vector<32xf32>
    %6 = vector.multi_reduction <add>, %5, %cst [1] : vector<32x256xf32> to vector<32xf32>
    %7 = vector.shape_cast %6 : vector<32xf32> to vector<32x1xf32>
    %cst_8 = arith.constant 2.560000e+02 : f32
    %8 = vector.broadcast %cst_8 : f32 to vector<32x1xf32>
    %9 = arith.divf %7, %8 : vector<32x1xf32>
    %cst_9 = arith.constant 9.99999997E-7 : f32
    %10 = vector.broadcast %cst_9 : f32 to vector<32x1xf32>
    %11 = arith.addf %9, %10 : vector<32x1xf32>
    %12 = math.rsqrt %11 : vector<32x1xf32>
    %13 = vector.broadcast %12 : vector<32x1xf32> to vector<32x256xf32>
    %14 = arith.mulf %1, %13 : vector<32x256xf32>
    %15 = vector.broadcast %4 : vector<1x256xf32> to vector<32x256xf32>
    %16 = arith.mulf %14, %15 : vector<32x256xf32>
    %17 = arith.truncf %16 : vector<32x256xf32> to vector<32x256xbf16>
    %c0_10 = arith.constant 0 : index
    %c0_11 = arith.constant 0 : index
    %18 = vector.load %arg3[%c0_10, %c0_11] : memref<256x768xbf16, #tpu.memory_space<vmem>>, vector<256x768xbf16>
    %cst_12 = arith.constant dense<0.000000e+00> : vector<32x768xf32>
    %19 = tpu.matmul %17, %18, %cst_12 {dimension_numbers = #tpu.dot_dimension_numbers<[1], [0], [0], [1], [0, 0, 1, 1], [], []>} : vector<32x256xbf16>, vector<256x768xbf16>, vector<32x768xf32> -> vector<32x768xf32>
    %20 = tpu.iota {dimensions = array<i32: 0>} : vector<16x16xi32>
    %21 = tpu.iota {dimensions = array<i32: 1>} : vector<16x16xi32>
    %22 = arith.cmpi sle, %21, %20 : vector<16x16xi32>
    %cst_13 = arith.constant 0.000000e+00 : f32
    %cst_14 = arith.constant -1.000000e+09 : f32
    %23 = vector.broadcast %cst_13 : f32 to vector<16x16xf32>
    %24 = vector.broadcast %cst_14 : f32 to vector<16x16xf32>
    %25 = arith.select %22, %23, %24 : vector<16x16xi1>, vector<16x16xf32>
    %c0_15 = arith.constant 0 : index
    %c0_16 = arith.constant 0 : index
    %26 = vector.load %arg4[%c0_15, %c0_16] : memref<256x256xbf16, #tpu.memory_space<vmem>>, vector<256x256xbf16>
    %27 = vector.extract_strided_slice %19 {offsets = [0, 0], sizes = [16, 128], strides = [1, 1]} : vector<32x768xf32> to vector<16x128xf32>
    %28 = arith.mulf %27, %2 : vector<16x128xf32>
    %c64_i32 = arith.constant 64 : i32
    %29 = tpu.dynamic_rotate %27 by %c64_i32 dim 1 : vector<16x128xf32>, i32 -> vector<16x128xf32>
    %30 = arith.mulf %29, %3 : vector<16x128xf32>
    %31 = arith.addf %28, %30 : vector<16x128xf32>
    %32 = vector.extract_strided_slice %19 {offsets = [0, 256], sizes = [16, 128], strides = [1, 1]} : vector<32x768xf32> to vector<16x128xf32>
    %33 = arith.mulf %32, %2 : vector<16x128xf32>
    %c64_i32_17 = arith.constant 64 : i32
    %34 = tpu.dynamic_rotate %32 by %c64_i32_17 dim 1 : vector<16x128xf32>, i32 -> vector<16x128xf32>
    %35 = arith.mulf %34, %3 : vector<16x128xf32>
    %36 = arith.addf %33, %35 : vector<16x128xf32>
    %37 = vector.extract_strided_slice %19 {offsets = [0, 512], sizes = [16, 128], strides = [1, 1]} : vector<32x768xf32> to vector<16x128xf32>
    %38 = arith.truncf %31 : vector<16x128xf32> to vector<16x128xbf16>
    %39 = arith.truncf %36 : vector<16x128xf32> to vector<16x128xbf16>
    %cst_18 = arith.constant dense<0.000000e+00> : vector<16x16xf32>
    %40 = tpu.matmul %38, %39, %cst_18 {dimension_numbers = #tpu.dot_dimension_numbers<[1], [1], [0], [0], [0, 0, 1, 0], [], []>} : vector<16x128xbf16>, vector<16x128xbf16>, vector<16x16xf32> -> vector<16x16xf32>
    %41 = arith.addf %40, %25 : vector<16x16xf32>
    %cst_19 = arith.constant dense<0xFF800000> : vector<16xf32>
    %42 = vector.multi_reduction <maximumf>, %41, %cst_19 [1] : vector<16x16xf32> to vector<16xf32>
    %43 = vector.shape_cast %42 : vector<16xf32> to vector<16x1xf32>
    %44 = vector.broadcast %43 : vector<16x1xf32> to vector<16x16xf32>
    %45 = arith.subf %41, %44 : vector<16x16xf32>
    %46 = math.exp %45 : vector<16x16xf32>
    %cst_20 = arith.constant dense<0.000000e+00> : vector<16xf32>
    %47 = vector.multi_reduction <add>, %46, %cst_20 [1] : vector<16x16xf32> to vector<16xf32>
    %48 = vector.shape_cast %47 : vector<16xf32> to vector<16x1xf32>
    %49 = vector.broadcast %48 : vector<16x1xf32> to vector<16x16xf32>
    %50 = arith.divf %46, %49 : vector<16x16xf32>
    %51 = arith.truncf %50 : vector<16x16xf32> to vector<16x16xbf16>
    %52 = arith.truncf %37 : vector<16x128xf32> to vector<16x128xbf16>
    %cst_21 = arith.constant dense<0.000000e+00> : vector<16x128xf32>
    %53 = tpu.matmul %51, %52, %cst_21 {dimension_numbers = #tpu.dot_dimension_numbers<[1], [0], [0], [1], [0, 0, 1, 1], [], []>} : vector<16x16xbf16>, vector<16x128xbf16>, vector<16x128xf32> -> vector<16x128xf32>
    %54 = arith.truncf %53 : vector<16x128xf32> to vector<16x128xbf16>
    %55 = vector.extract_strided_slice %26 {offsets = [0, 0], sizes = [128, 256], strides = [1, 1]} : vector<256x256xbf16> to vector<128x256xbf16>
    %cst_22 = arith.constant dense<0.000000e+00> : vector<16x256xf32>
    %56 = tpu.matmul %54, %55, %cst_22 {dimension_numbers = #tpu.dot_dimension_numbers<[1], [0], [0], [1], [0, 0, 1, 1], [], []>} : vector<16x128xbf16>, vector<128x256xbf16>, vector<16x256xf32> -> vector<16x256xf32>
    %57 = vector.extract_strided_slice %19 {offsets = [0, 128], sizes = [16, 128], strides = [1, 1]} : vector<32x768xf32> to vector<16x128xf32>
    %58 = arith.mulf %57, %2 : vector<16x128xf32>
    %c64_i32_23 = arith.constant 64 : i32
    %59 = tpu.dynamic_rotate %57 by %c64_i32_23 dim 1 : vector<16x128xf32>, i32 -> vector<16x128xf32>
    %60 = arith.mulf %59, %3 : vector<16x128xf32>
    %61 = arith.addf %58, %60 : vector<16x128xf32>
    %62 = vector.extract_strided_slice %19 {offsets = [0, 384], sizes = [16, 128], strides = [1, 1]} : vector<32x768xf32> to vector<16x128xf32>
    %63 = arith.mulf %62, %2 : vector<16x128xf32>
    %c64_i32_24 = arith.constant 64 : i32
    %64 = tpu.dynamic_rotate %62 by %c64_i32_24 dim 1 : vector<16x128xf32>, i32 -> vector<16x128xf32>
    %65 = arith.mulf %64, %3 : vector<16x128xf32>
    %66 = arith.addf %63, %65 : vector<16x128xf32>
    %67 = vector.extract_strided_slice %19 {offsets = [0, 640], sizes = [16, 128], strides = [1, 1]} : vector<32x768xf32> to vector<16x128xf32>
    %68 = arith.truncf %61 : vector<16x128xf32> to vector<16x128xbf16>
    %69 = arith.truncf %66 : vector<16x128xf32> to vector<16x128xbf16>
    %cst_25 = arith.constant dense<0.000000e+00> : vector<16x16xf32>
    %70 = tpu.matmul %68, %69, %cst_25 {dimension_numbers = #tpu.dot_dimension_numbers<[1], [1], [0], [0], [0, 0, 1, 0], [], []>} : vector<16x128xbf16>, vector<16x128xbf16>, vector<16x16xf32> -> vector<16x16xf32>
    %71 = arith.addf %70, %25 : vector<16x16xf32>
    %cst_26 = arith.constant dense<0xFF800000> : vector<16xf32>
    %72 = vector.multi_reduction <maximumf>, %71, %cst_26 [1] : vector<16x16xf32> to vector<16xf32>
    %73 = vector.shape_cast %72 : vector<16xf32> to vector<16x1xf32>
    %74 = vector.broadcast %73 : vector<16x1xf32> to vector<16x16xf32>
    %75 = arith.subf %71, %74 : vector<16x16xf32>
    %76 = math.exp %75 : vector<16x16xf32>
    %cst_27 = arith.constant dense<0.000000e+00> : vector<16xf32>
    %77 = vector.multi_reduction <add>, %76, %cst_27 [1] : vector<16x16xf32> to vector<16xf32>
    %78 = vector.shape_cast %77 : vector<16xf32> to vector<16x1xf32>
    %79 = vector.broadcast %78 : vector<16x1xf32> to vector<16x16xf32>
    %80 = arith.divf %76, %79 : vector<16x16xf32>
    %81 = arith.truncf %80 : vector<16x16xf32> to vector<16x16xbf16>
    %82 = arith.truncf %67 : vector<16x128xf32> to vector<16x128xbf16>
    %cst_28 = arith.constant dense<0.000000e+00> : vector<16x128xf32>
    %83 = tpu.matmul %81, %82, %cst_28 {dimension_numbers = #tpu.dot_dimension_numbers<[1], [0], [0], [1], [0, 0, 1, 1], [], []>} : vector<16x16xbf16>, vector<16x128xbf16>, vector<16x128xf32> -> vector<16x128xf32>
    %84 = arith.truncf %83 : vector<16x128xf32> to vector<16x128xbf16>
    %85 = vector.extract_strided_slice %26 {offsets = [128, 0], sizes = [128, 256], strides = [1, 1]} : vector<256x256xbf16> to vector<128x256xbf16>
    %cst_29 = arith.constant dense<0.000000e+00> : vector<16x256xf32>
    %86 = tpu.matmul %84, %85, %cst_29 {dimension_numbers = #tpu.dot_dimension_numbers<[1], [0], [0], [1], [0, 0, 1, 1], [], []>} : vector<16x128xbf16>, vector<128x256xbf16>, vector<16x256xf32> -> vector<16x256xf32>
    %87 = arith.addf %56, %86 : vector<16x256xf32>
    %88 = vector.extract_strided_slice %19 {offsets = [16, 0], sizes = [16, 128], strides = [1, 1]} : vector<32x768xf32> to vector<16x128xf32>
    %89 = arith.mulf %88, %2 : vector<16x128xf32>
    %c64_i32_30 = arith.constant 64 : i32
    %90 = tpu.dynamic_rotate %88 by %c64_i32_30 dim 1 : vector<16x128xf32>, i32 -> vector<16x128xf32>
    %91 = arith.mulf %90, %3 : vector<16x128xf32>
    %92 = arith.addf %89, %91 : vector<16x128xf32>
    %93 = vector.extract_strided_slice %19 {offsets = [16, 256], sizes = [16, 128], strides = [1, 1]} : vector<32x768xf32> to vector<16x128xf32>
    %94 = arith.mulf %93, %2 : vector<16x128xf32>
    %c64_i32_31 = arith.constant 64 : i32
    %95 = tpu.dynamic_rotate %93 by %c64_i32_31 dim 1 : vector<16x128xf32>, i32 -> vector<16x128xf32>
    %96 = arith.mulf %95, %3 : vector<16x128xf32>
    %97 = arith.addf %94, %96 : vector<16x128xf32>
    %98 = vector.extract_strided_slice %19 {offsets = [16, 512], sizes = [16, 128], strides = [1, 1]} : vector<32x768xf32> to vector<16x128xf32>
    %99 = arith.truncf %92 : vector<16x128xf32> to vector<16x128xbf16>
    %100 = arith.truncf %97 : vector<16x128xf32> to vector<16x128xbf16>
    %cst_32 = arith.constant dense<0.000000e+00> : vector<16x16xf32>
    %101 = tpu.matmul %99, %100, %cst_32 {dimension_numbers = #tpu.dot_dimension_numbers<[1], [1], [0], [0], [0, 0, 1, 0], [], []>} : vector<16x128xbf16>, vector<16x128xbf16>, vector<16x16xf32> -> vector<16x16xf32>
    %102 = arith.addf %101, %25 : vector<16x16xf32>
    %cst_33 = arith.constant dense<0xFF800000> : vector<16xf32>
    %103 = vector.multi_reduction <maximumf>, %102, %cst_33 [1] : vector<16x16xf32> to vector<16xf32>
    %104 = vector.shape_cast %103 : vector<16xf32> to vector<16x1xf32>
    %105 = vector.broadcast %104 : vector<16x1xf32> to vector<16x16xf32>
    %106 = arith.subf %102, %105 : vector<16x16xf32>
    %107 = math.exp %106 : vector<16x16xf32>
    %cst_34 = arith.constant dense<0.000000e+00> : vector<16xf32>
    %108 = vector.multi_reduction <add>, %107, %cst_34 [1] : vector<16x16xf32> to vector<16xf32>
    %109 = vector.shape_cast %108 : vector<16xf32> to vector<16x1xf32>
    %110 = vector.broadcast %109 : vector<16x1xf32> to vector<16x16xf32>
    %111 = arith.divf %107, %110 : vector<16x16xf32>
    %112 = arith.truncf %111 : vector<16x16xf32> to vector<16x16xbf16>
    %113 = arith.truncf %98 : vector<16x128xf32> to vector<16x128xbf16>
    %cst_35 = arith.constant dense<0.000000e+00> : vector<16x128xf32>
    %114 = tpu.matmul %112, %113, %cst_35 {dimension_numbers = #tpu.dot_dimension_numbers<[1], [0], [0], [1], [0, 0, 1, 1], [], []>} : vector<16x16xbf16>, vector<16x128xbf16>, vector<16x128xf32> -> vector<16x128xf32>
    %115 = arith.truncf %114 : vector<16x128xf32> to vector<16x128xbf16>
    %116 = vector.extract_strided_slice %26 {offsets = [0, 0], sizes = [128, 256], strides = [1, 1]} : vector<256x256xbf16> to vector<128x256xbf16>
    %cst_36 = arith.constant dense<0.000000e+00> : vector<16x256xf32>
    %117 = tpu.matmul %115, %116, %cst_36 {dimension_numbers = #tpu.dot_dimension_numbers<[1], [0], [0], [1], [0, 0, 1, 1], [], []>} : vector<16x128xbf16>, vector<128x256xbf16>, vector<16x256xf32> -> vector<16x256xf32>
    %118 = vector.extract_strided_slice %19 {offsets = [16, 128], sizes = [16, 128], strides = [1, 1]} : vector<32x768xf32> to vector<16x128xf32>
    %119 = arith.mulf %118, %2 : vector<16x128xf32>
    %c64_i32_37 = arith.constant 64 : i32
    %120 = tpu.dynamic_rotate %118 by %c64_i32_37 dim 1 : vector<16x128xf32>, i32 -> vector<16x128xf32>
    %121 = arith.mulf %120, %3 : vector<16x128xf32>
    %122 = arith.addf %119, %121 : vector<16x128xf32>
    %123 = vector.extract_strided_slice %19 {offsets = [16, 384], sizes = [16, 128], strides = [1, 1]} : vector<32x768xf32> to vector<16x128xf32>
    %124 = arith.mulf %123, %2 : vector<16x128xf32>
    %c64_i32_38 = arith.constant 64 : i32
    %125 = tpu.dynamic_rotate %123 by %c64_i32_38 dim 1 : vector<16x128xf32>, i32 -> vector<16x128xf32>
    %126 = arith.mulf %125, %3 : vector<16x128xf32>
    %127 = arith.addf %124, %126 : vector<16x128xf32>
    %128 = vector.extract_strided_slice %19 {offsets = [16, 640], sizes = [16, 128], strides = [1, 1]} : vector<32x768xf32> to vector<16x128xf32>
    %129 = arith.truncf %122 : vector<16x128xf32> to vector<16x128xbf16>
    %130 = arith.truncf %127 : vector<16x128xf32> to vector<16x128xbf16>
    %cst_39 = arith.constant dense<0.000000e+00> : vector<16x16xf32>
    %131 = tpu.matmul %129, %130, %cst_39 {dimension_numbers = #tpu.dot_dimension_numbers<[1], [1], [0], [0], [0, 0, 1, 0], [], []>} : vector<16x128xbf16>, vector<16x128xbf16>, vector<16x16xf32> -> vector<16x16xf32>
    %132 = arith.addf %131, %25 : vector<16x16xf32>
    %cst_40 = arith.constant dense<0xFF800000> : vector<16xf32>
    %133 = vector.multi_reduction <maximumf>, %132, %cst_40 [1] : vector<16x16xf32> to vector<16xf32>
    %134 = vector.shape_cast %133 : vector<16xf32> to vector<16x1xf32>
    %135 = vector.broadcast %134 : vector<16x1xf32> to vector<16x16xf32>
    %136 = arith.subf %132, %135 : vector<16x16xf32>
    %137 = math.exp %136 : vector<16x16xf32>
    %cst_41 = arith.constant dense<0.000000e+00> : vector<16xf32>
    %138 = vector.multi_reduction <add>, %137, %cst_41 [1] : vector<16x16xf32> to vector<16xf32>
    %139 = vector.shape_cast %138 : vector<16xf32> to vector<16x1xf32>
    %140 = vector.broadcast %139 : vector<16x1xf32> to vector<16x16xf32>
    %141 = arith.divf %137, %140 : vector<16x16xf32>
    %142 = arith.truncf %141 : vector<16x16xf32> to vector<16x16xbf16>
    %143 = arith.truncf %128 : vector<16x128xf32> to vector<16x128xbf16>
    %cst_42 = arith.constant dense<0.000000e+00> : vector<16x128xf32>
    %144 = tpu.matmul %142, %143, %cst_42 {dimension_numbers = #tpu.dot_dimension_numbers<[1], [0], [0], [1], [0, 0, 1, 1], [], []>} : vector<16x16xbf16>, vector<16x128xbf16>, vector<16x128xf32> -> vector<16x128xf32>
    %145 = arith.truncf %144 : vector<16x128xf32> to vector<16x128xbf16>
    %146 = vector.extract_strided_slice %26 {offsets = [128, 0], sizes = [128, 256], strides = [1, 1]} : vector<256x256xbf16> to vector<128x256xbf16>
    %cst_43 = arith.constant dense<0.000000e+00> : vector<16x256xf32>
    %147 = tpu.matmul %145, %146, %cst_43 {dimension_numbers = #tpu.dot_dimension_numbers<[1], [0], [0], [1], [0, 0, 1, 1], [], []>} : vector<16x128xbf16>, vector<128x256xbf16>, vector<16x256xf32> -> vector<16x256xf32>
    %148 = arith.addf %117, %147 : vector<16x256xf32>
    %149 = tpu.concatenate %87, %148 in 0 : vector<16x256xf32>, vector<16x256xf32> -> vector<32x256xf32>
    %150 = arith.addf %1, %149 : vector<32x256xf32>
    %c0_44 = arith.constant 0 : index
    %c0_45 = arith.constant 0 : index
    %151 = vector.load %arg8[%c0_44, %c0_45] : memref<1x256xf32, #tpu.memory_space<vmem>>, vector<1x256xf32>
    %152 = arith.mulf %150, %150 : vector<32x256xf32>
    %cst_46 = arith.constant dense<0.000000e+00> : vector<32xf32>
    %153 = vector.multi_reduction <add>, %152, %cst_46 [1] : vector<32x256xf32> to vector<32xf32>
    %154 = vector.shape_cast %153 : vector<32xf32> to vector<32x1xf32>
    %cst_47 = arith.constant 2.560000e+02 : f32
    %155 = vector.broadcast %cst_47 : f32 to vector<32x1xf32>
    %156 = arith.divf %154, %155 : vector<32x1xf32>
    %cst_48 = arith.constant 9.99999997E-7 : f32
    %157 = vector.broadcast %cst_48 : f32 to vector<32x1xf32>
    %158 = arith.addf %156, %157 : vector<32x1xf32>
    %159 = math.rsqrt %158 : vector<32x1xf32>
    %160 = vector.broadcast %159 : vector<32x1xf32> to vector<32x256xf32>
    %161 = arith.mulf %150, %160 : vector<32x256xf32>
    %162 = vector.broadcast %151 : vector<1x256xf32> to vector<32x256xf32>
    %163 = arith.mulf %161, %162 : vector<32x256xf32>
    %164 = arith.truncf %163 : vector<32x256xf32> to vector<32x256xbf16>
    %c0_49 = arith.constant 0 : index
    %c0_50 = arith.constant 0 : index
    %165 = vector.load %arg5[%c0_49, %c0_50] : memref<256x1024xbf16, #tpu.memory_space<vmem>>, vector<256x1024xbf16>
    %cst_51 = arith.constant dense<0.000000e+00> : vector<32x1024xf32>
    %166 = tpu.matmul %164, %165, %cst_51 {dimension_numbers = #tpu.dot_dimension_numbers<[1], [0], [0], [1], [0, 0, 1, 1], [], []>} : vector<32x256xbf16>, vector<256x1024xbf16>, vector<32x1024xf32> -> vector<32x1024xf32>
    %167 = vector.extract_strided_slice %166 {offsets = [0, 0], sizes = [32, 512], strides = [1, 1]} : vector<32x1024xf32> to vector<32x512xf32>
    %168 = vector.extract_strided_slice %166 {offsets = [0, 512], sizes = [32, 512], strides = [1, 1]} : vector<32x1024xf32> to vector<32x512xf32>
    %169 = arith.negf %167 : vector<32x512xf32>
    %170 = math.exp %169 : vector<32x512xf32>
    %cst_52 = arith.constant 1.000000e+00 : f32
    %171 = vector.broadcast %cst_52 : f32 to vector<32x512xf32>
    %172 = arith.addf %171, %170 : vector<32x512xf32>
    %173 = arith.divf %171, %172 : vector<32x512xf32>
    %174 = arith.mulf %167, %173 : vector<32x512xf32>
    %175 = arith.mulf %174, %168 : vector<32x512xf32>
    %176 = arith.truncf %175 : vector<32x512xf32> to vector<32x512xbf16>
    %c0_53 = arith.constant 0 : index
    %c0_54 = arith.constant 0 : index
    %177 = vector.load %arg6[%c0_53, %c0_54] : memref<512x256xbf16, #tpu.memory_space<vmem>>, vector<512x256xbf16>
    %cst_55 = arith.constant dense<0.000000e+00> : vector<32x256xf32>
    %178 = tpu.matmul %176, %177, %cst_55 {dimension_numbers = #tpu.dot_dimension_numbers<[1], [0], [0], [1], [0, 0, 1, 1], [], []>} : vector<32x512xbf16>, vector<512x256xbf16>, vector<32x256xf32> -> vector<32x256xf32>
    %179 = arith.addf %150, %178 : vector<32x256xf32>
    %180 = vector.shape_cast %179 : vector<32x256xf32> to vector<2x16x256xf32>
    %c0_56 = arith.constant 0 : index
    %c0_57 = arith.constant 0 : index
    %c0_58 = arith.constant 0 : index
    %181 = vector.load %arg9[%c0_56, %c0_57, %c0_58] : memref<2x16x256xf32, #tpu.memory_space<vmem>>, vector<2x16x256xf32>
    tpu.vector_store %arg9[%c0_56, %c0_57, %c0_58], %180 {strides = array<i32>} : memref<2x16x256xf32, #tpu.memory_space<vmem>>, vector<2x16x256xf32>,
    return
  }
}

</mosaic_0001>

<bundles_post_ra>
// kernel: tpu_custom_call.1
= control target key start
LH: loop header
LB: loop body
LE: loop exit
PB: predicated region body
PF: predicated region fallthrough
CT: control target
= control target key end

     0   :  { %14 = vsyncpa [#allocation3], 0  ;;  %s7351_s0 = inlined_call_operand.hbm [shape: f32[2,16,256], index: 0, kind: input, shape index: {}]   ;;  %s7352_s1 = inlined_call_operand.hbm [shape: f32[16,128], index: 1, kind: input, shape index: {}]   ;;  %s7353_s2 = inlined_call_operand.hbm [shape: f32[16,128], index: 2, kind: input, shape index: {}]   ;;  %s7354_s3 = inlined_call_operand.hbm [shape: bf16[256,768], index: 3, kind: input, shape index: {}]   ;;  %s7355_s4 = inlined_call_operand.hbm [shape: bf16[256,256], index: 4, kind: input, shape index: {}]   ;;  %s7356_s5 = inlined_call_operand.hbm [shape: bf16[256,1024], index: 5, kind: input, shape index: {}]   ;;  %s7357_s6 = inlined_call_operand.hbm [shape: bf16[512,256], index: 6, kind: input, shape index: {}]   ;;  %s7358_s7 = inlined_call_operand.vmem [shape: f32[1,256], index: 7, kind: input, shape index: {}]   ;;  %s7359_s8 = inlined_call_operand.vmem [shape: f32[1,256], index: 8, kind: input, shape index: {}]   ;;  %s7360_s9 = inlined_call_operand.hbm [shape: f32[2,16,256], index: 9, kind: output, shape index: {}]  }
   0x1   :  { %15 = vsyncpa [#allocation6], 0 }
   0x2   :  { %16 = vsyncpa [#allocation9], 0 }
   0x3   :  { %17 = vsyncpa [#allocation12], 0  ;;  %s36_s11 = sshll.u32 %s7352_s1, 4  ;;  %s37_s11 = int_to_ptr.hbm [resolvable:$true] %s36_s11 }
   0x4   :  { %18 = vsyncpa [#allocation4], 0  ;;  %s5845_s12 = smov [#allocation5]   ;;  %s62_s16 = sshll.u32 %s7354_s3, 4  ;;  %s63_s16 = int_to_ptr.hbm [resolvable:$true] %s62_s16 }
   0x5   :  { %s38_s13 = sshll.u32 %s5845_s12, 4  ;;  %s5846_s17 = smov 128   ;;  %s39_s13 = int_to_ptr.vmem [resolvable:$true] %s38_s13 }
   0x6   :  { %s5847_s18 = smov 8   ;;  %s5848_s19 = smov [#allocation8]  }
   0x7   :  { %44 = dma.hbm_to_vmem [thread:$0]  %s37_s11, 256, %s39_s13, [#allocation6], %s5846_s17, %s5846_s17, %s5847_s18  }
   0x8   :  { %s64_s20 = sshll.u32 %s5848_s19, 4  ;;  %s5849_s1 = smov 384   ;;  %s65_s20 = int_to_ptr.vmem [resolvable:$true] %s64_s20 }
   0x9   :  { %s5850_s21 = smov 24   ;;  %s88_s24 = sshll.u32 %s7356_s5, 4  ;;  %s89_s24 = int_to_ptr.hbm [resolvable:$true] %s88_s24 }
   0xa   :  { %70 = dma.hbm_to_vmem [thread:$0]  %s63_s16, 12288, %s65_s20, [#allocation9], %s5849_s1, %s5849_s1, %s5850_s21  }
   0xb   :  { %s5851_s25 = smov [#allocation11]   ;;  %s23_s28 = sshll.u32 %s7351_s0, 4  ;;  %s24_s28 = int_to_ptr.hbm [resolvable:$true] %s23_s28 }
   0xc   :  { %s90_s3 = sshll.u32 %s5851_s25, 4  ;;  %s5852_s29 = smov 512   ;;  %s91_s3 = int_to_ptr.vmem [resolvable:$true] %s90_s3 }
   0xd   :  { %s5853_s30 = smov 32   ;;  %s5854_s10 = smov [#allocation2]  }
   0xe   :  { %96 = dma.hbm_to_vmem [thread:$0]  %s89_s24, 16384, %s91_s3, [#allocation12], %s5852_s29, %s5852_s29, %s5853_s30  }
   0xf   :  { %s25_s11 = sshll.u32 %s5854_s10, 4  ;;  %s5855_s12 = smov 256   ;;  %s26_s11 = int_to_ptr.vmem [resolvable:$true] %s25_s11 }
  0x10   :  { %s5856_s13 = smov 16   ;;  %s49_s15 = sshll.u32 %s7353_s2, 4  ;;  %s50_s15 = int_to_ptr.hbm [resolvable:$true] %s49_s15 }
  0x11   :  { %31 = dma.hbm_to_vmem [thread:$0]  %s24_s28, 1024, %s26_s11, [#allocation3], %s5855_s12, %s5855_s12, %s5856_s13  }
  0x12   :  { %s5857_s16 = smov [#allocation7]   ;;  %s75_s1 = sshll.u32 %s7355_s4, 4  ;;  %s76_s1 = int_to_ptr.hbm [resolvable:$true] %s75_s1 }
  0x13   :  { %s51_s0 = sshll.u32 %s5857_s16, 4  ;;  %s5858_s21 = smov [#allocation10]   ;;  %s52_s0 = int_to_ptr.vmem [resolvable:$true] %s51_s0 }
  0x14   :  { %57 = dma.hbm_to_vmem [thread:$0]  %s50_s15, 256, %s52_s0, [#allocation6], %s5846_s17, %s5846_s17, %s5847_s18  }
  0x15   :  { %s77_s22 = sshll.u32 %s5858_s21, 4  ;;  %s101_s25 = sshll.u32 %s7357_s6, 4  ;;  %s78_s22 = int_to_ptr.vmem [resolvable:$true] %s77_s22  ;;  %s102_s25 = int_to_ptr.hbm [resolvable:$true] %s101_s25 }
  0x16   :  { %83 = dma.hbm_to_vmem [thread:$0]  %s76_s1, 4096, %s78_s22, [#allocation9], %s5846_s17, %s5846_s17, %s5847_s18  }
  0x17   :  { %s5859_s2 = smov [#allocation13]  }
  0x18   :  { %s103_s3 = sshll.u32 %s5859_s2, 4  ;;  %s104_s3 = int_to_ptr.vmem [resolvable:$true] %s103_s3 }
  0x19   :  { %109 = dma.hbm_to_vmem [thread:$0]  %s102_s25, 8192, %s104_s3, [#allocation12], %s5846_s17, %s5846_s17, %s5847_s18  }
  0x1a   :  { %5835 = dma.done.wait [#allocation3], 1024  }
  0x1b   :  { %5836 = vsyncadd [#allocation3], 4294966272 }
  0x1c   :  { %5837 = dma.done.wait [#allocation6], 512  }
  0x1d   :  { %5838 = vsyncadd [#allocation6], 4294966784 }
  0x1e   :  { %5839 = dma.done.wait [#allocation9], 16384  }
  0x1f   :  { %5840 = vsyncadd [#allocation9], 4294950912 }
  0x20   :  { %5841 = dma.done.wait [#allocation12], 24576  }
  0x21   :  { %5842 = vsyncadd [#allocation12], 4294942720  ;;  %v5950_v0 = vld [vmem:[#allocation2 + $0x20] sm:$0xff]  ;;  %v5952_v1 = vld [vmem:[#allocation2 + $0x28] sm:$0xff]  ;;  %v5860_v23 = vmov 256.0   ;;  %vm1137_vm14 = vcmask 130048  }
  0x22   :  { %v5954_v2 = vld [vmem:[#allocation2] sm:$0xff]  ;;  %v160_v3 = vmul.f32 %v5950_v0, %v5950_v0  ;;  %v161_v4 = vmul.f32 %v5952_v1, %v5952_v1  ;;  %v5960_v5 = vld [vmem:[#allocation2 + $0x8] sm:$0xff]  ;;  %v5966_v8 = vld [vmem:[#allocation2 + $0x30] sm:$0xff]  ;;  %5521 = vrcp.f32 %v5860_v23  ;;  %s3866_s29 = sshll.u32 %s7360_s9, 4  ;;  %s3867_s29 = int_to_ptr.hbm [resolvable:$true] %s3866_s29 }
  0x23   :  { %v156_v6 = vmul.f32 %v5954_v2, %v5954_v2  ;;  %v157_v7 = vmul.f32 %v5960_v5, %v5960_v5  ;;  %v5968_v9 = vld [vmem:[#allocation2 + $0x38] sm:$0xff]  ;;  %v5970_v11 = vld [vmem:[#allocation2 + $0x10] sm:$0xff]  ;;  %v162_v14 = vmul.f32 %v5966_v8, %v5966_v8  ;;  %v5227_v21 = vld [vmem:[#allocation8 + $0x164] sm:$0xf0] }
  0x24   :  { %v170_v10 = vadd.f32 %v161_v4, %v160_v3  ;;  %v5972_v12 = vld [vmem:[#allocation2 + $0x18] sm:$0xff]  ;;  %v163_v15 = vmul.f32 %v5968_v9, %v5968_v9  ;;  %v158_v16 = vmul.f32 %v5970_v11, %v5970_v11  ;;  %v4052_v20 = vld [vmem:[#allocation8 + $0x150] sm:$0xf]  ;;  %v5275_v25 = vld [vmem:[#allocation8 + $0x2e4] sm:$0xf0] }
  0x25   :  { %v164_v13 = vadd.f32 %v157_v7, %v156_v6  ;;  %v159_v17 = vmul.f32 %v5972_v12, %v5972_v12  ;;  %v4244_v22 = vld [vmem:[#allocation8 + $0x2d0] sm:$0xf]  ;;  %v4053_v24 = vor.u32 %v5227_v21, %v4052_v20  ;;  %v5224_v26 = vld [vmem:[#allocation8 + $0x154] sm:$0xf]  ;;  %v4054_v27 = vld [vmem:[#allocation8 + $0x168] sm:$0xf0] }
  0x26   :  { %171 = vadd.xlane.f32.xlu1 %v170_v10  ;;  %v173_v18 = vadd.f32 %v163_v15, %v162_v14  ;;  %v4245_v28 = vor.u32 %v5275_v25, %v4244_v22  ;;  %v4057_v29 = vor.u32 %v5224_v26, %v4054_v27  ;;  %v5272_v30 = vld [vmem:[#allocation8 + $0x2d4] sm:$0xf]  ;;  %v4246_v31 = vld [vmem:[#allocation8 + $0x2e8] sm:$0xf0]  ;;  %v4028_v33 = vld [vmem:[#allocation8 + $0x120] sm:$0xf] }
  0x27   :  { %165 = vadd.xlane.f32.xlu0 %v164_v13  ;;  %v167_v19 = vadd.f32 %v159_v17, %v158_v16  ;;  %832 = vmatpush.bf16.msra.mxu0 %v4053_v24  ;;  %v4249_v32 = vor.u32 %v5272_v30, %v4246_v31  ;;  %v5221_v34 = vld [vmem:[#allocation8 + $0x134] sm:$0xf0]  ;;  %v4220_v35 = vld [vmem:[#allocation8 + $0x2a0] sm:$0xf]  ;;  %v5218_v38 = vld [vmem:[#allocation8 + $0x124] sm:$0xf] }
  0x28   :  { %851 = vmatpush.bf16.msra.mxu1 %v4245_v28  ;;  %870 = vmatpush.bf16.msra.mxu2 %v4057_v29  ;;  %v4029_v36 = vor.u32 %v5221_v34, %v4028_v33  ;;  %v5269_v37 = vld [vmem:[#allocation8 + $0x2b4] sm:$0xf0]  ;;  %v4030_v39 = vld [vmem:[#allocation8 + $0x138] sm:$0xf0]  ;;  %v5266_v42 = vld [vmem:[#allocation8 + $0x2a4] sm:$0xf]  ;;  %v5982_v44 = vpop.eup %5521 }
  0x29   :  { %889 = vmatpush.bf16.msra.mxu3 %v4249_v32  ;;  %v4221_v40 = vor.u32 %v5269_v37, %v4220_v35  ;;  %v4033_v41 = vor.u32 %v5218_v38, %v4030_v39  ;;  %v4222_v43 = vld [vmem:[#allocation8 + $0x2b8] sm:$0xf0]  ;;  %v4004_v46 = vld [vmem:[#allocation8 + $0xf0] sm:$0xf]  ;;  %v5215_v47 = vld [vmem:[#allocation8 + $0x104] sm:$0xf0]  ;;  %vm181_vm0 = vweird.f32 %v5982_v44 }
  0x2a   :  { %v4225_v45 = vor.u32 %v5266_v42, %v4222_v43  ;;  %v4196_v48 = vld [vmem:[#allocation8 + $0x270] sm:$0xf]  ;;  %v4005_v49 = vor.u32 %v5215_v47, %v4004_v46  ;;  %v5263_v50 = vld [vmem:[#allocation8 + $0x284] sm:$0xf0]  ;;  %v5212_v51 = vld [vmem:[#allocation8 + $0xf4] sm:$0xf] }
  0x2b   :  { %833 = vmatpush.bf16.msra.mxu0 %v4029_v36  ;;  %v4006_v52 = vld [vmem:[#allocation8 + $0x108] sm:$0xf0]  ;;  %v177_v53 = vmul.f32 256.0, %v5982_v44  ;;  %v4197_v54 = vor.u32 %v5263_v50, %v4196_v48  ;;  %v5260_v56 = vld [vmem:[#allocation8 + $0x274] sm:$0xf] }
  0x2c   :  { %852 = vmatpush.bf16.msra.mxu1 %v4221_v40  ;;  %871 = vmatpush.bf16.msra.mxu2 %v4033_v41  ;;  %v4009_v55 = vor.u32 %v5212_v51, %v4006_v52  ;;  %v4198_v57 = vld [vmem:[#allocation8 + $0x288] sm:$0xf0]  ;;  %v3980_v59 = vld [vmem:[#allocation8 + $0xc0] sm:$0xf]  ;;  %v5209_v60 = vld [vmem:[#allocation8 + $0xd4] sm:$0xf0] }
  0x2d   :  { %890 = vmatpush.bf16.msra.mxu3 %v4225_v45  ;;  %v4201_v58 = vor.u32 %v5260_v56, %v4198_v57  ;;  %v4172_v61 = vld [vmem:[#allocation8 + $0x240] sm:$0xf]  ;;  %v3981_v62 = vor.u32 %v5209_v60, %v3980_v59  ;;  %v5257_v63 = vld [vmem:[#allocation8 + $0x254] sm:$0xf0]  ;;  %v5206_v3 = vld [vmem:[#allocation8 + $0xc4] sm:$0xf] }
  0x2e   :  { %174 = vadd.xlane.f32.xlu1 %v173_v18  ;;  %v3982_v4 = vld [vmem:[#allocation8 + $0xd8] sm:$0xf0]  ;;  %v178_v6 = vsub.f32 1.0, %v177_v53  ;;  %v4173_v7 = vor.u32 %v5257_v63, %v4172_v61  ;;  %v5254_v13 = vld [vmem:[#allocation8 + $0x244] sm:$0xf] }
  0x2f   :  { %168 = vadd.xlane.f32.xlu0 %v167_v19  ;;  %834 = vmatpush.bf16.msra.mxu0 %v4005_v49  ;;  %v3985_v10 = vor.u32 %v5206_v3, %v3982_v4  ;;  %v4174_v14 = vld [vmem:[#allocation8 + $0x258] sm:$0xf0]  ;;  %v3956_v16 = vld [vmem:[#allocation8 + $0x90] sm:$0xf]  ;;  %v5203_v17 = vld [vmem:[#allocation8 + $0xa4] sm:$0xf0] }
  0x30   :  { %853 = vmatpush.bf16.msra.mxu1 %v4197_v54  ;;  %872 = vmatpush.bf16.msra.mxu2 %v4009_v55  ;;  %v4177_v15 = vor.u32 %v5254_v13, %v4174_v14  ;;  %v4148_v18 = vld [vmem:[#allocation8 + $0x210] sm:$0xf]  ;;  %v3957_v19 = vor.u32 %v5203_v17, %v3956_v16  ;;  %v5251_v20 = vld [vmem:[#allocation8 + $0x224] sm:$0xf0]  ;;  %v5200_v21 = vld [vmem:[#allocation8 + $0x94] sm:$0xf]  ;;  %v179_v23 = vmul.f32 %v5982_v44, %v178_v6 }
  0x31   :  { %891 = vmatpush.bf16.msra.mxu3 %v4201_v58  ;;  %v3958_v22 = vld [vmem:[#allocation8 + $0xa8] sm:$0xf0]  ;;  %v4149_v24 = vor.u32 %v5251_v20, %v4148_v18  ;;  %v5248_v26 = vld [vmem:[#allocation8 + $0x214] sm:$0xf]  ;;  %v3932_v29 = vld [vmem:[#allocation8 + $0x60] sm:$0xf] }
  0x32   :  { %v3961_v25 = vor.u32 %v5200_v21, %v3958_v22  ;;  %v4150_v27 = vld [vmem:[#allocation8 + $0x228] sm:$0xf0]  ;;  %v5197_v30 = vld [vmem:[#allocation8 + $0x74] sm:$0xf0]  ;;  %v4124_v31 = vld [vmem:[#allocation8 + $0x1e0] sm:$0xf]  ;;  %v180_v36 = vadd.f32 %v5982_v44, %v179_v23 }
  0x33   :  { %835 = vmatpush.bf16.msra.mxu0 %v3981_v62  ;;  %v4153_v28 = vor.u32 %v5248_v26, %v4150_v27  ;;  %v3933_v32 = vor.u32 %v5197_v30, %v3932_v29  ;;  %v5245_v33 = vld [vmem:[#allocation8 + $0x1f4] sm:$0xf0]  ;;  %v5194_v34 = vld [vmem:[#allocation8 + $0x64] sm:$0xf]  ;;  %v3934_v35 = vld [vmem:[#allocation8 + $0x78] sm:$0xf0] }
  0x34   :  { %854 = vmatpush.bf16.msra.mxu1 %v4173_v7  ;;  %873 = vmatpush.bf16.msra.mxu2 %v3985_v10  ;;  %v4125_v37 = vor.u32 %v5245_v33, %v4124_v31  ;;  %v3937_v38 = vor.u32 %v5194_v34, %v3934_v35  ;;  %v5242_v39 = vld [vmem:[#allocation8 + $0x1e4] sm:$0xf]  ;;  %v4126_v40 = vld [vmem:[#allocation8 + $0x1f8] sm:$0xf0]  ;;  %v3908_v42 = vld [vmem:[#allocation8 + $0x30] sm:$0xf]  ;;  %v5989_v50 = vsel %vm181_vm0, %v5982_v44, %v180_v36 }
  0x35   :  { %892 = vmatpush.bf16.msra.mxu3 %v4177_v15  ;;  %v4129_v41 = vor.u32 %v5242_v39, %v4126_v40  ;;  %v5191_v43 = vld [vmem:[#allocation8 + $0x44] sm:$0xf0]  ;;  %v4100_v45 = vld [vmem:[#allocation8 + $0x1b0] sm:$0xf]  ;;  %v5188_v48 = vld [vmem:[#allocation8 + $0x34] sm:$0xf] }
  0x36   :  { %v3909_v46 = vor.u32 %v5191_v43, %v3908_v42  ;;  %v5239_v47 = vld [vmem:[#allocation8 + $0x1c4] sm:$0xf0]  ;;  %v3910_v49 = vld [vmem:[#allocation8 + $0x48] sm:$0xf0]  ;;  %7396 = vst [vmem:[#allocation20_spill] sm:$0xff] %v5989_v50 }
  0x37   :  { %836 = vmatpush.bf16.msra.mxu0 %v3957_v19  ;;  %v4101_v51 = vor.u32 %v5239_v47, %v4100_v45  ;;  %v3913_v52 = vor.u32 %v5188_v48, %v3910_v49  ;;  %v5236_v53 = vld [vmem:[#allocation8 + $0x1b4] sm:$0xf]  ;;  %v4102_v54 = vld [vmem:[#allocation8 + $0x1c8] sm:$0xf0]  ;;  %v3884_v57 = vld [vmem:[#allocation8] sm:$0xf] }
  0x38   :  { %855 = vmatpush.bf16.msra.mxu1 %v4149_v24  ;;  %874 = vmatpush.bf16.msra.mxu2 %v3961_v25  ;;  %v4105_v55 = vor.u32 %v5236_v53, %v4102_v54  ;;  %v5185_v58 = vld [vmem:[#allocation8 + $0x14] sm:$0xf0]  ;;  %v4076_v59 = vld [vmem:[#allocation8 + $0x180] sm:$0xf]  ;;  %v5182_v44 = vld [vmem:[#allocation8 + $0x4] sm:$0xf] }
  0x39   :  { %893 = vmatpush.bf16.msra.mxu3 %v4153_v28  ;;  %v3885_v62 = vor.u32 %v5185_v58, %v3884_v57  ;;  %v5233_v63 = vld [vmem:[#allocation8 + $0x194] sm:$0xf0]  ;;  %v3886_v3 = vld [vmem:[#allocation8 + $0x18] sm:$0xf0]  ;;  %v5230_v10 = vld [vmem:[#allocation8 + $0x184] sm:$0xf] }
  0x3a   :  { %v4077_v6 = vor.u32 %v5233_v63, %v4076_v59  ;;  %v3889_v7 = vor.u32 %v5182_v44, %v3886_v3  ;;  %v4078_v13 = vld [vmem:[#allocation8 + $0x198] sm:$0xf0]  ;;  %v4060_v17 = vld [vmem:[#allocation8 + $0x158] sm:$0xf]  ;;  %v5228_v18 = vld [vmem:[#allocation8 + $0x16c] sm:$0xf0] }
  0x3b   :  { %837 = vmatpush.bf16.msra.mxu0 %v3933_v32  ;;  %v4081_v14 = vor.u32 %v5230_v10, %v4078_v13  ;;  %v4252_v19 = vld [vmem:[#allocation8 + $0x2d8] sm:$0xf]  ;;  %v4061_v20 = vor.u32 %v5228_v18, %v4060_v17  ;;  %v5276_v21 = vld [vmem:[#allocation8 + $0x2ec] sm:$0xf0]  ;;  %v5225_v22 = vld [vmem:[#allocation8 + $0x15c] sm:$0xf] }
  0x3c   :  { %856 = vmatpush.bf16.msra.mxu1 %v4125_v37  ;;  %875 = vmatpush.bf16.msra.mxu2 %v3937_v38  ;;  %v4062_v23 = vld [vmem:[#allocation8 + $0x170] sm:$0xf0]  ;;  %v4253_v24 = vor.u32 %v5276_v21, %v4252_v19  ;;  %v5273_v26 = vld [vmem:[#allocation8 + $0x2dc] sm:$0xf]  ;;  %v4036_v28 = vld [vmem:[#allocation8 + $0x128] sm:$0xf] }
  0x3d   :  { %894 = vmatpush.bf16.msra.mxu3 %v4129_v41  ;;  %v4065_v25 = vor.u32 %v5225_v22, %v4062_v23  ;;  %v4254_v27 = vld [vmem:[#allocation8 + $0x2f0] sm:$0xf0]  ;;  %v5222_v31 = vld [vmem:[#allocation8 + $0x13c] sm:$0xf0]  ;;  %v4228_v32 = vld [vmem:[#allocation8 + $0x2a8] sm:$0xf] }
  0x3e   :  { %v4257_v30 = vor.u32 %v5273_v26, %v4254_v27  ;;  %v5270_v33 = vld [vmem:[#allocation8 + $0x2bc] sm:$0xf0]  ;;  %v4037_v36 = vor.u32 %v5222_v31, %v4036_v28  ;;  %v5219_v38 = vld [vmem:[#allocation8 + $0x12c] sm:$0xf]  ;;  %v4038_v39 = vld [vmem:[#allocation8 + $0x140] sm:$0xf0] }
  0x3f   :  { %838 = vmatpush.bf16.msra.mxu0 %v3909_v46  ;;  %v4229_v37 = vor.u32 %v5270_v33, %v4228_v32  ;;  %v5267_v40 = vld [vmem:[#allocation8 + $0x2ac] sm:$0xf]  ;;  %v4041_v42 = vor.u32 %v5219_v38, %v4038_v39  ;;  %v4230_v43 = vld [vmem:[#allocation8 + $0x2c0] sm:$0xf0]  ;;  %v4012_v45 = vld [vmem:[#allocation8 + $0xf8] sm:$0xf] }
  0x40   :  { %857 = vmatpush.bf16.msra.mxu1 %v4101_v51  ;;  %876 = vmatpush.bf16.msra.mxu2 %v3913_v52  ;;  %v5216_v46 = vld [vmem:[#allocation8 + $0x10c] sm:$0xf0]  ;;  %v4233_v48 = vor.u32 %v5267_v40, %v4230_v43  ;;  %v4204_v49 = vld [vmem:[#allocation8 + $0x278] sm:$0xf]  ;;  %v5261_v59 = vld [vmem:[#allocation8 + $0x27c] sm:$0xf] }
  0x41   :  { %895 = vmatpush.bf16.msra.mxu3 %v4105_v55  ;;  %v5264_v51 = vld [vmem:[#allocation8 + $0x28c] sm:$0xf0]  ;;  %v4013_v54 = vor.u32 %v5216_v46, %v4012_v45  ;;  %v5213_v55 = vld [vmem:[#allocation8 + $0xfc] sm:$0xf]  ;;  %v5210_v63 = vld [vmem:[#allocation8 + $0xdc] sm:$0xf0] }
  0x42   :  { %v4205_v58 = vor.u32 %v5264_v51, %v4204_v49  ;;  %v5207_v10 = vld [vmem:[#allocation8 + $0xcc] sm:$0xf]  ;;  %v4182_v21 = vld [vmem:[#allocation8 + $0x260] sm:$0xf0]  ;;  %v155_v28 = vld [vmem:[%s7358_s7] sm:$0x3] }
  0x43   :  { %839 = vmatpush.bf16.msra.mxu0 %v3885_v62  ;;  %v3988_v62 = vld [vmem:[#allocation8 + $0xc8] sm:$0xf]  ;;  %v5255_v17 = vld [vmem:[#allocation8 + $0x24c] sm:$0xf]  ;;  %v5204_v31 = vld [vmem:[#allocation8 + $0xac] sm:$0xf0] }
  0x44   :  { %858 = vmatpush.bf16.msra.mxu1 %v4077_v6  ;;  %877 = vmatpush.bf16.msra.mxu2 %v3889_v7  ;;  %v4180_v6 = vld [vmem:[#allocation8 + $0x248] sm:$0xf]  ;;  %v5258_v7 = vld [vmem:[#allocation8 + $0x25c] sm:$0xf0]  ;;  %v3989_v13 = vor.u32 %v5210_v63, %v3988_v62  ;;  %v4185_v23 = vor.u32 %v5255_v17, %v4182_v21  ;;  %v5201_v39 = vld [vmem:[#allocation8 + $0x9c] sm:$0xf] }
  0x45   :  { %896 = vmatpush.bf16.msra.mxu3 %v4081_v14  ;;  %v3990_v14 = vld [vmem:[#allocation8 + $0xe0] sm:$0xf0]  ;;  %v4181_v19 = vor.u32 %v5258_v7, %v4180_v6  ;;  %v3966_v40 = vld [vmem:[#allocation8 + $0xb0] sm:$0xf0]  ;;  %v3940_v46 = vld [vmem:[#allocation8 + $0x68] sm:$0xf] }
  0x46   :  { %v4158_v45 = vld [vmem:[#allocation8 + $0x230] sm:$0xf0]  ;;  %v3969_v51 = vor.u32 %v5201_v39, %v3966_v40  ;;  %v4134_v6 = vld [vmem:[#allocation8 + $0x200] sm:$0xf0]  ;;  %v3916_v7 = vld [vmem:[#allocation8 + $0x38] sm:$0xf] }
  0x47   :  { %908 = vmatpush.bf16.msrb.mxu0 %v4061_v20  ;;  %v3993_v20 = vor.u32 %v5207_v10, %v3990_v14  ;;  %v5192_v10 = vld [vmem:[#allocation8 + $0x4c] sm:$0xf0]  ;;  %v3894_v39 = vld [vmem:[#allocation8 + $0x20] sm:$0xf0]  ;;  %s5861_s7 = smov 64  }
  0x48   :  { %927 = vmatpush.bf16.msrb.mxu1 %v4253_v24  ;;  %946 = vmatpush.bf16.msrb.mxu2 %v4065_v25  ;;  %v3917_v17 = vor.u32 %v5192_v10, %v3916_v7  ;;  %v5226_v62 = vld [vmem:[#allocation8 + $0x164] sm:$0xf]  ;;  %v5223_v10 = vld [vmem:[#allocation8 + $0x144] sm:$0xf0] }
  0x49   :  { %965 = vmatpush.bf16.msrb.mxu3 %v4257_v30  ;;  %v3964_v30 = vld [vmem:[#allocation8 + $0x98] sm:$0xf] }
  0x4b   :  { %909 = vmatpush.bf16.msrb.mxu0 %v4037_v36  ;;  %v5252_v36 = vld [vmem:[#allocation8 + $0x22c] sm:$0xf0] }
  0x4c   :  { %928 = vmatpush.bf16.msrb.mxu1 %v4229_v37  ;;  %947 = vmatpush.bf16.msrb.mxu2 %v4041_v42  ;;  %v6032_v42 = vperm.slane %v155_v28, 0 }
  0x4d   :  { %966 = vmatpush.bf16.msrb.mxu3 %v4233_v48  ;;  %v6036_v48 = vperm.slane %v155_v28, 1  ;;  %v4110_v28 = vld [vmem:[#allocation8 + $0x1d0] sm:$0xf0] }
  0x4f   :  { %910 = vmatpush.bf16.msrb.mxu0 %v4013_v54  ;;  %v5198_v54 = vld [vmem:[#allocation8 + $0x7c] sm:$0xf0] }
  0x50   :  { %929 = vmatpush.bf16.msrb.mxu1 %v4205_v58  ;;  %v5246_v58 = vld [vmem:[#allocation8 + $0x1fc] sm:$0xf0]  ;;  %v3941_v63 = vor.u32 %v5198_v54, %v3940_v46 }
  0x53   :  { %911 = vmatpush.bf16.msrb.mxu0 %v3989_v13 }
  0x54   :  { %930 = vmatpush.bf16.msrb.mxu1 %v4181_v19  ;;  %v5240_v19 = vld [vmem:[#allocation8 + $0x1cc] sm:$0xf0] }
  0x99   :  { %v172_v56 = vpop.xlane.xlu1 %171 }
  0x9a   :  { %v185_v60 = vmul.f32 %v5989_v50, %v172_v56  ;;  %v166_v61 = vpop.xlane.xlu0 %165  ;;  %v4014_v56 = vld [vmem:[#allocation8 + $0x110] sm:$0xf0] }
  0x9b   :  { %v183_v4 = vmul.f32 %v5989_v50, %v166_v61  ;;  %v4017_v61 = vor.u32 %v5213_v55, %v4014_v56  ;;  %v4132_v55 = vld [vmem:[#allocation8 + $0x1e8] sm:$0xf] }
  0x9c   :  { %v5993_v15 = vadd.f32 1e-06, %v185_v60  ;;  %v4206_v60 = vld [vmem:[#allocation8 + $0x290] sm:$0xf0] }
  0x9d   :  { %v5995_v16 = vadd.f32 1e-06, %v183_v4  ;;  %v4209_v4 = vor.u32 %v5261_v59, %v4206_v60  ;;  %948 = vmatpush.bf16.msrb.mxu2 %v4017_v61  ;;  %v5195_v59 = vld [vmem:[#allocation8 + $0x6c] sm:$0xf] }
  0x9e   :  { %vm217_vm7 = vweird.f32 %v5993_v15 }
  0x9f   :  { %5523 = vrsqrt.f32 %v5995_v16  ;;  %967 = vmatpush.bf16.msrb.mxu3 %v4209_v4  ;;  %vm197_vm2 = vweird.f32 %v5995_v16  ;;  %v3942_v4 = vld [vmem:[#allocation8 + $0x80] sm:$0xf0] }
  0xa0   :  { %5525 = vrsqrt.f32 %v5993_v15 }
  0xa1   :  { %v175_v29 = vpop.xlane.xlu1 %174  ;;  %949 = vmatpush.bf16.msrb.mxu2 %v3993_v20  ;;  %v5189_v20 = vld [vmem:[#allocation8 + $0x3c] sm:$0xf] }
  0xa2   :  { %v186_v34 = vmul.f32 %v5989_v50, %v175_v29  ;;  %v169_v35 = vpop.xlane.xlu0 %168 }
  0xa3   :  { %v184_v41 = vmul.f32 %v5989_v50, %v169_v35  ;;  %968 = vmatpush.bf16.msrb.mxu3 %v4185_v23  ;;  %v4156_v35 = vld [vmem:[#allocation8 + $0x218] sm:$0xf] }
  0xa4   :  { %v6001_v47 = vadd.f32 1e-06, %v186_v34  ;;  %v3965_v34 = vor.u32 %v5204_v31, %v3964_v30  ;;  %v4157_v43 = vor.u32 %v5252_v36, %v4156_v35  ;;  %v4084_v36 = vld [vmem:[#allocation8 + $0x188] sm:$0xf] }
  0xa5   :  { %v6003_v52 = vpop.eup %5523  ;;  %v6005_v53 = vadd.f32 1e-06, %v184_v41  ;;  %v5249_v41 = vld [vmem:[#allocation8 + $0x21c] sm:$0xf]  ;;  %950 = vmatpush.bf16.msrb.mxu2 %v3969_v51 }
  0xa6   :  { %v192_v57 = vmul.f32 %v6003_v52, %v5995_v16  ;;  %5527 = vrsqrt.f32 %v6001_v47  ;;  %v6011_v44 = vpop.eup %5525  ;;  %vm198_vm1 = vweird.f32 %v6003_v52  ;;  %912 = vmatpush.bf16.msrb.mxu0 %v3965_v34  ;;  %931 = vmatpush.bf16.msrb.mxu1 %v4157_v43  ;;  %v4161_v16 = vor.u32 %v5249_v41, %v4158_v45  ;;  %v5231_v43 = vld [vmem:[#allocation8 + $0x18c] sm:$0xf]  ;;  %v4086_v45 = vld [vmem:[#allocation8 + $0x1a0] sm:$0xf0] }
  0xa7   :  { %5529 = vrsqrt.f32 %v6005_v53  ;;  %v212_v22 = vmul.f32 %v6011_v44, %v5993_v15  ;;  %vm199_vm4 = vmor %vm197_vm2, %vm198_vm1  ;;  %vm207_vm5 = vweird.f32 %v6005_v53  ;;  %vm218_vm8 = vweird.f32 %v6011_v44 }
  0xa8   :  { %v193_v3 = vmul.f32 %v6003_v52, %v192_v57  ;;  %969 = vmatpush.bf16.msrb.mxu3 %v4161_v16  ;;  %vm227_vm9 = vweird.f32 %v6001_v47  ;;  %vm6074_vm11 = vmor %vm217_vm7, %vm218_vm8  ;;  %v4068_v16 = vld [vmem:[#allocation8 + $0x160] sm:$0xf] }
  0xa9   :  { %v213_v32 = vmul.f32 %v6011_v44, %v212_v22 }
  0xaa   :  { %v194_v18 = vmul.f32 0.5, %v193_v3  ;;  %v4133_v3 = vor.u32 %v5246_v58, %v4132_v55  ;;  %913 = vmatpush.bf16.msrb.mxu0 %v3941_v63  ;;  %v5229_v58 = vld [vmem:[#allocation8 + $0x174] sm:$0xf0]  ;;  %v4070_v63 = vld [vmem:[#allocation8 + $0x178] sm:$0xf0] }
  0xab   :  { %v6040_v56 = vmul.f32 0.5, %v213_v32  ;;  %v3892_v32 = vld [vmem:[#allocation8 + $0x8] sm:$0xf] }
  0xac   :  { %v6016_v24 = vpop.eup %5527  ;;  %v195_v25 = vsub.f32 1.5, %v194_v18  ;;  %v4108_v18 = vld [vmem:[#allocation8 + $0x1b8] sm:$0xf]  ;;  %932 = vmatpush.bf16.msrb.mxu1 %v4133_v3 }
  0xad   :  { %v6018_v26 = vpop.eup %5529  ;;  %v222_v27 = vmul.f32 %v6016_v24, %v6001_v47  ;;  %v4109_v23 = vor.u32 %v5240_v19, %v4108_v18  ;;  %vm228_vm10 = vweird.f32 %v6016_v24  ;;  %v5220_v19 = vld [vmem:[#allocation8 + $0x134] sm:$0xf] }
  0xae   :  { %v202_v29 = vmul.f32 %v6018_v26, %v6005_v53  ;;  %v196_v33 = vmul.f32 %v6003_v52, %v195_v25  ;;  %vm208_vm3 = vweird.f32 %v6018_v26  ;;  %v3945_v53 = vor.u32 %v5195_v59, %v3942_v4  ;;  %v3918_v25 = vld [vmem:[#allocation8 + $0x50] sm:$0xf0]  ;;  %914 = vmatpush.bf16.msrb.mxu0 %v3917_v17  ;;  %vm6082_vm12 = vmor %vm227_vm9, %vm228_vm10  ;;  %v4260_v59 = vld [vmem:[#allocation8 + $0x2e0] sm:$0xf] }
  0xaf   :  { %v223_v37 = vmul.f32 %v6016_v24, %v222_v27  ;;  %vm6048_vm6 = vmor %vm207_vm5, %vm208_vm3  ;;  %v5237_v27 = vld [vmem:[#allocation8 + $0x1bc] sm:$0xf]  ;;  %v3921_v31 = vor.u32 %v5189_v20, %v3918_v25  ;;  %v4073_v4 = vor.u32 %v5226_v62, %v4070_v63  ;;  %v4046_v20 = vld [vmem:[#allocation8 + $0x148] sm:$0xf0] }
  0xb0   :  { %v203_v38 = vmul.f32 %v6018_v26, %v202_v29  ;;  %v200_v57 = vsel %vm199_vm4, %v6003_v52, %v196_v33  ;;  %v5243_v52 = vld [vmem:[#allocation8 + $0x1ec] sm:$0xf]  ;;  %v215_v29 = vsub.f32 1.5, %v6040_v56  ;;  %951 = vmatpush.bf16.msrb.mxu2 %v3945_v53  ;;  %v5186_v33 = vld [vmem:[#allocation8 + $0x1c] sm:$0xf0]  ;;  %v4113_v35 = vor.u32 %v5237_v27, %v4110_v28  ;;  %933 = vmatpush.bf16.msrb.mxu1 %v4109_v23 }
  0xb1   :  { %v6044_v60 = vmul.f32 0.5, %v223_v37  ;;  %v4137_v14 = vor.u32 %v5243_v52, %v4134_v6  ;;  %v231_v21 = vmul.f32 %v200_v57, %v5954_v2  ;;  %v232_v22 = vmul.f32 %v200_v57, %v5960_v5  ;;  %v5274_v52 = vld [vmem:[#allocation8 + $0x2e4] sm:$0xf]  ;;  %v4262_v53 = vld [vmem:[#allocation8 + $0x2f8] sm:$0xf0] }
  0xb2   :  { %v204_v49 = vmul.f32 0.5, %v203_v38  ;;  %v3893_v37 = vor.u32 %v5186_v33, %v3892_v32  ;;  %v5183_v38 = vld [vmem:[#allocation8 + $0xc] sm:$0xf]  ;;  %v4089_v57 = vor.u32 %v5231_v43, %v4086_v45  ;;  %v216_v47 = vmul.f32 %v6011_v44, %v215_v29  ;;  %v4044_v6 = vld [vmem:[#allocation8 + $0x130] sm:$0xf] }
  0xb3   :  { %v225_v2 = vsub.f32 1.5, %v6044_v60  ;;  %970 = vmatpush.bf16.msrb.mxu3 %v4137_v14  ;;  %v244_v40 = vmul.f32 %v6032_v42, %v231_v21  ;;  %v245_v41 = vmul.f32 %v6036_v48, %v232_v22  ;;  %v3897_v15 = vor.u32 %v5183_v38, %v3894_v39  ;;  %v5271_v14 = vld [vmem:[#allocation8 + $0x2c4] sm:$0xf0]  ;;  %v5268_v21 = vld [vmem:[#allocation8 + $0x2b4] sm:$0xf] }
  0xb4   :  { %v205_v61 = vsub.f32 1.5, %v204_v49  ;;  %952 = vmatpush.bf16.msrb.mxu2 %v3921_v31  ;;  %915 = vmatpush.bf16.msrb.mxu0 %v3893_v37  ;;  %v4069_v60 = vor.u32 %v5229_v58, %v4068_v16  ;;  %v4265_v7 = vor.u32 %v5274_v52, %v4262_v53  ;;  %v4045_v18 = vor.u32 %v5223_v10, %v4044_v6  ;;  %v4238_v27 = vld [vmem:[#allocation8 + $0x2c8] sm:$0xf0]  ;;  %v4020_v28 = vld [vmem:[#allocation8 + $0x100] sm:$0xf] }
  0xb5   :  { %v226_v56 = vmul.f32 %v6016_v24, %v225_v2  ;;  %v220_v22 = vsel %vm6074_vm11, %v6011_v44, %v216_v47  ;;  %v4049_v25 = vor.u32 %v5220_v19, %v4046_v20  ;;  %v5217_v29 = vld [vmem:[#allocation8 + $0x114] sm:$0xf0]  ;;  %v5214_v32 = vld [vmem:[#allocation8 + $0x104] sm:$0xf]  ;;  %v3996_v39 = vld [vmem:[#allocation8 + $0xd0] sm:$0xf] }
  0xb6   :  { %v206_v13 = vmul.f32 %v6018_v26, %v205_v61  ;;  %v5277_v61 = vld [vmem:[#allocation8 + $0x2f4] sm:$0xf0]  ;;  %v235_v44 = vmul.f32 %v220_v22, %v5950_v0  ;;  %v236_v37 = vmul.f32 %v220_v22, %v5952_v1  ;;  %v5259_v0 = vld [vmem:[#allocation8 + $0x264] sm:$0xf0]  ;;  %v5208_v43 = vld [vmem:[#allocation8 + $0xd4] sm:$0xf] }
  0xb7   :  { %971 = vmatpush.bf16.msrb.mxu3 %v4113_v35  ;;  %v4261_v3 = vor.u32 %v5277_v61, %v4260_v59  ;;  %v230_v17 = vsel %vm6082_vm12, %v6016_v24, %v226_v56  ;;  %v4212_v24 = vld [vmem:[#allocation8 + $0x280] sm:$0xf]  ;;  %v5265_v31 = vld [vmem:[#allocation8 + $0x294] sm:$0xf0]  ;;  %v4214_v35 = vld [vmem:[#allocation8 + $0x298] sm:$0xf0] }
  0xb8   :  { %v210_v30 = vsel %vm6048_vm6, %v6018_v26, %v206_v13  ;;  %v5234_v26 = vld [vmem:[#allocation8 + $0x19c] sm:$0xf0]  ;;  %953 = vmatpush.bf16.msrb.mxu2 %v3897_v15  ;;  %v4236_v13 = vld [vmem:[#allocation8 + $0x2b0] sm:$0xf]  ;;  %v237_v33 = vmul.f32 %v230_v17, %v5966_v8  ;;  %v238_v2 = vmul.f32 %v230_v17, %v5968_v9  ;;  %v3998_v45 = vld [vmem:[#allocation8 + $0xe8] sm:$0xf0]  ;;  %v248_v1 = vmul.f32 %v6032_v42, %v235_v44 }
  0xb9   :  { %v233_v5 = vmul.f32 %v210_v30, %v5970_v11  ;;  %v234_v34 = vmul.f32 %v210_v30, %v5972_v12  ;;  %v4085_v55 = vor.u32 %v5234_v26, %v4084_v36  ;;  %v4237_v23 = vor.u32 %v5271_v14, %v4236_v13  ;;  %v5256_v49 = vld [vmem:[#allocation8 + $0x254] sm:$0xf]  ;;  %v3972_v59 = vld [vmem:[#allocation8 + $0xa0] sm:$0xf]  ;;  %v5205_v47 = vld [vmem:[#allocation8 + $0xb4] sm:$0xf0] }
  0xba   :  { %v4241_v30 = vor.u32 %v5268_v21, %v4238_v27  ;;  %v4021_v36 = vor.u32 %v5217_v29, %v4020_v28  ;;  %v4213_v26 = vor.u32 %v5265_v31, %v4212_v24  ;;  %v250_v8 = vmul.f32 %v6032_v42, %v237_v33  ;;  %v5202_v61 = vld [vmem:[#allocation8 + $0xa4] sm:$0xf]  ;;  %v3974_v62 = vld [vmem:[#allocation8 + $0xb8] sm:$0xf0]  ;;  %v5199_v6 = vld [vmem:[#allocation8 + $0x84] sm:$0xf0] }
  0xbb   :  { %v246_v11 = vmul.f32 %v6032_v42, %v233_v5  ;;  %v247_v12 = vmul.f32 %v6036_v48, %v234_v34  ;;  %934 = vmatpush.bf16.msrb.mxu1 %v4085_v55  ;;  %972 = vmatpush.bf16.msrb.mxu3 %v4089_v57  ;;  %v4022_v5 = vld [vmem:[#allocation8 + $0x118] sm:$0xf0]  ;;  %v5262_v34 = vld [vmem:[#allocation8 + $0x284] sm:$0xf]  ;;  %v251_v9 = vmul.f32 %v6036_v48, %v238_v2  ;;  %v4190_v55 = vld [vmem:[#allocation8 + $0x268] sm:$0xf0] }
  0xbc   :  { %v4025_v38 = vor.u32 %v5214_v32, %v4022_v5  ;;  %v249_v46 = vmul.f32 %v6036_v48, %v236_v37  ;;  %v6110_v15 = vpack.c.bf16 %v250_v8, %v248_v1  ;;  %v4001_v16 = vor.u32 %v5208_v43, %v3998_v45  ;;  %v5253_v48 = vld [vmem:[#allocation8 + $0x234] sm:$0xf0]  ;;  %v5250_v63 = vld [vmem:[#allocation8 + $0x224] sm:$0xf]  ;;  %v5247_v10 = vld [vmem:[#allocation8 + $0x204] sm:$0xf0] }
  0xbd   :  { %v6086_v51 = vpack.c.bf16 %v246_v11, %v244_v40  ;;  %v6088_v54 = vpack.c.bf16 %v247_v12, %v245_v41  ;;  %v5211_v40 = vld [vmem:[#allocation8 + $0xe4] sm:$0xf0]  ;;  %v4217_v41 = vor.u32 %v5262_v34, %v4214_v35  ;;  %v4188_v11 = vld [vmem:[#allocation8 + $0x250] sm:$0xf]  ;;  %v4193_v58 = vor.u32 %v5256_v49, %v4190_v55  ;;  %v5196_v17 = vld [vmem:[#allocation8 + $0x74] sm:$0xf] }
  0xbe   :  { %v3997_v12 = vor.u32 %v5211_v40, %v3996_v39  ;;  %v6112_v56 = vpack.c.bf16 %v251_v9, %v249_v46  ;;  %v4189_v57 = vor.u32 %v5259_v0, %v4188_v11  ;;  %v3973_v42 = vor.u32 %v5205_v47, %v3972_v59  ;;  %v5244_v19 = vld [vmem:[#allocation8 + $0x1f4] sm:$0xf]  ;;  %v4142_v20 = vld [vmem:[#allocation8 + $0x208] sm:$0xf0]  ;;  %v3924_v21 = vld [vmem:[#allocation8 + $0x40] sm:$0xf] }
  0xbf   :  { %840 = vmatmul.bf16.vlgmr.msra.gmra.mxu0 %v6086_v51  ;;  %859 = vmatmul.bf16.vlgmr.msra.gmra.mxu1 %v6088_v54  ;;  %v3977_v53 = vor.u32 %v5202_v61, %v3974_v62  ;;  %v5193_v22 = vld [vmem:[#allocation8 + $0x54] sm:$0xf0]  ;;  %v4116_v27 = vld [vmem:[#allocation8 + $0x1c0] sm:$0xf]  ;;  %v4145_v29 = vor.u32 %v5244_v19, %v4142_v20  ;;  %v5190_v24 = vld [vmem:[#allocation8 + $0x44] sm:$0xf] }
  0xc0   :  { %878 = vmatmul.bf16.vlgmr.msra.gmra.mxu2 %v6086_v51  ;;  %897 = vmatmul.bf16.vlgmr.msra.gmra.mxu3 %v6088_v54  ;;  %v5241_v28 = vld [vmem:[#allocation8 + $0x1d4] sm:$0xf0]  ;;  %v3926_v31 = vld [vmem:[#allocation8 + $0x58] sm:$0xf0]  ;;  %v5238_v32 = vld [vmem:[#allocation8 + $0x1c4] sm:$0xf] }
  0xc1   :  { %984 = vmatpush.bf16.msra.mxu0 %v4069_v60  ;;  %1003 = vmatpush.bf16.msra.mxu1 %v4261_v3  ;;  %v4164_v60 = vld [vmem:[#allocation8 + $0x220] sm:$0xf]  ;;  %v4166_v3 = vld [vmem:[#allocation8 + $0x238] sm:$0xf0]  ;;  %v3900_v2 = vld [vmem:[#allocation8 + $0x10] sm:$0xf]  ;;  %v4117_v34 = vor.u32 %v5241_v28, %v4116_v27  ;;  %v3929_v35 = vor.u32 %v5190_v24, %v3926_v31 }
  0xc2   :  { %1022 = vmatpush.bf16.msra.mxu2 %v4073_v4  ;;  %1041 = vmatpush.bf16.msra.mxu3 %v4265_v7  ;;  %v3948_v4 = vld [vmem:[#allocation8 + $0x70] sm:$0xf]  ;;  %v4165_v52 = vor.u32 %v5253_v48, %v4164_v60  ;;  %v4169_v13 = vor.u32 %v5250_v63, %v4166_v3  ;;  %v4118_v33 = vld [vmem:[#allocation8 + $0x1d8] sm:$0xf0]  ;;  %v5187_v5 = vld [vmem:[#allocation8 + $0x24] sm:$0xf0] }
  0xc3   :  { %v4140_v7 = vld [vmem:[#allocation8 + $0x1f0] sm:$0xf]  ;;  %v3949_v14 = vor.u32 %v5199_v6, %v3948_v4  ;;  %v3901_v37 = vor.u32 %v5187_v5, %v3900_v2  ;;  %v3902_v39 = vld [vmem:[#allocation8 + $0x28] sm:$0xf0]  ;;  %v5232_v40 = vld [vmem:[#allocation8 + $0x194] sm:$0xf] }
  0xc4   :  { %v4092_v44 = vld [vmem:[#allocation8 + $0x190] sm:$0xf] }
  0xc5   :  { %985 = vmatpush.bf16.msra.mxu0 %v4045_v18  ;;  %1004 = vmatpush.bf16.msra.mxu1 %v4237_v23  ;;  %v3950_v18 = vld [vmem:[#allocation8 + $0x88] sm:$0xf0]  ;;  %v4141_v23 = vor.u32 %v5247_v10, %v4140_v7 }
  0xc6   :  { %1023 = vmatpush.bf16.msra.mxu2 %v4049_v25  ;;  %1042 = vmatpush.bf16.msra.mxu3 %v4241_v30  ;;  %v3953_v25 = vor.u32 %v5196_v17, %v3950_v18  ;;  %v3925_v30 = vor.u32 %v5193_v22, %v3924_v21 }
  0xc9   :  { %986 = vmatpush.bf16.msra.mxu0 %v4021_v36  ;;  %1005 = vmatpush.bf16.msra.mxu1 %v4213_v26  ;;  %v4121_v36 = vor.u32 %v5238_v32, %v4118_v33  ;;  %v5235_v26 = vld [vmem:[#allocation8 + $0x1a4] sm:$0xf0] }
  0xca   :  { %1024 = vmatpush.bf16.msra.mxu2 %v4025_v38  ;;  %1043 = vmatpush.bf16.msra.mxu3 %v4217_v41  ;;  %v5184_v38 = vld [vmem:[#allocation8 + $0x14] sm:$0xf]  ;;  %v4094_v41 = vld [vmem:[#allocation8 + $0x1a8] sm:$0xf0]  ;;  %v4093_v8 = vor.u32 %v5235_v26, %v4092_v44 }
  0xcb   :  { %v3905_v9 = vor.u32 %v5184_v38, %v3902_v39  ;;  %v4097_v11 = vor.u32 %v5232_v40, %v4094_v41 }
  0xcd   :  { %987 = vmatpush.bf16.msra.mxu0 %v3997_v12  ;;  %1006 = vmatpush.bf16.msra.mxu1 %v4189_v57 }
  0xce   :  { %1025 = vmatpush.bf16.msra.mxu2 %v4001_v16  ;;  %1044 = vmatpush.bf16.msra.mxu3 %v4193_v58 }
  0xcf   :  { %845 = vmatmul.bf16.gmra.mxu0 %v6110_v15  ;;  %864 = vmatmul.bf16.gmra.mxu1 %v6112_v56 }
  0xd0   :  { %883 = vmatmul.bf16.gmra.mxu2 %v6110_v15  ;;  %902 = vmatmul.bf16.gmra.mxu3 %v6112_v56 }
  0xd1   :  { %988 = vmatpush.bf16.msra.mxu0 %v3973_v42  ;;  %1007 = vmatpush.bf16.msra.mxu1 %v4165_v52 }
  0xd2   :  { %1026 = vmatpush.bf16.msra.mxu2 %v3977_v53  ;;  %1045 = vmatpush.bf16.msra.mxu3 %v4169_v13 }
  0xd5   :  { %989 = vmatpush.bf16.msra.mxu0 %v3949_v14  ;;  %1008 = vmatpush.bf16.msra.mxu1 %v4141_v23 }
  0xd6   :  { %1027 = vmatpush.bf16.msra.mxu2 %v3953_v25  ;;  %1046 = vmatpush.bf16.msra.mxu3 %v4145_v29 }
  0xd9   :  { %990 = vmatpush.bf16.msra.mxu0 %v3925_v30  ;;  %1009 = vmatpush.bf16.msra.mxu1 %v4117_v34 }
  0xda   :  { %1028 = vmatpush.bf16.msra.mxu2 %v3929_v35  ;;  %1047 = vmatpush.bf16.msra.mxu3 %v4121_v36 }
  0xdd   :  { %991 = vmatpush.bf16.msra.mxu0 %v3901_v37  ;;  %1010 = vmatpush.bf16.msra.mxu1 %v4093_v8  ;;  %v6178_v8 = vld [vmem:[#allocation7] sm:$0xff] }
  0xde   :  { %1029 = vmatpush.bf16.msra.mxu2 %v3905_v9  ;;  %1048 = vmatpush.bf16.msra.mxu3 %v4097_v11  ;;  %v6180_v9 = vld [vmem:[#allocation7 + $0x8] sm:$0xff] }
  0xdf   :  { %916 = vmatmul.bf16.vlgmr.msrb.gmra.mxu0 %v6086_v51  ;;  %935 = vmatmul.bf16.vlgmr.msrb.gmra.mxu1 %v6088_v54 }
  0xe0   :  { %954 = vmatmul.bf16.vlgmr.msrb.gmra.mxu2 %v6086_v51  ;;  %973 = vmatmul.bf16.vlgmr.msrb.gmra.mxu3 %v6088_v54 }
  0xef   :  { %921 = vmatmul.bf16.gmra.mxu0 %v6110_v15  ;;  %940 = vmatmul.bf16.gmra.mxu1 %v6112_v56 }
  0xf0   :  { %959 = vmatmul.bf16.gmra.mxu2 %v6110_v15  ;;  %978 = vmatmul.bf16.gmra.mxu3 %v6112_v56 }
  0xff   :  { %992 = vmatmul.bf16.vlgmr.msra.gmra.mxu0 %v6086_v51  ;;  %1011 = vmatmul.bf16.vlgmr.msra.gmra.mxu1 %v6088_v54 }
 0x100   :  { %1030 = vmatmul.bf16.vlgmr.msra.gmra.mxu2 %v6086_v51  ;;  %1049 = vmatmul.bf16.vlgmr.msra.gmra.mxu3 %v6088_v54 }
 0x10f   :  { %997 = vmatmul.bf16.gmra.mxu0 %v6110_v15  ;;  %1016 = vmatmul.bf16.gmra.mxu1 %v6112_v56 }
 0x110   :  { %1035 = vmatmul.bf16.gmra.mxu2 %v6110_v15  ;;  %1054 = vmatmul.bf16.gmra.mxu3 %v6112_v56 }
 0x13c   :  { %v841_v12 = vpop.f32.mrf.mxu0  ;;  %v860_v0 = vpop.f32.mrf.mxu1 }
 0x13d   :  { %v6134_v43 = vadd.f32 %v860_v0, %v841_v12  ;;  %v6183_v12 = vld [vmem:[#allocation5] sm:$0xff]  ;;  %v6185_v0 = vld [vmem:[#allocation5 + $0x8] sm:$0xff] }
 0x143   :  { %v879_v45 = vpop.f32.mrf.mxu2  ;;  %v898_v1 = vpop.f32.mrf.mxu3 }
 0x144   :  { %v843_v46 = vpop.f32.mrf.mxu0  ;;  %v862_v49 = vpop.f32.mrf.mxu1  ;;  %v899_v14 = vadd.f32 %v898_v1, %v879_v45 }
 0x145   :  { %v6152_v6 = vadd.f32 %v862_v49, %v843_v46 }
 0x14b   :  { %v881_v55 = vpop.f32.mrf.mxu2  ;;  %v900_v51 = vpop.f32.mrf.mxu3 }
 0x14c   :  { %v846_v57 = vpop.f32.mrf.mxu0  ;;  %v865_v54 = vpop.f32.mrf.mxu1  ;;  %v901_v30 = vadd.f32 %v900_v51, %v881_v55 }
 0x14d   :  { %v6136_v16 = vadd.f32 %v865_v54, %v846_v57 }
 0x153   :  { %v884_v58 = vpop.f32.mrf.mxu2  ;;  %v903_v59 = vpop.f32.mrf.mxu3 }
 0x154   :  { %v6138_v47 = vadd.f32 %v903_v59, %v884_v58  ;;  %v6140_v15 = vpop.f32.mrf.mxu0  ;;  %v6142_v56 = vpop.f32.mrf.mxu1 }
 0x15b   :  { %v6144_v60 = vpop.f32.mrf.mxu2  ;;  %v6146_v42 = vpop.f32.mrf.mxu3 }
 0x15c   :  { %v917_v48 = vpop.f32.mrf.mxu0  ;;  %v936_v61 = vpop.f32.mrf.mxu1 }
 0x15d   :  { %v6148_v62 = vadd.f32 %v936_v61, %v917_v48  ;;  %v1206_v61 = vmul.f32 %v899_v14, %v6183_v12 }
 0x15f   :  { %1113 = vrot.lane.b32.xlu0 %v6148_v62, %s5861_s7 }
 0x163   :  { %v955_v63 = vpop.f32.mrf.mxu2  ;;  %v974_v3 = vpop.f32.mrf.mxu3 }
 0x164   :  { %v975_v4 = vadd.f32 %v974_v3, %v955_v63  ;;  %v919_v52 = vpop.f32.mrf.mxu0  ;;  %v938_v53 = vpop.f32.mrf.mxu1  ;;  %v1207_v63 = vmul.f32 %v901_v30, %v6185_v0 }
 0x165   :  { %v6154_v7 = vadd.f32 %v938_v53, %v919_v52  ;;  %v1111_v52 = vmul.f32 %v6148_v62, %v6183_v12  ;;  %v1101_v62 = vmul.f32 %v6134_v43, %v6183_v12 }
 0x166   :  { %1218 = vrot.lane.b32.xlu2 %v975_v4, %s5861_s7  ;;  %v1216_v1 = vmul.f32 %v975_v4, %v6183_v12 }
 0x167   :  { %1105 = vrot.lane.b32.xlu0 %v6152_v6, %s5861_s7  ;;  %1115 = vrot.lane.b32.xlu1 %v6154_v7, %s5861_s7  ;;  %v1112_v53 = vmul.f32 %v6154_v7, %v6185_v0  ;;  %v1102_v7 = vmul.f32 %v6152_v6, %v6185_v0 }
 0x16b   :  { %v957_v10 = vpop.f32.mrf.mxu2  ;;  %v976_v13 = vpop.f32.mrf.mxu3 }
 0x16c   :  { %v922_v17 = vpop.f32.mrf.mxu0  ;;  %v941_v18 = vpop.f32.mrf.mxu1  ;;  %v977_v22 = vadd.f32 %v976_v13, %v957_v10 }
 0x16d   :  { %v6161_v19 = vadd.f32 %v941_v18, %v922_v17 }
 0x16e   :  { %1208 = vrot.lane.b32.xlu2 %v899_v14, %s5861_s7  ;;  %v1217_v46 = vmul.f32 %v977_v22, %v6185_v0 }
 0x173   :  { %v960_v20 = vpop.f32.mrf.mxu2  ;;  %v979_v21 = vpop.f32.mrf.mxu3 }
 0x174   :  { %v6164_v23 = vadd.f32 %v979_v21, %v960_v20  ;;  %v6166_v25 = vpop.f32.mrf.mxu0  ;;  %v6168_v27 = vpop.f32.mrf.mxu1 }
 0x176   :  { %1220 = vrot.lane.b32.xlu2 %v977_v22, %s5861_s7 }
 0x17b   :  { %v6171_v28 = vpop.f32.mrf.mxu2  ;;  %v6173_v29 = vpop.f32.mrf.mxu3 }
 0x17c   :  { %v993_v24 = vpop.f32.mrf.mxu0  ;;  %v1012_v31 = vpop.f32.mrf.mxu1 }
 0x17d   :  { %v1013_v34 = vadd.f32 %v1012_v31, %v993_v24 }
 0x17e   :  { %1210 = vrot.lane.b32.xlu2 %v901_v30, %s5861_s7 }
 0x183   :  { %v1031_v32 = vpop.f32.mrf.mxu2  ;;  %v1050_v33 = vpop.f32.mrf.mxu3 }
 0x184   :  { %v995_v2 = vpop.f32.mrf.mxu0  ;;  %v1014_v5 = vpop.f32.mrf.mxu1  ;;  %v1051_v26 = vadd.f32 %v1050_v33, %v1031_v32 }
 0x185   :  { %v1015_v35 = vadd.f32 %v1014_v5, %v995_v2 }
 0x186   :  { %1103 = vrot.lane.b32.xlu2 %v6134_v43, %s5861_s7  ;;  %v5862_v43 = vmov -1e+09  }
 0x187   :  { %v1187_v44 = vpack.c.bf16 %v1015_v35, %v1013_v34  ;;  %v1060_v35 = vlaneseq }
 0x189   :  { %1198 = vmatpush.bf16.msrb.mxu1 %v1187_v44  ;;  %v1061_v44 = vshrl.u32 %v1060_v35, 7 }
 0x18b   :  { %v1033_v36 = vpop.f32.mrf.mxu2  ;;  %v1052_v37 = vpop.f32.mrf.mxu3 }
 0x18c   :  { %v1053_v38 = vadd.f32 %v1052_v37, %v1033_v36  ;;  %v6208_v34 = vpop.f32.mrf.mxu0  ;;  %v1064_v36 = vand.u32 127, %v1060_v35  ;;  %v4390_v35 = vld [vmem:[#allocation10 + $0x70] sm:$0xf] }
 0x18e   :  { %v1291_v39 = vpack.c.bf16 %v1053_v38, %v1051_v26  ;;  %vm1065_vm13 = vcmp.le.s32.totalorder %v1064_v36, %v1061_v44  ;;  %v1062_v38 = vadd.s32 8, %v1061_v44 }
 0x18f   :  { %v6214_v6 = vsel %vm1065_vm13, 0.0, %v5862_v43 }
 0x190   :  { %1302 = vmatpush.bf16.msrb.mxu3 %v1291_v39  ;;  %7403 = vst [vmem:[#allocation21_spill] sm:$0xff] %v6214_v6  ;;  %vm1066_vm15 = vcmp.le.s32.totalorder %v1064_v36, %v1062_v38  ;;  %v5293_v36 = vld [vmem:[#allocation10 + $0x74] sm:$0xf0]  ;;  %v4384_v38 = vld [vmem:[#allocation10 + $0x68] sm:$0xf0] }
 0x193   :  { %v6206_v5 = vpop.f32.mrf.mxu2 }
 0x194   :  { %v6212_v26 = vpop.f32.mrf.mxu0 }
 0x19b   :  { %v6210_v37 = vpop.f32.mrf.mxu2 }
 0x1c0   :  { %v1219_v40 = vpop.permute.xlu2 %1218 }
 0x1c1   :  { %v1222_v11 = vmul.f32 %v1219_v40, %v6178_v8 }
 0x1c3   :  { %v1224_v51 = vadd.f32 %v1222_v11, %v1216_v1 }
 0x1c8   :  { %v1209_v41 = vpop.permute.xlu2 %1208 }
 0x1c9   :  { %v1212_v58 = vmul.f32 %v1209_v41, %v6178_v8 }
 0x1cb   :  { %v1214_v13 = vadd.f32 %v1212_v58, %v1206_v61 }
 0x1d0   :  { %v1221_v45 = vpop.permute.xlu2 %1220 }
 0x1d1   :  { %v1223_v49 = vmul.f32 %v1221_v45, %v6180_v9  ;;  %v1114_v55 = vpop.permute.xlu0 %1113 }
 0x1d2   :  { %v1117_v59 = vmul.f32 %v1114_v55, %v6178_v8 }
 0x1d3   :  { %v1225_v57 = vadd.f32 %v1223_v49, %v1217_v46  ;;  %v6220_v46 = vsel %vm1066_vm15, 0.0, %v5862_v43  ;;  %v5290_v43 = vld [vmem:[#allocation10 + $0x64] sm:$0xf] }
 0x1d4   :  { %v1119_v18 = vadd.f32 %v1117_v59, %v1111_v52  ;;  %7404 = vst [vmem:[#allocation22_spill] sm:$0xff] %v6220_v46 }
 0x1d5   :  { %v1227_v54 = vpack.c.bf16 %v1225_v57, %v1224_v51 }
 0x1d7   :  { %1235 = vmatpush.bf16.xpose.msrb.mxu2 %v1227_v54 }
 0x1d8   :  { %v1211_v48 = vpop.permute.xlu2 %1210 }
 0x1d9   :  { %v1213_v3 = vmul.f32 %v1211_v48, %v6180_v9  ;;  %v1116_v4 = vpop.permute.xlu1 %1115  ;;  %v1106_v20 = vpop.permute.xlu0 %1105 }
 0x1da   :  { %v1118_v10 = vmul.f32 %v1116_v4, %v6180_v9  ;;  %v1108_v30 = vmul.f32 %v1106_v20, %v6180_v9 }
 0x1db   :  { %v1215_v17 = vadd.f32 %v1213_v3, %v1207_v63 }
 0x1dc   :  { %v1120_v21 = vadd.f32 %v1118_v10, %v1112_v53  ;;  %v1110_v32 = vadd.f32 %v1108_v30, %v1102_v7 }
 0x1dd   :  { %v1226_v22 = vpack.c.bf16 %v1215_v17, %v1214_v13 }
 0x1de   :  { %v1122_v14 = vpack.c.bf16 %v1120_v21, %v1119_v18 }
 0x1df   :  { %1236 = vmatmul.bf16.vlgmr.msrb.gmra.mxu2 %v1226_v22 }
 0x1e0   :  { %v1104_v24 = vpop.permute.xlu2 %1103  ;;  %1130 = vmatpush.bf16.xpose.msrb.mxu0 %v1122_v14 }
 0x1e1   :  { %v1107_v31 = vmul.f32 %v1104_v24, %v6178_v8 }
 0x1e3   :  { %v1109_v33 = vadd.f32 %v1107_v31, %v1101_v62  ;;  %v6244_v31 = vadd.f32 %v6173_v29, %v6171_v28  ;;  %v6260_v28 = vadd.f32 %v6142_v56, %v6140_v15  ;;  %v6268_v29 = vadd.f32 %v6146_v42, %v6144_v60  ;;  %v5292_v15 = vld [vmem:[#allocation10 + $0x74] sm:$0xf]  ;;  %v5306_v60 = vld [vmem:[#allocation10 + $0xe4] sm:$0xf]  ;;  %v4320_v42 = vld [vmem:[#allocation10 + $0xe8] sm:$0xf0] }
 0x1e4   :  { %v6280_v44 = vor.u32 %v5306_v60, %v4320_v42  ;;  %v5284_v60 = vld [vmem:[#allocation10 + $0x34] sm:$0xf]  ;;  %v4360_v42 = vld [vmem:[#allocation10 + $0x38] sm:$0xf0] }
 0x1e5   :  { %v1121_v2 = vpack.c.bf16 %v1110_v32, %v1109_v33  ;;  %v6254_v32 = vadd.f32 %v6168_v27, %v6166_v25  ;;  %v5308_v25 = vld [vmem:[#allocation10 + $0xf4] sm:$0xf]  ;;  %v4328_v27 = vld [vmem:[#allocation10 + $0xf8] sm:$0xf0] }
 0x1e6   :  { %v6274_v56 = vor.u32 %v5308_v25, %v4328_v27  ;;  %v4392_v33 = vld [vmem:[#allocation10 + $0x78] sm:$0xf0]  ;;  %v4366_v25 = vld [vmem:[#allocation10 + $0x40] sm:$0xf]  ;;  %v5287_v27 = vld [vmem:[#allocation10 + $0x44] sm:$0xf0] }
 0x1e7   :  { %1131 = vmatmul.bf16.vlgmr.msrb.gmra.mxu0 %v1121_v2  ;;  %v6276_v2 = vor.u32 %v5292_v15, %v4392_v33  ;;  %v6314_v33 = vor.u32 %v5287_v27, %v4366_v25  ;;  %v5280_v25 = vld [vmem:[#allocation10 + $0x14] sm:$0xf]  ;;  %v4344_v27 = vld [vmem:[#allocation10 + $0x18] sm:$0xf0] }
 0x1e8   :  { %1404 = vmatpush.bf16.msra.mxu1 %v6274_v56 }
 0x1e9   :  { %1512 = vmatpush.bf16.msra.mxu3 %v6276_v2 }
 0x1ec   :  { %1405 = vmatpush.bf16.msra.mxu1 %v6280_v44 }
 0x262   :  { %v1237_v39 = vpop.f32.mrf.mxu2 }
 0x263   :  { %v1238_v40 = vadd.f32 %v1237_v39, %v6214_v6  ;;  %v6282_v39 = vor.u32 %v5293_v36, %v4390_v35  ;;  %v6317_v35 = vor.u32 %v5284_v60, %v4360_v42  ;;  %v4310_v36 = vld [vmem:[#allocation10 + $0xd0] sm:$0xf]  ;;  %v6341_v60 = vor.u32 %v5280_v25, %v4344_v27  ;;  %v5299_v25 = vld [vmem:[#allocation10 + $0xa4] sm:$0xf0]  ;;  %v4334_v27 = vld [vmem:[#allocation10] sm:$0xf] }
 0x264   :  { %v1132_v41 = vpop.f32.mrf.mxu0  ;;  %v4294_v42 = vld [vmem:[#allocation10 + $0xb0] sm:$0xf] }
 0x265   :  { %v1133_v11 = vadd.f32 %v1132_v41, %v6214_v6  ;;  %v1242_v45 = vsel %vm1137_vm14, %v1238_v40, -inf  ;;  %1498 = vmatpush.bf16.msra.mxu2 %v6282_v39  ;;  %v5304_v41 = vld [vmem:[#allocation10 + $0xd4] sm:$0xf]  ;;  %7408 = vst [vmem:[#allocation26_spill] sm:$0xff] %v6317_v35 }
 0x266   :  { %1243 = vmax.xlane.f32.xlu0 %v1242_v45  ;;  %v4382_v45 = vld [vmem:[#allocation10 + $0x60] sm:$0xf]  ;;  %7416 = vst [vmem:[#allocation34_spill] sm:$0xff] %v6341_v60 }
 0x267   :  { %v1138_v1 = vsel %vm1137_vm14, %v1133_v11, -inf }
 0x268   :  { %1139 = vmax.xlane.f32.xlu2 %v1138_v1 }
 0x26a   :  { %v1239_v49 = vpop.f32.mrf.mxu2 }
 0x26b   :  { %v1240_v55 = vadd.f32 %v1239_v49, %v6220_v46  ;;  %v5291_v49 = vld [vmem:[#allocation10 + $0x64] sm:$0xf0] }
 0x26c   :  { %v1134_v51 = vpop.f32.mrf.mxu0 }
 0x26d   :  { %v1135_v57 = vadd.f32 %v1134_v51, %v6220_v46  ;;  %v1245_v58 = vsel %vm1137_vm14, %v1240_v55, -inf  ;;  %v4376_v51 = vld [vmem:[#allocation10 + $0x58] sm:$0xf0] }
 0x26f   :  { %v1141_v54 = vsel %vm1137_vm14, %v1135_v57, -inf }
 0x270   :  { %1142 = vmax.xlane.f32.xlu1 %v1141_v54  ;;  %1246 = vmax.xlane.f32.xlu2 %v1245_v58  ;;  %v4326_v58 = vld [vmem:[#allocation10 + $0xf0] sm:$0xf] }
 0x2d9   :  { %v1244_v59 = vpop.xlane.xlu0 %1243 }
 0x2da   :  { %v1248_v48 = vsub.f32 %v1238_v40, %v1244_v59  ;;  %v6284_v40 = vor.u32 %v5290_v43, %v4384_v38  ;;  %v5309_v59 = vld [vmem:[#allocation10 + $0xf4] sm:$0xf0]  ;;  %v5298_v38 = vld [vmem:[#allocation10 + $0xa4] sm:$0xf] }
 0x2db   :  { %v1140_v61 = vpop.xlane.xlu2 %1139  ;;  %v5305_v43 = vld [vmem:[#allocation10 + $0xd4] sm:$0xf0] }
 0x2dc   :  { %v1250_v63 = vmul.f32 1.442695, %v1248_v48  ;;  %v1144_v3 = vsub.f32 %v1133_v11, %v1140_v61  ;;  %1513 = vmatpush.bf16.msra.mxu3 %v6284_v40  ;;  %v4312_v11 = vld [vmem:[#allocation10 + $0xd8] sm:$0xf0]  ;;  %v5302_v48 = vld [vmem:[#allocation10 + $0xc4] sm:$0xf]  ;;  %v6298_v61 = vor.u32 %v5309_v59, %v4326_v58 }
 0x2dd   :  { %v6289_v1 = vor.u32 %v5304_v41, %v4312_v11  ;;  %v6322_v41 = vor.u32 %v5305_v43, %v4310_v36  ;;  %v4288_v11 = vld [vmem:[#allocation10 + $0xa8] sm:$0xf0]  ;;  %v5282_v58 = vld [vmem:[#allocation10 + $0x24] sm:$0xf]  ;;  %v5301_v36 = vld [vmem:[#allocation10 + $0xb4] sm:$0xf0] }
 0x2de   :  { %5531 = vpow2.f32 %v1250_v63  ;;  %v1146_v4 = vmul.f32 1.442695, %v1144_v3  ;;  %v4304_v63 = vld [vmem:[#allocation10 + $0xc8] sm:$0xf0]  ;;  %v4374_v3 = vld [vmem:[#allocation10 + $0x50] sm:$0xf]  ;;  %1390 = vmatpush.bf16.msra.mxu0 %v6298_v61 }
 0x2df   :  { %7405 = vst [vmem:[#allocation23_spill] sm:$0xff] %v6289_v1  ;;  %1406 = vmatpush.bf16.msra.mxu1 %v6289_v1  ;;  %v4352_v59 = vld [vmem:[#allocation10 + $0x28] sm:$0xf0]  ;;  %v5294_v43 = vld [vmem:[#allocation10 + $0x84] sm:$0xf] }
 0x2e0   :  { %5533 = vpow2.f32 %v1146_v4  ;;  %v5289_v4 = vld [vmem:[#allocation10 + $0x54] sm:$0xf0]  ;;  %7409 = vst [vmem:[#allocation27_spill] sm:$0xff] %v6322_v41 }
 0x2e3   :  { %v1143_v52 = vpop.xlane.xlu1 %1142  ;;  %v1247_v53 = vpop.xlane.xlu2 %1246 }
 0x2e4   :  { %v6226_v10 = vpop.eup %5531  ;;  %v1145_v13 = vsub.f32 %v1135_v57, %v1143_v52  ;;  %v1249_v17 = vsub.f32 %v1240_v55, %v1247_v53  ;;  %v5288_v55 = vld [vmem:[#allocation10 + $0x54] sm:$0xf]  ;;  %v6291_v57 = vor.u32 %v5291_v49, %v4382_v45  ;;  %v6300_v52 = vor.u32 %v5302_v48, %v4304_v63  ;;  %v4358_v45 = vld [vmem:[#allocation10 + $0x30] sm:$0xf]  ;;  %v5285_v49 = vld [vmem:[#allocation10 + $0x34] sm:$0xf0] }
 0x2e5   :  { %v1254_v18 = vsel %vm1137_vm14, %v6226_v10, 0.0  ;;  %v6293_v54 = vor.u32 %v5288_v55, %v4376_v51  ;;  %v6302_v53 = vor.u32 %v5289_v4, %v4374_v3  ;;  %v6324_v55 = vor.u32 %v5298_v38, %v4288_v11  ;;  %v4302_v63 = vld [vmem:[#allocation10 + $0xc0] sm:$0xf]  ;;  %v5303_v3 = vld [vmem:[#allocation10 + $0xc4] sm:$0xf0] }
 0x2e6   :  { %v6230_v20 = vpop.eup %5533  ;;  %v1148_v21 = vmul.f32 1.442695, %v1145_v13  ;;  %v1252_v22 = vmul.f32 1.442695, %v1249_v17  ;;  %1255 = vadd.xlane.f32.xlu2 %v1254_v18  ;;  %1499 = vmatpush.bf16.msra.mxu2 %v6291_v57  ;;  %7406 = vst [vmem:[#allocation24_spill] sm:$0xff] %v6300_v52  ;;  %v6326_v51 = vor.u32 %v5285_v49, %v4358_v45  ;;  %v6329_v48 = vor.u32 %v5282_v58, %v4352_v59 }
 0x2e7   :  { %v1150_v14 = vsel %vm1137_vm14, %v6230_v20, 0.0  ;;  %1514 = vmatpush.bf16.msra.mxu3 %v6293_v54  ;;  %v5286_v13 = vld [vmem:[#allocation10 + $0x44] sm:$0xf]  ;;  %v4368_v17 = vld [vmem:[#allocation10 + $0x48] sm:$0xf0]  ;;  %1407 = vmatpush.bf16.msra.mxu1 %v6300_v52  ;;  %7410 = vst [vmem:[#allocation28_spill] sm:$0xff] %v6324_v55  ;;  %v6346_v38 = vor.u32 %v5301_v36, %v4294_v42  ;;  %v6363_v36 = vpop.f32.mrf.mxu1 }
 0x2e8   :  { %5535 = vpow2.f32 %v1148_v21  ;;  %1151 = vadd.xlane.f32.xlu1 %v1150_v14  ;;  %v6305_v18 = vor.u32 %v5286_v13, %v4368_v17  ;;  %v4318_v21 = vld [vmem:[#allocation10 + $0xe0] sm:$0xf]  ;;  %v5300_v14 = vld [vmem:[#allocation10 + $0xb4] sm:$0xf]  ;;  %7411 = vst [vmem:[#allocation29_spill] sm:$0xff] %v6326_v51  ;;  %v6334_v13 = vor.u32 %v5303_v3, %v4302_v63 }
 0x2e9   :  { %5537 = vpow2.f32 %v1252_v22  ;;  %v5307_v22 = vld [vmem:[#allocation10 + $0xe4] sm:$0xf0]  ;;  %7412 = vst [vmem:[#allocation30_spill] sm:$0xff] %v6329_v48  ;;  %v5296_v4 = vld [vmem:[#allocation10 + $0x94] sm:$0xf] }
 0x2ea   :  { %1500 = vmatpush.bf16.msra.mxu2 %v6302_v53  ;;  %7413 = vst [vmem:[#allocation31_spill] sm:$0xff] %v6334_v13  ;;  %v4280_v17 = vld [vmem:[#allocation10 + $0x98] sm:$0xf0]  ;;  %v4272_v11 = vld [vmem:[#allocation10 + $0x88] sm:$0xf0] }
 0x2eb   :  { %1515 = vmatpush.bf16.msra.mxu3 %v6305_v18  ;;  %7417 = vst [vmem:[#allocation35_spill] sm:$0xff] %v6346_v38  ;;  %v4342_v45 = vld [vmem:[#allocation10 + $0x10] sm:$0xf]  ;;  %v5281_v49 = vld [vmem:[#allocation10 + $0x14] sm:$0xf0]  ;;  %v6350_v59 = vor.u32 %v5294_v43, %v4272_v11 }
 0x2ec   :  { %v6352_v63 = vor.u32 %v5281_v49, %v4342_v45  ;;  %v5278_v3 = vld [vmem:[#allocation10 + $0x4] sm:$0xf]  ;;  %v5279_v42 = vld [vmem:[#allocation10 + $0x4] sm:$0xf0]  ;;  %v4278_v45 = vld [vmem:[#allocation10 + $0x90] sm:$0xf] }
 0x2ed   :  { %7418 = vst [vmem:[#allocation36_spill] sm:$0xff] %v6350_v59  ;;  %v6368_v11 = vor.u32 %v5279_v42, %v4334_v27  ;;  %v5297_v49 = vld [vmem:[#allocation10 + $0x94] sm:$0xf0]  ;;  %v4270_v42 = vld [vmem:[#allocation10 + $0x80] sm:$0xf] }
 0x2ee   :  { %v6234_v30 = vpop.eup %5535  ;;  %1501 = vmatpush.bf16.msra.mxu2 %v6314_v33  ;;  %7419 = vst [vmem:[#allocation37_spill] sm:$0xff] %v6352_v63 }
 0x2ef   :  { %v6236_v24 = vpop.eup %5537  ;;  %v1153_v62 = vsel %vm1137_vm14, %v6234_v30, 0.0  ;;  %1516 = vmatpush.bf16.msra.mxu3 %v6317_v35  ;;  %7422 = vst [vmem:[#allocation40_spill] sm:$0xff] %v6368_v11 }
 0x2f0   :  { %1154 = vadd.xlane.f32.xlu0 %v1153_v62  ;;  %v1257_v7 = vsel %vm1137_vm14, %v6236_v24, 0.0  ;;  %v6310_v62 = vor.u32 %v5307_v22, %v4318_v21  ;;  %v4350_v21 = vld [vmem:[#allocation10 + $0x20] sm:$0xf]  ;;  %v5283_v22 = vld [vmem:[#allocation10 + $0x24] sm:$0xf0] }
 0x2f1   :  { %1258 = vadd.xlane.f32.xlu1 %v1257_v7  ;;  %v4296_v7 = vld [vmem:[#allocation10 + $0xb8] sm:$0xf0] }
 0x2f2   :  { %v6312_v15 = vor.u32 %v5300_v14, %v4296_v7  ;;  %1391 = vmatpush.bf16.msra.mxu0 %v6310_v62  ;;  %1502 = vmatpush.bf16.msra.mxu2 %v6326_v51  ;;  %v6336_v14 = vor.u32 %v5296_v4, %v4280_v17  ;;  %v6338_v7 = vor.u32 %v5283_v22, %v4350_v21  ;;  %v4336_v4 = vld [vmem:[#allocation10 + $0x8] sm:$0xf0]  ;;  %v4286_v22 = vld [vmem:[#allocation10 + $0xa0] sm:$0xf] }
 0x2f3   :  { %1517 = vmatpush.bf16.msra.mxu3 %v6329_v48  ;;  %v6360_v21 = vor.u32 %v5278_v3, %v4336_v4  ;;  %v6366_v43 = vor.u32 %v5299_v25, %v4286_v22  ;;  %v6374_v4 = vor.u32 %v5297_v49, %v4278_v45  ;;  %v1019_v45 = vpop.f32.mrf.mxu1 }
 0x2f4   :  { %7407 = vst [vmem:[#allocation25_spill] sm:$0xff] %v6312_v15  ;;  %1408 = vmatpush.bf16.msra.mxu1 %v6312_v15  ;;  %v1640_v15 = vmul.f32 %v6164_v23, %v6183_v12 }
 0x2f5   :  { %7414 = vst [vmem:[#allocation32_spill] sm:$0xff] %v6336_v14 }
 0x2f6   :  { %1392 = vmatpush.bf16.msra.mxu0 %v6322_v41  ;;  %7415 = vst [vmem:[#allocation33_spill] sm:$0xff] %v6338_v7  ;;  %1503 = vmatpush.bf16.msra.mxu2 %v6338_v7 }
 0x2f7   :  { %1518 = vmatpush.bf16.msra.mxu3 %v6341_v60  ;;  %7420 = vst [vmem:[#allocation38_spill] sm:$0xff] %v6360_v21 }
 0x2f8   :  { %1409 = vmatpush.bf16.msra.mxu1 %v6324_v55  ;;  %7421 = vst [vmem:[#allocation39_spill] sm:$0xff] %v6366_v43 }
 0x2f9   :  { %7423 = vst [vmem:[#allocation41_spill] sm:$0xff] %v6374_v4 }
 0x2fa   :  { %1393 = vmatpush.bf16.msra.mxu0 %v6334_v13  ;;  %1504 = vmatpush.bf16.msra.mxu2 %v6352_v63 }
 0x2fb   :  { %1519 = vmatpush.bf16.msra.mxu3 %v6360_v21  ;;  %v6380_v21 = vpop.f32.mrf.mxu3 }
 0x2fc   :  { %1410 = vmatpush.bf16.msra.mxu1 %v6336_v14 }
 0x2fe   :  { %1644 = vrot.lane.b32.xlu2 %v6244_v31, %s5861_s7  ;;  %1394 = vmatpush.bf16.msra.mxu0 %v6346_v38 }
 0x2ff   :  { %1505 = vmatpush.bf16.msra.mxu2 %v6368_v11 }
 0x300   :  { %1411 = vmatpush.bf16.msra.mxu1 %v6350_v59  ;;  %v5295_v59 = vld [vmem:[#allocation10 + $0x84] sm:$0xf0] }
 0x301   :  { %v6382_v11 = vor.u32 %v5295_v59, %v4270_v42 }
 0x302   :  { %1395 = vmatpush.bf16.msra.mxu0 %v6366_v43 }
 0x303   :  { %7424 = vst [vmem:[#allocation42_spill] sm:$0xff] %v6382_v11 }
 0x304   :  { %1642 = vrot.lane.b32.xlu0 %v6164_v23, %s5861_s7 }
 0x306   :  { %1632 = vrot.lane.b32.xlu2 %v6138_v47, %s5861_s7  ;;  %1396 = vmatpush.bf16.msra.mxu0 %v6374_v4 }
 0x30a   :  { %1538 = vrot.lane.b32.xlu1 %v6161_v19, %s5861_s7  ;;  %1397 = vmatpush.bf16.msra.mxu0 %v6382_v11 }
 0x30c   :  { %1540 = vrot.lane.b32.xlu0 %v6254_v32, %s5861_s7 }
 0x30e   :  { %1530 = vrot.lane.b32.xlu2 %v6260_v28, %s5861_s7 }
 0x312   :  { %1528 = vrot.lane.b32.xlu1 %v6136_v16, %s5861_s7 }
 0x314   :  { %1634 = vrot.lane.b32.xlu0 %v6268_v29, %s5861_s7 }
 0x359   :  { %v6348_v58 = vpop.xlane.xlu2 %1255 }
 0x35a   :  { %5539 = vrcp.f32 %v6348_v58  ;;  %v1269_v43 = vand.u32 2147483647, %v6348_v58  ;;  %vm1265_vm0 = vweird.f32 %v6348_v58 }
 0x35b   :  { %v6356_v17 = vpop.xlane.xlu1 %1151 }
 0x35c   :  { %5541 = vrcp.f32 %v6356_v17  ;;  %v1167_v60 = vand.u32 2147483648, %v6356_v17  ;;  %vm6395_vm3 = vcmp.eq.f32.partialorder %v1269_v43, 8.507059e+37  ;;  %vm1161_vm4 = vweird.f32 %v6356_v17 }
 0x360   :  { %v6372_v3 = vpop.eup %5539 }
 0x361   :  { %v1261_v50 = vmul.f32 %v6372_v3, %v6348_v58  ;;  %vm1266_vm2 = vweird.f32 %v6372_v3  ;;  %v1645_v42 = vpop.permute.xlu2 %1644 }
 0x362   :  { %v5542_v46 = vpop.eup %5541  ;;  %vm6407_vm6 = vmor %vm1265_vm0, %vm1266_vm2 }
 0x363   :  { %v1157_v6 = vmul.f32 %v5542_v46, %v6356_v17  ;;  %v1155_v22 = vpop.xlane.xlu0 %1154  ;;  %v1262_v25 = vsub.f32 1.0, %v1261_v50  ;;  %v6388_v50 = vadd.f32 %v1019_v45, %v6212_v26  ;;  %vm1162_vm1 = vweird.f32 %v5542_v46 }
 0x364   :  { %5543 = vrcp.f32 %v1155_v22  ;;  %v1259_v27 = vpop.xlane.xlu1 %1258  ;;  %v1165_v26 = vand.u32 2147483647, %v6356_v17  ;;  %vm6401_vm5 = vmor %vm1161_vm4, %vm1162_vm1  ;;  %v1180_v38 = vand.u32 2147483647, %v1155_v22  ;;  %v1182_v48 = vand.u32 2147483648, %v1155_v22 }
 0x365   :  { %v1158_v14 = vsub.f32 1.0, %v1157_v6  ;;  %5545 = vrcp.f32 %v1259_v27  ;;  %v1263_v55 = vmul.f32 %v6372_v3, %v1262_v25  ;;  %v1271_v25 = vand.u32 2147483648, %v6348_v58 }
 0x366   :  { %v1286_v17 = vand.u32 2147483648, %v1259_v27  ;;  %v1284_v35 = vand.u32 2147483647, %v1259_v27  ;;  %vm1166_vm9 = vcmp.eq.f32.partialorder %v1165_v26, 8.507059e+37  ;;  %vm1176_vm10 = vweird.f32 %v1155_v22 }
 0x367   :  { %v1159_v49 = vmul.f32 %v5542_v46, %v1158_v14  ;;  %v1264_v59 = vadd.f32 %v6372_v3, %v1263_v55  ;;  %v1168_v55 = vor.u32 1.1754944e-38, %v1167_v60  ;;  %v1272_v51 = vor.u32 1.1754944e-38, %v1271_v25 }
 0x368   :  { %v1183_v41 = vor.u32 1.1754944e-38, %v1182_v48  ;;  %vm1280_vm12 = vweird.f32 %v1259_v27  ;;  %vm1181_vm13 = vcmp.eq.f32.partialorder %v1180_v38, 8.507059e+37  ;;  %vm1285_vm0 = vcmp.eq.f32.partialorder %v1284_v35, 8.507059e+37 }
 0x369   :  { %v1160_v63 = vadd.f32 %v5542_v46, %v1159_v49 }
 0x36a   :  { %v5544_v4 = vpop.eup %5543 }
 0x36b   :  { %v5546_v6 = vpop.eup %5545  ;;  %v1172_v14 = vmul.f32 %v5544_v4, %v1155_v22  ;;  %v1164_v52 = vsel %vm6401_vm5, %v5542_v46, %v1160_v63  ;;  %vm1177_vm7 = vweird.f32 %v5544_v4 }
 0x36c   :  { %v1276_v11 = vmul.f32 %v5546_v6, %v1259_v27  ;;  %vm1281_vm8 = vweird.f32 %v5546_v6  ;;  %v1169_v1 = vsel %vm1166_vm9, %v1168_v55, %v1164_v52  ;;  %vm1178_vm11 = vmor %vm1176_vm10, %vm1177_vm7  ;;  %v1647_v52 = vmul.f32 %v1645_v42, %v6180_v9 }
 0x36d   :  { %v1173_v45 = vsub.f32 1.0, %v1172_v14  ;;  %v1268_v14 = vsel %vm6407_vm6, %v6372_v3, %v1264_v59  ;;  %vm1282_vm15 = vmor %vm1280_vm12, %vm1281_vm8 }
 0x36e   :  { %v1277_v7 = vsub.f32 1.0, %v1276_v11  ;;  %v1057_v11 = vpop.f32.mrf.mxu3  ;;  %v1273_v46 = vsel %vm6395_vm3, %v1272_v51, %v1268_v14  ;;  %v1018_v51 = vadd.f32 %v6363_v36, %v6208_v34 }
 0x36f   :  { %v1174_v13 = vmul.f32 %v5544_v4, %v1173_v45  ;;  %v1058_v3 = vadd.f32 %v1057_v11, %v6210_v37  ;;  %v1274_v38 = vmul.f32 %v6226_v10, %v1273_v46  ;;  %v1527_v11 = vmul.f32 %v6260_v28, %v6185_v0 }
 0x370   :  { %v1278_v60 = vmul.f32 %v5546_v6, %v1277_v7  ;;  %v1287_v7 = vor.u32 1.1754944e-38, %v1286_v17  ;;  %v1611_v23 = vpack.c.bf16 %v6388_v50, %v1018_v51  ;;  %v1537_v50 = vmul.f32 %v6254_v32, %v6185_v0  ;;  %v7448_v51 = vld [vmem:[#allocation32_spill] sm:$0xff] }
 0x371   :  { %v1175_v58 = vadd.f32 %v5544_v4, %v1174_v13  ;;  %v1170_v13 = vmul.f32 %v6230_v20, %v1169_v1  ;;  %v1641_v20 = vmul.f32 %v6244_v31, %v6185_v0  ;;  %v1056_v1 = vadd.f32 %v6380_v21, %v6206_v5 }
 0x372   :  { %v1279_v49 = vadd.f32 %v5546_v6, %v1278_v60  ;;  %v1536_v21 = vmul.f32 %v6161_v19, %v6183_v12  ;;  %v1526_v60 = vmul.f32 %v6136_v16, %v6183_v12  ;;  %v1630_v32 = vmul.f32 %v6138_v47, %v6183_v12 }
 0x373   :  { %v1179_v63 = vsel %vm1178_vm11, %v5544_v4, %v1175_v58  ;;  %v1649_v34 = vadd.f32 %v1647_v52, %v1641_v20  ;;  %v1631_v46 = vmul.f32 %v6268_v29, %v6185_v0  ;;  %v7432_v0 = vld [vmem:[#allocation23_spill] sm:$0xff]  ;;  %v7433_v29 = vld [vmem:[#allocation29_spill] sm:$0xff] }
 0x374   :  { %v1184_v59 = vsel %vm1181_vm13, %v1183_v41, %v1179_v63  ;;  %v1283_v25 = vsel %vm1282_vm15, %v5546_v6, %v1279_v49  ;;  %v1633_v41 = vpop.permute.xlu2 %1632  ;;  %v1715_v6 = vpack.c.bf16 %v1058_v3, %v1056_v1 }
 0x375   :  { %v1185_v48 = vmul.f32 %v6234_v30, %v1184_v59  ;;  %v1288_v22 = vsel %vm1285_vm0, %v1287_v7, %v1283_v25  ;;  %v1636_v19 = vmul.f32 %v1633_v41, %v6178_v8 }
 0x376   :  { %v1289_v37 = vmul.f32 %v6236_v24, %v1288_v22  ;;  %v1643_v4 = vpop.permute.xlu0 %1642  ;;  %v7446_v22 = vld [vmem:[#allocation38_spill] sm:$0xff] }
 0x377   :  { %v1646_v30 = vmul.f32 %v1643_v4, %v6178_v8  ;;  %v1186_v35 = vpack.c.bf16 %v1185_v48, %v1170_v13  ;;  %v1638_v16 = vadd.f32 %v1636_v19, %v1630_v32 }
 0x378   :  { %v1290_v27 = vpack.c.bf16 %v1289_v37, %v1274_v38  ;;  %v7449_v38 = vld [vmem:[#allocation42_spill] sm:$0xff]  ;;  %v7450_v37 = vld [vmem:[#allocation36_spill] sm:$0xff] }
 0x379   :  { %v1648_v36 = vadd.f32 %v1646_v30, %v1640_v15  ;;  %4266 = vmatmul.msk.bf16.vlgmr.msrb.gmra.mxu1 %vm1137_vm14, %v1186_v35  ;;  %v7447_v15 = vld [vmem:[#allocation41_spill] sm:$0xff] }
 0x37a   :  { %4267 = vmatmul.msk.bf16.vlgmr.msrb.gmra.mxu3 %vm1137_vm14, %v1290_v27  ;;  %1622 = vmatpush.bf16.msrb.mxu1 %v1611_v23  ;;  %v7451_v27 = vld [vmem:[#allocation21_spill] sm:$0xff] }
 0x37b   :  { %v1651_v10 = vpack.c.bf16 %v1649_v34, %v1648_v36  ;;  %1726 = vmatpush.bf16.msrb.mxu3 %v1715_v6 }
 0x37c   :  { %v1539_v24 = vpop.permute.xlu1 %1538  ;;  %v1531_v26 = vpop.permute.xlu2 %1530 }
 0x37d   :  { %v1542_v31 = vmul.f32 %v1539_v24, %v6178_v8  ;;  %1659 = vmatpush.bf16.xpose.msrb.mxu2 %v1651_v10  ;;  %v1533_v43 = vmul.f32 %v1531_v26, %v6180_v9 }
 0x37e   :  { %v1541_v5 = vpop.permute.xlu0 %1540 }
 0x37f   :  { %v1543_v42 = vmul.f32 %v1541_v5, %v6180_v9  ;;  %v1544_v45 = vadd.f32 %v1542_v31, %v1536_v21  ;;  %v1535_v63 = vadd.f32 %v1533_v43, %v1527_v11  ;;  %v7452_v5 = vld [vmem:[#allocation22_spill] sm:$0xff] }
 0x381   :  { %v1545_v55 = vadd.f32 %v1543_v42, %v1537_v50 }
 0x383   :  { %v1547_v17 = vpack.c.bf16 %v1545_v55, %v1544_v45 }
 0x384   :  { %v1529_v14 = vpop.permute.xlu1 %1528 }
 0x385   :  { %v1532_v58 = vmul.f32 %v1529_v14, %v6178_v8  ;;  %1555 = vmatpush.bf16.xpose.msrb.mxu0 %v1547_v17 }
 0x386   :  { %v1635_v49 = vpop.permute.xlu0 %1634 }
 0x387   :  { %v1534_v7 = vadd.f32 %v1532_v58, %v1526_v60  ;;  %v1637_v3 = vmul.f32 %v1635_v49, %v6180_v9  ;;  %v7431_v9 = vld [vmem:[#allocation27_spill] sm:$0xff] }
 0x389   :  { %v1546_v59 = vpack.c.bf16 %v1535_v63, %v1534_v7  ;;  %v1639_v25 = vadd.f32 %v1637_v3, %v1631_v46 }
 0x38b   :  { %v1650_v28 = vpack.c.bf16 %v1639_v25, %v1638_v16  ;;  %v5635_v25 = vld [vmem:[#allocation2 + $0x10] sm:$0xff] }
 0x3f6   :  { %v1200_v13 = vpop.f32.mrf.mxu1 }
 0x3fd   :  { %v1304_v52 = vpop.f32.mrf.mxu3 }
 0x3fe   :  { %v1202_v48 = vpop.f32.mrf.mxu1 }
 0x3ff   :  { %v1205_v8 = vpack.c.bf16 %v1202_v48, %v1200_v13  ;;  %v5636_v13 = vld [vmem:[#allocation2 + $0x18] sm:$0xff] }
 0x401   :  { %1506 = vmatmul.bf16.vlgmr.msra.gmra.mxu2 %v1205_v8  ;;  %1520 = vmatmul.bf16.vlgmr.msra.gmra.mxu3 %v1205_v8 }
 0x402   :  { %1762 = vmatpush.bf16.msra.mxu2 %v6282_v39  ;;  %1776 = vmatpush.bf16.msra.mxu3 %v6276_v2  ;;  %v7435_v2 = vld [vmem:[#allocation31_spill] sm:$0xff]  ;;  %v7436_v39 = vld [vmem:[#allocation24_spill] sm:$0xff] }
 0x405   :  { %v1306_v47 = vpop.f32.mrf.mxu3 }
 0x406   :  { %v1309_v12 = vpack.c.bf16 %v1306_v47, %v1304_v52  ;;  %1763 = vmatpush.bf16.msra.mxu2 %v6291_v57  ;;  %1777 = vmatpush.bf16.msra.mxu3 %v6284_v40  ;;  %v7437_v40 = vld [vmem:[#allocation33_spill] sm:$0xff]  ;;  %v7439_v57 = vld [vmem:[#allocation35_spill] sm:$0xff] }
 0x408   :  { %1398 = vmatmul.bf16.vlgmr.msra.gmra.mxu0 %v1309_v12  ;;  %1412 = vmatmul.bf16.vlgmr.msra.gmra.mxu1 %v1309_v12 }
 0x409   :  { %1734 = vmatpush.bf16.msra.mxu0 %v6298_v61  ;;  %1748 = vmatpush.bf16.msra.mxu1 %v6274_v56  ;;  %v7434_v56 = vld [vmem:[#allocation26_spill] sm:$0xff]  ;;  %v7441_v61 = vld [vmem:[#allocation37_spill] sm:$0xff] }
 0x40a   :  { %1764 = vmatpush.bf16.msra.mxu2 %v6302_v53  ;;  %1778 = vmatpush.bf16.msra.mxu3 %v6293_v54  ;;  %v7440_v54 = vld [vmem:[#allocation25_spill] sm:$0xff]  ;;  %v7442_v53 = vld [vmem:[#allocation34_spill] sm:$0xff] }
 0x40d   :  { %1735 = vmatpush.bf16.msra.mxu0 %v6310_v62  ;;  %1749 = vmatpush.bf16.msra.mxu1 %v6280_v44  ;;  %v7438_v44 = vld [vmem:[#allocation30_spill] sm:$0xff]  ;;  %v7444_v62 = vld [vmem:[#allocation28_spill] sm:$0xff] }
 0x40e   :  { %1765 = vmatpush.bf16.msra.mxu2 %v6314_v33  ;;  %1779 = vmatpush.bf16.msra.mxu3 %v6305_v18  ;;  %v7443_v18 = vld [vmem:[#allocation39_spill] sm:$0xff]  ;;  %v7445_v33 = vld [vmem:[#allocation40_spill] sm:$0xff] }
 0x411   :  { %1660 = vmatmul.bf16.vlgmr.msrb.gmra.mxu2 %v1650_v28  ;;  %1736 = vmatpush.bf16.msra.mxu0 %v7431_v9 }
 0x412   :  { %1750 = vmatpush.bf16.msra.mxu1 %v7432_v0  ;;  %1766 = vmatpush.bf16.msra.mxu2 %v7433_v29 }
 0x413   :  { %1780 = vmatpush.bf16.msra.mxu3 %v7434_v56 }
 0x415   :  { %1737 = vmatpush.bf16.msra.mxu0 %v7435_v2 }
 0x416   :  { %1751 = vmatpush.bf16.msra.mxu1 %v7436_v39  ;;  %1767 = vmatpush.bf16.msra.mxu2 %v7437_v40  ;;  %v5637_v40 = vld [vmem:[#allocation2] sm:$0xff] }
 0x417   :  { %1781 = vmatpush.bf16.msra.mxu3 %v7438_v44 }
 0x418   :  { %1556 = vmatmul.bf16.vlgmr.msrb.gmra.mxu0 %v1546_v59 }
 0x419   :  { %1738 = vmatpush.bf16.msra.mxu0 %v7439_v57  ;;  %v5638_v57 = vld [vmem:[#allocation2 + $0x8] sm:$0xff] }
 0x41a   :  { %1752 = vmatpush.bf16.msra.mxu1 %v7440_v54  ;;  %1768 = vmatpush.bf16.msra.mxu2 %v7441_v61 }
 0x41b   :  { %1782 = vmatpush.bf16.msra.mxu3 %v7442_v53 }
 0x41d   :  { %1739 = vmatpush.bf16.msra.mxu0 %v7443_v18 }
 0x41e   :  { %1753 = vmatpush.bf16.msra.mxu1 %v7444_v62  ;;  %1769 = vmatpush.bf16.msra.mxu2 %v7445_v33 }
 0x41f   :  { %1783 = vmatpush.bf16.msra.mxu3 %v7446_v22 }
 0x421   :  { %1740 = vmatpush.bf16.msra.mxu0 %v7447_v15 }
 0x422   :  { %1754 = vmatpush.bf16.msra.mxu1 %v7448_v51 }
 0x425   :  { %1741 = vmatpush.bf16.msra.mxu0 %v7449_v38 }
 0x426   :  { %1755 = vmatpush.bf16.msra.mxu1 %v7450_v37 }
 0x484   :  { %v1507_v41 = vpop.f32.mrf.mxu2  ;;  %v1521_v55 = vpop.f32.mrf.mxu3 }
 0x485   :  { %v1399_v4 = vpop.f32.mrf.mxu0  ;;  %v1413_v45 = vpop.f32.mrf.mxu1 }
 0x486   :  { %v1508_v20 = vadd.f32 %v1507_v41, %v1399_v4  ;;  %v1522_v56 = vadd.f32 %v1521_v55, %v1413_v45 }
 0x488   :  { %v6513_v44 = vadd.f32 %v5637_v40, %v1508_v20  ;;  %v6515_v54 = vadd.f32 %v5638_v57, %v1522_v56  ;;  %v5430_v40 = vld [vmem:[#allocation11 + $0x3c4] sm:$0xf] }
 0x489   :  { %v4882_v57 = vld [vmem:[#allocation11 + $0x3e0] sm:$0xf0] }
 0x48a   :  { %7455 = vst [vmem:[#allocation29_spill] sm:$0xff] %v6513_v44  ;;  %v1799_v62 = vmul.f32 %v6513_v44, %v6513_v44  ;;  %v1800_v33 = vmul.f32 %v6515_v54, %v6515_v54 }
 0x48b   :  { %7456 = vst [vmem:[#allocation26_spill] sm:$0xff] %v6515_v54 }
 0x48c   :  { %v1509_v1 = vpop.f32.mrf.mxu2  ;;  %v1523_v58 = vpop.f32.mrf.mxu3  ;;  %v1807_v22 = vadd.f32 %v1800_v33, %v1799_v62 }
 0x48d   :  { %v1401_v30 = vpop.f32.mrf.mxu0  ;;  %v1415_v19 = vpop.f32.mrf.mxu1 }
 0x48e   :  { %v1510_v49 = vadd.f32 %v1509_v1, %v1401_v30  ;;  %v1524_v46 = vadd.f32 %v1523_v58, %v1415_v19 }
 0x490   :  { %v6497_v28 = vadd.f32 %v5635_v25, %v1510_v49  ;;  %v6499_v52 = vadd.f32 %v5636_v13, %v1524_v46  ;;  %v4560_v49 = vld [vmem:[#allocation11 + $0x140] sm:$0xf] }
 0x492   :  { %7453 = vst [vmem:[#allocation27_spill] sm:$0xff] %v6497_v28  ;;  %v1801_v0 = vmul.f32 %v6497_v28, %v6497_v28  ;;  %v1802_v29 = vmul.f32 %v6499_v52, %v6499_v52 }
 0x493   :  { %7454 = vst [vmem:[#allocation23_spill] sm:$0xff] %v6499_v52 }
 0x494   :  { %v1661_v35 = vpop.f32.mrf.mxu2  ;;  %v1810_v2 = vadd.f32 %v1802_v29, %v1801_v0 }
 0x495   :  { %v1557_v23 = vpop.f32.mrf.mxu0  ;;  %v1662_v6 = vadd.f32 %v1661_v35, %v7451_v27 }
 0x496   :  { %v1558_v34 = vadd.f32 %v1557_v23, %v7451_v27  ;;  %v5366_v27 = vld [vmem:[#allocation11 + $0x1c4] sm:$0xf] }
 0x497   :  { %v1666_v36 = vsel %vm1137_vm14, %v1662_v6, -inf }
 0x498   :  { %1667 = vmax.xlane.f32.xlu2 %v1666_v36  ;;  %v1562_v10 = vsel %vm1137_vm14, %v1558_v34, -inf }
 0x499   :  { %1563 = vmax.xlane.f32.xlu0 %v1562_v10 }
 0x49c   :  { %v1663_v24 = vpop.f32.mrf.mxu2 }
 0x49d   :  { %v1559_v31 = vpop.f32.mrf.mxu0  ;;  %v1664_v21 = vadd.f32 %v1663_v24, %v7452_v5 }
 0x49e   :  { %v1560_v50 = vadd.f32 %v1559_v31, %v7452_v5 }
 0x49f   :  { %v1669_v42 = vsel %vm1137_vm14, %v1664_v21, -inf }
 0x4a0   :  { %v1565_v26 = vsel %vm1137_vm14, %v1560_v50, -inf }
 0x4a1   :  { %1566 = vmax.xlane.f32.xlu1 %v1565_v26  ;;  %1670 = vmax.xlane.f32.xlu0 %v1669_v42 }
 0x50b   :  { %v1668_v43 = vpop.xlane.xlu2 %1667 }
 0x50c   :  { %v1672_v17 = vsub.f32 %v1662_v6, %v1668_v43  ;;  %v1564_v14 = vpop.xlane.xlu0 %1563  ;;  %v5342_v43 = vld [vmem:[#allocation11 + $0x104] sm:$0xf] }
 0x50d   :  { %v1568_v60 = vsub.f32 %v1558_v34, %v1564_v14  ;;  %v4626_v34 = vld [vmem:[#allocation11 + $0x1e0] sm:$0xf0] }
 0x50e   :  { %v1674_v11 = vmul.f32 1.442695, %v1672_v17  ;;  %v4629_v10 = vor.u32 %v5366_v27, %v4626_v34  ;;  %v5414_v34 = vld [vmem:[#allocation11 + $0x344] sm:$0xf] }
 0x50f   :  { %v1570_v32 = vmul.f32 1.442695, %v1568_v60  ;;  %v5406_v14 = vld [vmem:[#allocation11 + $0x304] sm:$0xf] }
 0x510   :  { %5547 = vpow2.f32 %v1674_v11  ;;  %2698 = vmatpush.bf16.msrb.mxu2 %v4629_v10 }
 0x511   :  { %5549 = vpow2.f32 %v1570_v32 }
 0x514   :  { %v1567_v63 = vpop.xlane.xlu1 %1566  ;;  %v1671_v7 = vpop.xlane.xlu0 %1670 }
 0x515   :  { %v1569_v3 = vsub.f32 %v1560_v50, %v1567_v63  ;;  %v1673_v16 = vsub.f32 %v1664_v21, %v1671_v7 }
 0x516   :  { %v6495_v59 = vpop.eup %5547 }
 0x517   :  { %v6501_v48 = vpop.eup %5549  ;;  %v1572_v8 = vmul.f32 1.442695, %v1569_v3  ;;  %v1676_v47 = vmul.f32 1.442695, %v1673_v16  ;;  %v1678_v12 = vsel %vm1137_vm14, %v6495_v59, 0.0 }
 0x518   :  { %1679 = vadd.xlane.f32.xlu0 %v1678_v12  ;;  %v1574_v9 = vsel %vm1137_vm14, %v6501_v48, 0.0 }
 0x519   :  { %5551 = vpow2.f32 %v1572_v8  ;;  %1575 = vadd.xlane.f32.xlu1 %v1574_v9 }
 0x51a   :  { %5553 = vpow2.f32 %v1676_v47 }
 0x51f   :  { %v6511_v39 = vpop.eup %5551 }
 0x520   :  { %v6517_v61 = vpop.eup %5553  ;;  %v1577_v53 = vsel %vm1137_vm14, %v6511_v39, 0.0  ;;  %1811 = vadd.xlane.f32.xlu0 %v1810_v2 }
 0x521   :  { %1578 = vadd.xlane.f32.xlu2 %v1577_v53  ;;  %v1681_v18 = vsel %vm1137_vm14, %v6517_v61, 0.0 }
 0x522   :  { %1682 = vadd.xlane.f32.xlu1 %v1681_v18 }
 0x529   :  { %1808 = vadd.xlane.f32.xlu2 %v1807_v22 }
 0x58b   :  { %v1680_v15 = vpop.xlane.xlu0 %1679 }
 0x58c   :  { %v1576_v51 = vpop.xlane.xlu1 %1575  ;;  %5555 = vrcp.f32 %v1680_v15  ;;  %v1693_v36 = vand.u32 2147483647, %v1680_v15  ;;  %vm1689_vm2 = vweird.f32 %v1680_v15  ;;  %v1695_v26 = vand.u32 2147483648, %v1680_v15 }
 0x58d   :  { %5557 = vrcp.f32 %v1576_v51  ;;  %v1591_v31 = vand.u32 2147483648, %v1576_v51  ;;  %vm1585_vm4 = vweird.f32 %v1576_v51  ;;  %v1589_v55 = vand.u32 2147483647, %v1576_v51 }
 0x58e   :  { %vm6527_vm5 = vcmp.eq.f32.partialorder %v1693_v36, 8.507059e+37  ;;  %v1696_v25 = vor.u32 1.1754944e-38, %v1695_v26  ;;  %v4818_v36 = vld [vmem:[#allocation11 + $0x360] sm:$0xf0]  ;;  %v5426_v26 = vld [vmem:[#allocation11 + $0x39c] sm:$0xf0] }
 0x58f   :  { %v1592_v60 = vor.u32 1.1754944e-38, %v1591_v31  ;;  %vm1590_vm10 = vcmp.eq.f32.partialorder %v1589_v55, 8.507059e+37 }
 0x592   :  { %v5556_v38 = vpop.eup %5555 }
 0x593   :  { %v5558_v37 = vpop.eup %5557  ;;  %v1685_v41 = vmul.f32 %v5556_v38, %v1680_v15  ;;  %vm1690_vm3 = vweird.f32 %v5556_v38 }
 0x594   :  { %v1581_v4 = vmul.f32 %v5558_v37, %v1576_v51  ;;  %v1579_v20 = vpop.xlane.xlu2 %1578  ;;  %vm1586_vm1 = vweird.f32 %v5558_v37  ;;  %vm6538_vm7 = vmor %vm1689_vm2, %vm1690_vm3  ;;  %v4885_v51 = vor.u32 %v5430_v40, %v4882_v57  ;;  %v4784_v40 = vld [vmem:[#allocation11 + $0x300] sm:$0xf] }
 0x595   :  { %v1686_v1 = vsub.f32 1.0, %v1685_v41  ;;  %5559 = vrcp.f32 %v1579_v20  ;;  %v1683_v30 = vpop.xlane.xlu1 %1682  ;;  %vm6531_vm6 = vmor %vm1585_vm4, %vm1586_vm1  ;;  %v1604_v11 = vand.u32 2147483647, %v1579_v20  ;;  %v1606_v19 = vand.u32 2147483648, %v1579_v20  ;;  %v4594_v41 = vld [vmem:[#allocation11 + $0x1a0] sm:$0xf0] }
 0x596   :  { %v1582_v35 = vsub.f32 1.0, %v1581_v4  ;;  %5561 = vrcp.f32 %v1683_v30  ;;  %v1710_v63 = vand.u32 2147483648, %v1683_v30  ;;  %v1708_v16 = vand.u32 2147483647, %v1683_v30  ;;  %v5422_v4 = vld [vmem:[#allocation11 + $0x384] sm:$0xf] }
 0x597   :  { %v1687_v6 = vmul.f32 %v5556_v38, %v1686_v1  ;;  %vm1600_vm11 = vweird.f32 %v1579_v20  ;;  %v1607_v47 = vor.u32 1.1754944e-38, %v1606_v19  ;;  %vm1704_vm13 = vweird.f32 %v1683_v30  ;;  %v4624_v1 = vld [vmem:[#allocation11 + $0x1c0] sm:$0xf] }
 0x598   :  { %v1583_v23 = vmul.f32 %v5558_v37, %v1582_v35  ;;  %vm1605_vm15 = vcmp.eq.f32.partialorder %v1604_v11, 8.507059e+37  ;;  %v1711_v29 = vor.u32 1.1754944e-38, %v1710_v63  ;;  %vm1709_vm1 = vcmp.eq.f32.partialorder %v1708_v16, 8.507059e+37  ;;  %v4816_v63 = vld [vmem:[#allocation11 + $0x340] sm:$0xf] }
 0x599   :  { %v1688_v42 = vadd.f32 %v5556_v38, %v1687_v6  ;;  %v4562_v6 = vld [vmem:[#allocation11 + $0x160] sm:$0xf0]  ;;  %v5418_v16 = vld [vmem:[#allocation11 + $0x35c] sm:$0xf0] }
 0x59a   :  { %v1584_v21 = vadd.f32 %v5558_v37, %v1583_v23  ;;  %v5434_v23 = vld [vmem:[#allocation11 + $0x3dc] sm:$0xf0] }
 0x59b   :  { %v5560_v24 = vpop.eup %5559  ;;  %v1692_v7 = vsel %vm6538_vm7, %v5556_v38, %v1688_v42 }
 0x59c   :  { %v5562_v5 = vpop.eup %5561  ;;  %v1596_v50 = vmul.f32 %v5560_v24, %v1579_v20  ;;  %v1588_v32 = vsel %vm6531_vm6, %v5558_v37, %v1584_v21  ;;  %vm1601_vm8 = vweird.f32 %v5560_v24  ;;  %v1697_v9 = vsel %vm6527_vm5, %v1696_v25, %v1692_v7  ;;  %v5358_v37 = vld [vmem:[#allocation11 + $0x184] sm:$0xf]  ;;  %v1809_v31 = vpop.xlane.xlu2 %1808  ;;  %v5362_v21 = vld [vmem:[#allocation11 + $0x19c] sm:$0xf0] }
 0x59d   :  { %v1700_v45 = vmul.f32 %v5562_v5, %v1683_v30  ;;  %vm1705_vm9 = vweird.f32 %v5562_v5  ;;  %v1593_v8 = vsel %vm1590_vm10, %v1592_v60, %v1588_v32  ;;  %vm1602_vm12 = vmor %vm1600_vm11, %vm1601_vm8  ;;  %v1698_v33 = vmul.f32 %v6495_v59, %v1697_v9  ;;  %v4880_v59 = vld [vmem:[#allocation11 + $0x3c0] sm:$0xf] }
 0x59e   :  { %v1597_v17 = vsub.f32 1.0, %v1596_v50  ;;  %vm1706_vm0 = vmor %vm1704_vm13, %vm1705_vm9  ;;  %v1594_v53 = vmul.f32 %v6501_v48, %v1593_v8  ;;  %v4597_v20 = vor.u32 %v5358_v37, %v4594_v41  ;;  %v4850_v48 = vld [vmem:[#allocation11 + $0x3a0] sm:$0xf0]  ;;  %v4881_v27 = vor.u32 %v5434_v23, %v4880_v59  ;;  %v4848_v50 = vld [vmem:[#allocation11 + $0x380] sm:$0xf] }
 0x59f   :  { %v1701_v58 = vsub.f32 1.0, %v1700_v45  ;;  %v4853_v30 = vor.u32 %v5422_v4, %v4850_v48  ;;  %v1812_v45 = vpop.xlane.xlu0 %1811  ;;  %v4849_v55 = vor.u32 %v5426_v26, %v4848_v50  ;;  %v7463_v60 = vld [vmem:[#allocation20_spill] sm:$0xff]  ;;  %v4817_v25 = vor.u32 %v5418_v16, %v4816_v63 }
 0x5a0   :  { %v1598_v46 = vmul.f32 %v5560_v24, %v1597_v17  ;;  %2699 = vmatpush.bf16.msrb.mxu2 %v4597_v20  ;;  %v4530_v17 = vld [vmem:[#allocation11 + $0x120] sm:$0xf0]  ;;  %v1819_v11 = vmul.f32 %v1809_v31, %v7463_v60  ;;  %v1820_v7 = vmul.f32 %v1812_v45, %v7463_v60  ;;  %v4496_v41 = vld [vmem:[#allocation11 + $0xc0] sm:$0xf] }
 0x5a1   :  { %v1702_v3 = vmul.f32 %v5562_v5, %v1701_v58  ;;  %v4533_v19 = vor.u32 %v5342_v43, %v4530_v17  ;;  %v4786_v58 = vld [vmem:[#allocation11 + $0x320] sm:$0xf0]  ;;  %v5338_v4 = vld [vmem:[#allocation11 + $0xdc] sm:$0xf0] }
 0x5a2   :  { %v1599_v13 = vadd.f32 %v5560_v24, %v1598_v46  ;;  %v4789_v32 = vor.u32 %v5406_v14, %v4786_v58  ;;  %v5354_v46 = vld [vmem:[#allocation11 + $0x15c] sm:$0xf0]  ;;  %v4498_v8 = vld [vmem:[#allocation11 + $0xe0] sm:$0xf0]  ;;  %v6556_v57 = vadd.f32 1e-06, %v1820_v7  ;;  %v4497_v48 = vor.u32 %v5338_v4, %v4496_v41 }
 0x5a3   :  { %v1703_v12 = vadd.f32 %v5562_v5, %v1702_v3  ;;  %v4561_v3 = vor.u32 %v5354_v46, %v4560_v49  ;;  %v4752_v20 = vld [vmem:[#allocation11 + $0x2c0] sm:$0xf]  ;;  %v5382_v23 = vld [vmem:[#allocation11 + $0x244] sm:$0xf] }
 0x5a4   :  { %v1603_v0 = vsel %vm1602_vm12, %v5560_v24, %v1599_v13  ;;  %v4821_v24 = vor.u32 %v5414_v34, %v4818_v36  ;;  %v5334_v13 = vld [vmem:[#allocation11 + $0xc4] sm:$0xf]  ;;  %v5330_v34 = vld [vmem:[#allocation11 + $0x9c] sm:$0xf0]  ;;  %vm1843_vm5 = vweird.f32 %v6556_v57 }
 0x5a5   :  { %v1608_v56 = vsel %vm1605_vm15, %v1607_v47, %v1603_v0  ;;  %v1707_v2 = vsel %vm1706_vm0, %v5562_v5, %v1703_v12  ;;  %v4592_v5 = vld [vmem:[#allocation11 + $0x180] sm:$0xf]  ;;  %v5398_v47 = vld [vmem:[#allocation11 + $0x2c4] sm:$0xf]  ;;  %v6554_v12 = vadd.f32 1e-06, %v1819_v11  ;;  %v4501_v9 = vor.u32 %v5334_v13, %v4498_v8 }
 0x5a6   :  { %v1609_v18 = vmul.f32 %v6511_v39, %v1608_v56  ;;  %v1712_v62 = vsel %vm1709_vm1, %v1711_v29, %v1707_v2  ;;  %v5370_v39 = vld [vmem:[#allocation11 + $0x1dc] sm:$0xf0]  ;;  %v4593_v42 = vor.u32 %v5362_v21, %v4592_v5  ;;  %v4754_v0 = vld [vmem:[#allocation11 + $0x2e0] sm:$0xf0] }
 0x5a7   :  { %v1713_v22 = vmul.f32 %v6517_v61, %v1712_v62  ;;  %v4625_v35 = vor.u32 %v5370_v39, %v4624_v1  ;;  %v5350_v61 = vld [vmem:[#allocation11 + $0x144] sm:$0xf]  ;;  %v4757_v29 = vor.u32 %v5398_v47, %v4754_v0  ;;  %v4528_v56 = vld [vmem:[#allocation11 + $0x100] sm:$0xf]  ;;  %5563 = vrsqrt.f32 %v6554_v12 }
 0x5a8   :  { %v1610_v15 = vpack.c.bf16 %v1609_v18, %v1594_v53  ;;  %v4565_v10 = vor.u32 %v5350_v61, %v4562_v6  ;;  %v5346_v2 = vld [vmem:[#allocation11 + $0x11c] sm:$0xf0]  ;;  %v5318_v39 = vld [vmem:[#allocation11 + $0x44] sm:$0xf]  ;;  %5565 = vrsqrt.f32 %v6556_v57  ;;  %vm1833_vm3 = vweird.f32 %v6554_v12 }
 0x5a9   :  { %v1714_v38 = vpack.c.bf16 %v1713_v22, %v1698_v33  ;;  %2660 = vmatpush.bf16.msrb.mxu0 %v4625_v35  ;;  %v4529_v53 = vor.u32 %v5346_v2, %v4528_v56  ;;  %v5410_v18 = vld [vmem:[#allocation11 + $0x31c] sm:$0xf0]  ;;  %v5326_v33 = vld [vmem:[#allocation11 + $0x84] sm:$0xf] }
 0x5aa   :  { %4396 = vmatmul.msk.bf16.vlgmr.msrb.gmra.mxu1 %vm1137_vm14, %v1610_v15  ;;  %2700 = vmatpush.bf16.msrb.mxu2 %v4565_v10  ;;  %v4785_v62 = vor.u32 %v5410_v18, %v4784_v40  ;;  %v4466_v22 = vld [vmem:[#allocation11 + $0xa0] sm:$0xf0]  ;;  %v5402_v1 = vld [vmem:[#allocation11 + $0x2dc] sm:$0xf0] }
 0x5ab   :  { %4397 = vmatmul.msk.bf16.vlgmr.msrb.gmra.mxu3 %vm1137_vm14, %v1714_v38  ;;  %2679 = vmatpush.bf16.msrb.mxu1 %v4881_v27  ;;  %v5390_v15 = vld [vmem:[#allocation11 + $0x284] sm:$0xf]  ;;  %v4753_v35 = vor.u32 %v5402_v1, %v4752_v20  ;;  %v4464_v27 = vld [vmem:[#allocation11 + $0x80] sm:$0xf] }
 0x5ac   :  { %2717 = vmatpush.bf16.msrb.mxu3 %v4885_v51  ;;  %v4469_v51 = vor.u32 %v5326_v33, %v4466_v22  ;;  %v4722_v38 = vld [vmem:[#allocation11 + $0x2a0] sm:$0xf0]  ;;  %v4720_v36 = vld [vmem:[#allocation11 + $0x280] sm:$0xf] }
 0x5ad   :  { %2661 = vmatpush.bf16.msrb.mxu0 %v4593_v42  ;;  %v4725_v37 = vor.u32 %v5390_v15, %v4722_v38  ;;  %v4690_v61 = vld [vmem:[#allocation11 + $0x260] sm:$0xf0]  ;;  %v5394_v10 = vld [vmem:[#allocation11 + $0x29c] sm:$0xf0]  ;;  %v5564_v43 = vpop.eup %5563 }
 0x5ae   :  { %2701 = vmatpush.bf16.msrb.mxu2 %v4533_v19  ;;  %v4693_v6 = vor.u32 %v5382_v23, %v4690_v61  ;;  %v4721_v31 = vor.u32 %v5394_v10, %v4720_v36  ;;  %v5310_v5 = vld [vmem:[#allocation11 + $0x4] sm:$0xf]  ;;  %v4432_v45 = vld [vmem:[#allocation11 + $0x40] sm:$0xf]  ;;  %v5566_v58 = vpop.eup %5565  ;;  %v1828_v49 = vmul.f32 %v5564_v43, %v6554_v12  ;;  %vm1834_vm14 = vweird.f32 %v5564_v43 }
 0x5af   :  { %2680 = vmatpush.bf16.msrb.mxu1 %v4849_v55  ;;  %v4402_v21 = vld [vmem:[#allocation11 + $0x20] sm:$0xf0]  ;;  %v5322_v55 = vld [vmem:[#allocation11 + $0x5c] sm:$0xf0]  ;;  %vm1844_vm2 = vweird.f32 %v5566_v58  ;;  %vm1835_vm4 = vmor %vm1833_vm3, %vm1834_vm14 }
 0x5b0   :  { %2718 = vmatpush.bf16.msrb.mxu3 %v4853_v30  ;;  %v4434_v30 = vld [vmem:[#allocation11 + $0x60] sm:$0xf0]  ;;  %v4405_v42 = vor.u32 %v5310_v5, %v4402_v21  ;;  %v4688_v14 = vld [vmem:[#allocation11 + $0x240] sm:$0xf]  ;;  %v4433_v19 = vor.u32 %v5322_v55, %v4432_v45  ;;  %v1829_v8 = vmul.f32 %v5564_v43, %v1828_v49  ;;  %vm1845_vm6 = vmor %vm1843_vm5, %vm1844_vm2 }
 0x5b1   :  { %2662 = vmatpush.bf16.msrb.mxu0 %v4561_v3  ;;  %v4437_v59 = vor.u32 %v5318_v39, %v4434_v30  ;;  %v5374_v50 = vld [vmem:[#allocation11 + $0x204] sm:$0xf]  ;;  %v5386_v11 = vld [vmem:[#allocation11 + $0x25c] sm:$0xf0]  ;;  %v1838_v3 = vmul.f32 %v5566_v58, %v6556_v57  ;;  %v5640_v5 = vld [vmem:[#allocation2 + $0x28] sm:$0xff] }
 0x5b2   :  { %2702 = vmatpush.bf16.msrb.mxu2 %v4501_v9  ;;  %v4658_v26 = vld [vmem:[#allocation11 + $0x220] sm:$0xf0]  ;;  %v4400_v46 = vld [vmem:[#allocation11] sm:$0xf]  ;;  %v1830_v0 = vmul.f32 0.5, %v1829_v8 }
 0x5b3   :  { %2681 = vmatpush.bf16.msrb.mxu1 %v4817_v25  ;;  %v4661_v17 = vor.u32 %v5374_v50, %v4658_v26  ;;  %v5314_v63 = vld [vmem:[#allocation11 + $0x1c] sm:$0xf0]  ;;  %v1839_v47 = vmul.f32 %v5566_v58, %v1838_v3  ;;  %v4632_v3 = vld [vmem:[#allocation11 + $0x1c8] sm:$0xf] }
 0x5b4   :  { %2719 = vmatpush.bf16.msrb.mxu3 %v4821_v24  ;;  %v4465_v24 = vor.u32 %v5330_v34, %v4464_v27  ;;  %v4656_v7 = vld [vmem:[#allocation11 + $0x200] sm:$0xf]  ;;  %v4401_v16 = vor.u32 %v5314_v63, %v4400_v46  ;;  %v1831_v56 = vsub.f32 1.5, %v1830_v0  ;;  %v5435_v8 = vld [vmem:[#allocation11 + $0x3e4] sm:$0xf0] }
 0x5b5   :  { %2663 = vmatpush.bf16.msrb.mxu0 %v4529_v53  ;;  %v5378_v25 = vld [vmem:[#allocation11 + $0x21c] sm:$0xf0] }
 0x5b6   :  { %2703 = vmatpush.bf16.msrb.mxu2 %v4469_v51  ;;  %v4657_v13 = vor.u32 %v5378_v25, %v4656_v7  ;;  %v1798_v51 = vld [vmem:[%s7359_s8] sm:$0x3]  ;;  %v4888_v25 = vld [vmem:[#allocation11 + $0x3c8] sm:$0xf]  ;;  %s5863_s8 = smov [#allocation14]  }
 0x5b7   :  { %2682 = vmatpush.bf16.msrb.mxu1 %v4785_v62  ;;  %v1832_v62 = vmul.f32 %v5564_v43, %v1831_v56  ;;  %v6569_v20 = vperm.slane %v1798_v51, 0  ;;  %v6571_v12 = vperm.slane %v1798_v51, 1  ;;  %v4889_v0 = vor.u32 %v5435_v8, %v4888_v25  ;;  %v5431_v56 = vld [vmem:[#allocation11 + $0x3cc] sm:$0xf]  ;;  %v4760_v25 = vld [vmem:[#allocation11 + $0x2c8] sm:$0xf] }
 0x5b8   :  { %2720 = vmatpush.bf16.msrb.mxu3 %v4789_v32  ;;  %v4689_v32 = vor.u32 %v5386_v11, %v4688_v14  ;;  %v4602_v51 = vld [vmem:[#allocation11 + $0x1a8] sm:$0xf0]  ;;  %v5403_v8 = vld [vmem:[#allocation11 + $0x2e4] sm:$0xf0]  ;;  %s3864_s26 = sshll.u32 %s5863_s8, 4  ;;  %s3865_s26 = int_to_ptr.vmem [resolvable:$true] %s3864_s26 }
 0x5b9   :  { %2664 = vmatpush.bf16.msrb.mxu0 %v4497_v48  ;;  %v1836_v22 = vsel %vm1835_vm4, %v5564_v43, %v1832_v62  ;;  %v4856_v62 = vld [vmem:[#allocation11 + $0x388] sm:$0xf] }
 0x5ba   :  { %2704 = vmatpush.bf16.msrb.mxu2 %v4437_v59  ;;  %v1867_v41 = vmul.f32 %v1836_v22, %v6513_v44  ;;  %v1868_v4 = vmul.f32 %v1836_v22, %v6515_v54  ;;  %v5427_v22 = vld [vmem:[#allocation11 + $0x3a4] sm:$0xf0] }
 0x5bb   :  { %2683 = vmatpush.bf16.msrb.mxu1 %v4753_v35 }
 0x5bc   :  { %2721 = vmatpush.bf16.msrb.mxu3 %v4757_v29  ;;  %v1840_v29 = vmul.f32 0.5, %v1839_v47  ;;  %v1880_v1 = vmul.f32 %v6569_v20, %v1867_v41  ;;  %v1881_v39 = vmul.f32 %v6571_v12, %v1868_v4  ;;  %v5367_v47 = vld [vmem:[#allocation11 + $0x1cc] sm:$0xf] }
 0x5bd   :  { %2665 = vmatpush.bf16.msrb.mxu0 %v4465_v24  ;;  %v5639_v24 = vld [vmem:[#allocation2 + $0x20] sm:$0xff]  ;;  %v5423_v41 = vld [vmem:[#allocation11 + $0x38c] sm:$0xf] }
 0x5be   :  { %2705 = vmatpush.bf16.msrb.mxu2 %v4405_v42  ;;  %v1841_v40 = vsub.f32 1.5, %v1840_v29  ;;  %v4858_v4 = vld [vmem:[#allocation11 + $0x3a8] sm:$0xf0] }
 0x5bf   :  { %2684 = vmatpush.bf16.msrb.mxu1 %v4721_v31 }
 0x5c0   :  { %2722 = vmatpush.bf16.msrb.mxu3 %v4725_v37  ;;  %v1842_v33 = vmul.f32 %v5566_v58, %v1841_v40 }
 0x5c1   :  { %2666 = vmatpush.bf16.msrb.mxu0 %v4433_v19  ;;  %v5641_v19 = vld [vmem:[#allocation2 + $0x30] sm:$0xff] }
 0x5c2   :  { %v1846_v38 = vsel %vm1845_vm6, %v5566_v58, %v1842_v33 }
 0x5c3   :  { %2685 = vmatpush.bf16.msrb.mxu1 %v4689_v32  ;;  %v1869_v57 = vmul.f32 %v1846_v38, %v6497_v28  ;;  %v1870_v48 = vmul.f32 %v1846_v38, %v6499_v52  ;;  %v5642_v32 = vld [vmem:[#allocation2 + $0x38] sm:$0xff]  ;;  %v4857_v38 = vor.u32 %v5427_v22, %v4856_v62  ;;  %v4728_v22 = vld [vmem:[#allocation11 + $0x288] sm:$0xf] }
 0x5c4   :  { %2723 = vmatpush.bf16.msrb.mxu3 %v4693_v6 }
 0x5c5   :  { %2667 = vmatpush.bf16.msrb.mxu0 %v4401_v16  ;;  %v1882_v30 = vmul.f32 %v6569_v20, %v1869_v57  ;;  %v1883_v35 = vmul.f32 %v6571_v12, %v1870_v48  ;;  %v5371_v16 = vld [vmem:[#allocation11 + $0x1e4] sm:$0xf0]  ;;  %v4861_v57 = vor.u32 %v5423_v41, %v4858_v4  ;;  %v4474_v41 = vld [vmem:[#allocation11 + $0xa8] sm:$0xf0] }
 0x5c6   :  { %v4568_v48 = vld [vmem:[#allocation11 + $0x148] sm:$0xf]  ;;  %v5391_v4 = vld [vmem:[#allocation11 + $0x28c] sm:$0xf] }
 0x5c7   :  { %2686 = vmatpush.bf16.msrb.mxu1 %v4657_v13  ;;  %v6579_v59 = vpack.c.bf16 %v1882_v30, %v1880_v1  ;;  %v6581_v23 = vpack.c.bf16 %v1883_v35, %v1881_v39  ;;  %v4633_v13 = vor.u32 %v5371_v16, %v4632_v3  ;;  %v5355_v1 = vld [vmem:[#allocation11 + $0x164] sm:$0xf0] }
 0x5c8   :  { %2724 = vmatpush.bf16.msrb.mxu3 %v4661_v17  ;;  %v4824_v39 = vld [vmem:[#allocation11 + $0x348] sm:$0xf]  ;;  %v4569_v30 = vor.u32 %v5355_v1, %v4568_v48 }
 0x5c9   :  { %v5419_v35 = vld [vmem:[#allocation11 + $0x364] sm:$0xf0] }
 0x5ca   :  { %v4504_v3 = vld [vmem:[#allocation11 + $0xc8] sm:$0xf] }
 0x5cb   :  { %v5339_v16 = vld [vmem:[#allocation11 + $0xe4] sm:$0xf0] }
 0x627   :  { %v1624_v9 = vpop.f32.mrf.mxu1 }
 0x62e   :  { %v1728_v2 = vpop.f32.mrf.mxu3 }
 0x62f   :  { %v1626_v53 = vpop.f32.mrf.mxu1 }
 0x630   :  { %v1629_v18 = vpack.c.bf16 %v1626_v53, %v1624_v9  ;;  %v4634_v9 = vld [vmem:[#allocation11 + $0x1e8] sm:$0xf0]  ;;  %v4600_v53 = vld [vmem:[#allocation11 + $0x188] sm:$0xf] }
 0x631   :  { %v4637_v29 = vor.u32 %v5367_v47, %v4634_v9  ;;  %v5335_v47 = vld [vmem:[#allocation11 + $0xcc] sm:$0xf] }
 0x632   :  { %1770 = vmatmul.bf16.vlgmr.msra.gmra.mxu2 %v1629_v18  ;;  %1784 = vmatmul.bf16.vlgmr.msra.gmra.mxu3 %v1629_v18  ;;  %v5363_v18 = vld [vmem:[#allocation11 + $0x1a4] sm:$0xf0]  ;;  %v4506_v9 = vld [vmem:[#allocation11 + $0xe8] sm:$0xf0] }
 0x633   :  { %2774 = vmatpush.bf16.msra.mxu2 %v4637_v29  ;;  %v4601_v33 = vor.u32 %v5363_v18, %v4600_v53  ;;  %v4761_v29 = vor.u32 %v5403_v8, %v4760_v25  ;;  %v4472_v53 = vld [vmem:[#allocation11 + $0x88] sm:$0xf] }
 0x636   :  { %v1730_v15 = vpop.f32.mrf.mxu3 }
 0x637   :  { %v1733_v37 = vpack.c.bf16 %v1730_v15, %v1728_v2  ;;  %v4890_v2 = vld [vmem:[#allocation11 + $0x3e8] sm:$0xf0] }
 0x638   :  { %v4893_v40 = vor.u32 %v5431_v56, %v4890_v2  ;;  %v5359_v15 = vld [vmem:[#allocation11 + $0x18c] sm:$0xf]  ;;  %v4509_v56 = vor.u32 %v5335_v47, %v4506_v9 }
 0x639   :  { %1742 = vmatmul.bf16.vlgmr.msra.gmra.mxu0 %v1733_v37  ;;  %1756 = vmatmul.bf16.vlgmr.msra.gmra.mxu1 %v1733_v37  ;;  %v4605_v37 = vor.u32 %v5359_v15, %v4602_v51  ;;  %v5399_v2 = vld [vmem:[#allocation11 + $0x2cc] sm:$0xf]  ;;  %v5395_v15 = vld [vmem:[#allocation11 + $0x2a4] sm:$0xf0] }
 0x63a   :  { %2736 = vmatpush.bf16.msra.mxu0 %v4633_v13  ;;  %2755 = vmatpush.bf16.msra.mxu1 %v4889_v0  ;;  %v4505_v13 = vor.u32 %v5339_v16, %v4504_v3  ;;  %v4666_v3 = vld [vmem:[#allocation11 + $0x228] sm:$0xf0] }
 0x63b   :  { %2793 = vmatpush.bf16.msra.mxu3 %v4893_v40  ;;  %2775 = vmatpush.bf16.msra.mxu2 %v4605_v37  ;;  %v4762_v40 = vld [vmem:[#allocation11 + $0x2e8] sm:$0xf0] }
 0x63c   :  { %v4765_v62 = vor.u32 %v5399_v2, %v4762_v40  ;;  %v5327_v37 = vld [vmem:[#allocation11 + $0x8c] sm:$0xf]  ;;  %v5372_v2 = vld [vmem:[#allocation11 + $0x1ec] sm:$0xf0] }
 0x63d   :  { %v4477_v1 = vor.u32 %v5327_v37, %v4474_v41  ;;  %v4896_v40 = vld [vmem:[#allocation11 + $0x3d0] sm:$0xf]  ;;  %v4898_v37 = vld [vmem:[#allocation11 + $0x3f0] sm:$0xf0] }
 0x63e   :  { %2737 = vmatpush.bf16.msra.mxu0 %v4601_v33  ;;  %2756 = vmatpush.bf16.msra.mxu1 %v4857_v38  ;;  %v5331_v33 = vld [vmem:[#allocation11 + $0xa4] sm:$0xf0]  ;;  %v4729_v38 = vor.u32 %v5395_v15, %v4728_v22 }
 0x63f   :  { %2794 = vmatpush.bf16.msra.mxu3 %v4861_v57  ;;  %v4473_v51 = vor.u32 %v5331_v33, %v4472_v53  ;;  %v4642_v33 = vld [vmem:[#allocation11 + $0x1f0] sm:$0xf0] }
 0x642   :  { %2706 = vmatmul.bf16.vlgmr.msrb.gmra.mxu2 %v6579_v59  ;;  %2725 = vmatmul.bf16.vlgmr.msrb.gmra.mxu3 %v6581_v23 }
 0x643   :  { %2738 = vmatpush.bf16.msra.mxu0 %v4569_v30 }
 0x649   :  { %2668 = vmatmul.bf16.vlgmr.msrb.gmra.mxu0 %v6579_v59  ;;  %2687 = vmatmul.bf16.vlgmr.msrb.gmra.mxu1 %v6581_v23 }
 0x6b5   :  { %v1771_v61 = vpop.f32.mrf.mxu2  ;;  %v1785_v27 = vpop.f32.mrf.mxu3 }
 0x6b6   :  { %v1743_v6 = vpop.f32.mrf.mxu0  ;;  %v1757_v34 = vpop.f32.mrf.mxu1 }
 0x6b7   :  { %v1772_v36 = vadd.f32 %v1771_v61, %v1743_v6  ;;  %v1786_v10 = vadd.f32 %v1785_v27, %v1757_v34  ;;  %v5351_v61 = vld [vmem:[#allocation11 + $0x14c] sm:$0xf]  ;;  %v4825_v34 = vor.u32 %v5419_v35, %v4824_v39 }
 0x6b8   :  { %v4570_v27 = vld [vmem:[#allocation11 + $0x168] sm:$0xf0] }
 0x6b9   :  { %v6587_v31 = vadd.f32 %v5639_v24, %v1772_v36  ;;  %v6589_v21 = vadd.f32 %v5640_v5, %v1786_v10  ;;  %v4573_v36 = vor.u32 %v5351_v61, %v4570_v27  ;;  %v5415_v10 = vld [vmem:[#allocation11 + $0x34c] sm:$0xf]  ;;  %2757 = vmatpush.bf16.msra.mxu1 %v4825_v34  ;;  %v5323_v61 = vld [vmem:[#allocation11 + $0x64] sm:$0xf0] }
 0x6ba   :  { %v4826_v24 = vld [vmem:[#allocation11 + $0x368] sm:$0xf0]  ;;  %v4696_v27 = vld [vmem:[#allocation11 + $0x248] sm:$0xf] }
 0x6bb   :  { %7464 = vst [vmem:[#allocation31_spill] sm:$0xff] %v6587_v31  ;;  %v1803_v50 = vmul.f32 %v6587_v31, %v6587_v31  ;;  %v1804_v42 = vmul.f32 %v6589_v21, %v6589_v21  ;;  %2776 = vmatpush.bf16.msra.mxu2 %v4573_v36  ;;  %v4730_v39 = vld [vmem:[#allocation11 + $0x2a8] sm:$0xf0] }
 0x6bc   :  { %7465 = vst [vmem:[#allocation24_spill] sm:$0xff] %v6589_v21  ;;  %v4733_v35 = vor.u32 %v5391_v4, %v4730_v39  ;;  %v5319_v36 = vld [vmem:[#allocation11 + $0x4c] sm:$0xf]  ;;  %v5364_v4 = vld [vmem:[#allocation11 + $0x1ac] sm:$0xf0] }
 0x6bd   :  { %v1773_v26 = vpop.f32.mrf.mxu2  ;;  %v1787_v45 = vpop.f32.mrf.mxu3  ;;  %v1813_v55 = vadd.f32 %v1804_v42, %v1803_v50  ;;  %v4829_v50 = vor.u32 %v5415_v10, %v4826_v24  ;;  %v4536_v42 = vld [vmem:[#allocation11 + $0x108] sm:$0xf]  ;;  %v4442_v10 = vld [vmem:[#allocation11 + $0x68] sm:$0xf0] }
 0x6be   :  { %v1745_v43 = vpop.f32.mrf.mxu0  ;;  %v1759_v17 = vpop.f32.mrf.mxu1 }
 0x6bf   :  { %v1774_v14 = vadd.f32 %v1773_v26, %v1745_v43  ;;  %v1788_v11 = vadd.f32 %v1787_v45, %v1759_v17  ;;  %1814 = vadd.xlane.f32.xlu1 %v1813_v55  ;;  %v5347_v26 = vld [vmem:[#allocation11 + $0x124] sm:$0xf0]  ;;  %2795 = vmatpush.bf16.msra.mxu3 %v4829_v50  ;;  %v5383_v50 = vld [vmem:[#allocation11 + $0x24c] sm:$0xf] }
 0x6c0   :  { %v4792_v45 = vld [vmem:[#allocation11 + $0x308] sm:$0xf]  ;;  %v4537_v43 = vor.u32 %v5347_v26, %v4536_v42  ;;  %v4698_v42 = vld [vmem:[#allocation11 + $0x268] sm:$0xf0] }
 0x6c1   :  { %v6595_v58 = vadd.f32 %v5641_v19, %v1774_v14  ;;  %v6597_v49 = vadd.f32 %v5642_v32, %v1788_v11  ;;  %v5411_v17 = vld [vmem:[#allocation11 + $0x324] sm:$0xf0]  ;;  %v5343_v14 = vld [vmem:[#allocation11 + $0x10c] sm:$0xf] }
 0x6c2   :  { %v4793_v11 = vor.u32 %v5411_v17, %v4792_v45  ;;  %v4538_v19 = vld [vmem:[#allocation11 + $0x128] sm:$0xf0]  ;;  %2739 = vmatpush.bf16.msra.mxu0 %v4537_v43  ;;  %v4408_v26 = vld [vmem:[#allocation11 + $0x8] sm:$0xf]  ;;  %v4445_v45 = vor.u32 %v5319_v36, %v4442_v10  ;;  %v4701_v43 = vor.u32 %v5383_v50, %v4698_v42  ;;  %v4866_v36 = vld [vmem:[#allocation11 + $0x3b0] sm:$0xf0] }
 0x6c3   :  { %7466 = vst [vmem:[#allocation33_spill] sm:$0xff] %v6595_v58  ;;  %v1805_v46 = vmul.f32 %v6595_v58, %v6595_v58  ;;  %v1806_v63 = vmul.f32 %v6597_v49, %v6597_v49  ;;  %v5407_v32 = vld [vmem:[#allocation11 + $0x30c] sm:$0xf]  ;;  %v5315_v17 = vld [vmem:[#allocation11 + $0x24] sm:$0xf0] }
 0x6c4   :  { %7467 = vst [vmem:[#allocation30_spill] sm:$0xff] %v6597_v49  ;;  %2758 = vmatpush.bf16.msra.mxu1 %v4793_v11  ;;  %v5379_v11 = vld [vmem:[#allocation11 + $0x224] sm:$0xf0]  ;;  %v5356_v50 = vld [vmem:[#allocation11 + $0x16c] sm:$0xf0] }
 0x6c5   :  { %v1816_v7 = vadd.f32 %v1806_v63, %v1805_v46  ;;  %v4794_v46 = vld [vmem:[#allocation11 + $0x328] sm:$0xf0]  ;;  %v4541_v63 = vor.u32 %v5343_v14, %v4538_v19  ;;  %v4664_v14 = vld [vmem:[#allocation11 + $0x208] sm:$0xf]  ;;  %v4832_v42 = vld [vmem:[#allocation11 + $0x350] sm:$0xf] }
 0x6c6   :  { %2740 = vmatpush.bf16.msra.mxu0 %v4505_v13  ;;  %v4665_v25 = vor.u32 %v5379_v11, %v4664_v14  ;;  %v5352_v14 = vld [vmem:[#allocation11 + $0x154] sm:$0xf] }
 0x6c7   :  { %1817 = vadd.xlane.f32.xlu2 %v1816_v7  ;;  %v4797_v7 = vor.u32 %v5407_v32, %v4794_v46  ;;  %2777 = vmatpush.bf16.msra.mxu2 %v4541_v63  ;;  %v5311_v32 = vld [vmem:[#allocation11 + $0xc] sm:$0xf]  ;;  %v4409_v63 = vor.u32 %v5315_v17, %v4408_v26  ;;  %v5420_v17 = vld [vmem:[#allocation11 + $0x36c] sm:$0xf0]  ;;  %v4578_v11 = vld [vmem:[#allocation11 + $0x170] sm:$0xf0] }
 0x6c8   :  { %2759 = vmatpush.bf16.msra.mxu1 %v4761_v29  ;;  %v4410_v46 = vld [vmem:[#allocation11 + $0x28] sm:$0xf0] }
 0x6c9   :  { %2796 = vmatpush.bf16.msra.mxu3 %v4797_v7  ;;  %v5375_v7 = vld [vmem:[#allocation11 + $0x20c] sm:$0xf]  ;;  %v4413_v8 = vor.u32 %v5311_v32, %v4410_v46  ;;  %v4833_v32 = vor.u32 %v5420_v17, %v4832_v42  ;;  %v4581_v46 = vor.u32 %v5352_v14, %v4578_v11  ;;  %v4738_v42 = vld [vmem:[#allocation11 + $0x2b0] sm:$0xf0]  ;;  %v4704_v14 = vld [vmem:[#allocation11 + $0x250] sm:$0xf] }
 0x6ca   :  { %2741 = vmatpush.bf16.msra.mxu0 %v4473_v51  ;;  %v4669_v47 = vor.u32 %v5375_v7, %v4666_v3  ;;  %v4834_v7 = vld [vmem:[#allocation11 + $0x370] sm:$0xf0]  ;;  %v5388_v11 = vld [vmem:[#allocation11 + $0x26c] sm:$0xf0] }
 0x6cb   :  { %2778 = vmatpush.bf16.msra.mxu2 %v4509_v56  ;;  %v4640_v56 = vld [vmem:[#allocation11 + $0x1d0] sm:$0xf] }
 0x6cc   :  { %2760 = vmatpush.bf16.msra.mxu1 %v4729_v38  ;;  %v4641_v53 = vor.u32 %v5372_v2, %v4640_v56  ;;  %v5432_v38 = vld [vmem:[#allocation11 + $0x3d4] sm:$0xf] }
 0x6cd   :  { %2797 = vmatpush.bf16.msra.mxu3 %v4765_v62  ;;  %v5368_v62 = vld [vmem:[#allocation11 + $0x1d4] sm:$0xf]  ;;  %v4901_v41 = vor.u32 %v5432_v38, %v4898_v37 }
 0x6ce   :  { %v4645_v51 = vor.u32 %v5368_v62, %v4642_v33  ;;  %v4802_v62 = vld [vmem:[#allocation11 + $0x330] sm:$0xf0] }
 0x6cf   :  { %2779 = vmatpush.bf16.msra.mxu2 %v4477_v1  ;;  %v4864_v1 = vld [vmem:[#allocation11 + $0x390] sm:$0xf] }
 0x6d1   :  { %2798 = vmatpush.bf16.msra.mxu3 %v4733_v35 }
 0x6d3   :  { %2780 = vmatpush.bf16.msra.mxu2 %v4445_v45 }
 0x6d5   :  { %2799 = vmatpush.bf16.msra.mxu3 %v4701_v43 }
 0x6d7   :  { %2781 = vmatpush.bf16.msra.mxu2 %v4413_v8  ;;  %v4544_v8 = vld [vmem:[#allocation11 + $0x110] sm:$0xf] }
 0x6d9   :  { %2800 = vmatpush.bf16.msra.mxu3 %v4669_v47  ;;  %v5348_v47 = vld [vmem:[#allocation11 + $0x12c] sm:$0xf0] }
 0x6db   :  { %2850 = vmatpush.bf16.msrb.mxu2 %v4645_v51 }
 0x6dd   :  { %2869 = vmatpush.bf16.msrb.mxu3 %v4901_v41  ;;  %v4768_v41 = vld [vmem:[#allocation11 + $0x2d0] sm:$0xf] }
 0x732   :  { %v1815_v6 = vpop.xlane.xlu1 %1814 }
 0x733   :  { %v1821_v5 = vmul.f32 %v1815_v6, %v7463_v60  ;;  %v5387_v6 = vld [vmem:[#allocation11 + $0x264] sm:$0xf0] }
 0x735   :  { %v6604_v55 = vadd.f32 1e-06, %v1821_v5  ;;  %v4697_v5 = vor.u32 %v5387_v6, %v4696_v27  ;;  %v5360_v27 = vld [vmem:[#allocation11 + $0x194] sm:$0xf] }
 0x736   :  { %v4610_v6 = vld [vmem:[#allocation11 + $0x1b0] sm:$0xf0] }
 0x737   :  { %5567 = vrsqrt.f32 %v6604_v55  ;;  %2761 = vmatpush.bf16.msra.mxu1 %v4697_v5  ;;  %vm1853_vm8 = vweird.f32 %v6604_v55 }
 0x73a   :  { %v1818_v0 = vpop.xlane.xlu2 %1817 }
 0x73b   :  { %v1822_v18 = vmul.f32 %v1818_v0, %v7463_v60  ;;  %v4440_v60 = vld [vmem:[#allocation11 + $0x48] sm:$0xf]  ;;  %2762 = vmatpush.bf16.msra.mxu1 %v4665_v25 }
 0x73c   :  { %v4441_v34 = vor.u32 %v5323_v61, %v4440_v60  ;;  %v5428_v61 = vld [vmem:[#allocation11 + $0x3ac] sm:$0xf0] }
 0x73d   :  { %v6608_v57 = vpop.eup %5567  ;;  %v6610_v48 = vadd.f32 1e-06, %v1822_v18  ;;  %v5436_v18 = vld [vmem:[#allocation11 + $0x3ec] sm:$0xf0] }
 0x73e   :  { %v1848_v30 = vmul.f32 %v6608_v57, %v6604_v55  ;;  %2742 = vmatpush.bf16.msra.mxu0 %v4441_v34  ;;  %vm1854_vm7 = vweird.f32 %v6608_v57  ;;  %v4897_v15 = vor.u32 %v5436_v18, %v4896_v40  ;;  %v4608_v55 = vld [vmem:[#allocation11 + $0x190] sm:$0xf]  ;;  %v5424_v34 = vld [vmem:[#allocation11 + $0x394] sm:$0xf] }
 0x73f   :  { %5569 = vrsqrt.f32 %v6610_v48  ;;  %vm1855_vm10 = vmor %vm1853_vm8, %vm1854_vm7  ;;  %vm1863_vm11 = vweird.f32 %v6610_v48  ;;  %v4609_v35 = vor.u32 %v5364_v4, %v4608_v55  ;;  %v4869_v5 = vor.u32 %v5424_v34, %v4866_v36  ;;  %v5408_v18 = vld [vmem:[#allocation11 + $0x314] sm:$0xf]  ;;  %v5404_v4 = vld [vmem:[#allocation11 + $0x2ec] sm:$0xf0] }
 0x740   :  { %v1849_v24 = vmul.f32 %v6608_v57, %v1848_v30  ;;  %2831 = vmatpush.bf16.msrb.mxu1 %v4897_v15  ;;  %v4545_v15 = vor.u32 %v5348_v47, %v4544_v8  ;;  %v4805_v37 = vor.u32 %v5408_v18, %v4802_v62  ;;  %v4736_v34 = vld [vmem:[#allocation11 + $0x290] sm:$0xf] }
 0x741   :  { %2870 = vmatpush.bf16.msrb.mxu3 %v4869_v5  ;;  %v5396_v36 = vld [vmem:[#allocation11 + $0x2ac] sm:$0xf0]  ;;  %v5392_v5 = vld [vmem:[#allocation11 + $0x294] sm:$0xf] }
 0x742   :  { %v1850_v19 = vmul.f32 0.5, %v1849_v24  ;;  %2743 = vmatpush.bf16.msra.mxu0 %v4409_v63  ;;  %v4613_v24 = vor.u32 %v5360_v27, %v4610_v6  ;;  %v5416_v63 = vld [vmem:[#allocation11 + $0x354] sm:$0xf]  ;;  %v4480_v27 = vld [vmem:[#allocation11 + $0x90] sm:$0xf]  ;;  %v4741_v17 = vor.u32 %v5392_v5, %v4738_v42 }
 0x743   :  { %v4837_v25 = vor.u32 %v5416_v63, %v4834_v7  ;;  %v5332_v6 = vld [vmem:[#allocation11 + $0xac] sm:$0xf0]  ;;  %v4706_v63 = vld [vmem:[#allocation11 + $0x270] sm:$0xf0]  ;;  %v4874_v5 = vld [vmem:[#allocation11 + $0x3b8] sm:$0xf0] }
 0x744   :  { %v1851_v16 = vsub.f32 1.5, %v1850_v19  ;;  %2851 = vmatpush.bf16.msrb.mxu2 %v4613_v24  ;;  %v4482_v24 = vld [vmem:[#allocation11 + $0xb0] sm:$0xf0] }
 0x745   :  { %v5570_v13 = vpop.eup %5569  ;;  %2871 = vmatpush.bf16.msrb.mxu3 %v4837_v25  ;;  %v5316_v25 = vld [vmem:[#allocation11 + $0x2c] sm:$0xf0] }
 0x746   :  { %v1858_v9 = vmul.f32 %v5570_v13, %v6610_v48  ;;  %v1852_v0 = vmul.f32 %v6608_v57, %v1851_v16  ;;  %vm1864_vm9 = vweird.f32 %v5570_v13  ;;  %2812 = vmatpush.bf16.msrb.mxu0 %v4641_v53  ;;  %v4865_v48 = vor.u32 %v5428_v61, %v4864_v1  ;;  %v4546_v53 = vld [vmem:[#allocation11 + $0x130] sm:$0xf0] }
 0x747   :  { %vm6625_vm12 = vmor %vm1863_vm11, %vm1864_vm9  ;;  %v5336_v1 = vld [vmem:[#allocation11 + $0xd4] sm:$0xf] }
 0x748   :  { %v1859_v29 = vmul.f32 %v5570_v13, %v1858_v9  ;;  %v1856_v39 = vsel %vm1855_vm10, %v6608_v57, %v1852_v0  ;;  %v4576_v57 = vld [vmem:[#allocation11 + $0x150] sm:$0xf]  ;;  %2832 = vmatpush.bf16.msrb.mxu1 %v4865_v48  ;;  %2852 = vmatpush.bf16.msrb.mxu2 %v4581_v46  ;;  %v4770_v61 = vld [vmem:[#allocation11 + $0x2f0] sm:$0xf0] }
 0x749   :  { %v1871_v26 = vmul.f32 %v1856_v39, %v6587_v31  ;;  %v1872_v45 = vmul.f32 %v1856_v39, %v6589_v21  ;;  %v4577_v43 = vor.u32 %v5356_v50, %v4576_v57  ;;  %v4800_v9 = vld [vmem:[#allocation11 + $0x310] sm:$0xf]  ;;  %v4514_v39 = vld [vmem:[#allocation11 + $0xf0] sm:$0xf0]  ;;  %2872 = vmatpush.bf16.msrb.mxu3 %v4805_v37  ;;  %v4481_v57 = vor.u32 %v5332_v6, %v4480_v27  ;;  %v5429_v27 = vld [vmem:[#allocation11 + $0x3b4] sm:$0xf0] }
 0x74a   :  { %v1860_v22 = vmul.f32 0.5, %v1859_v29  ;;  %2813 = vmatpush.bf16.msrb.mxu0 %v4609_v35  ;;  %v5412_v0 = vld [vmem:[#allocation11 + $0x32c] sm:$0xf0]  ;;  %v5344_v29 = vld [vmem:[#allocation11 + $0x114] sm:$0xf]  ;;  %v4517_v30 = vor.u32 %v5336_v1, %v4514_v39  ;;  %v4737_v50 = vor.u32 %v5396_v36, %v4736_v34 }
 0x74b   :  { %v1884_v56 = vmul.f32 %v6569_v20, %v1871_v26  ;;  %v4801_v51 = vor.u32 %v5412_v0, %v4800_v9  ;;  %v4549_v38 = vor.u32 %v5344_v29, %v4546_v53  ;;  %v5400_v35 = vld [vmem:[#allocation11 + $0x2d4] sm:$0xf]  ;;  %v4448_v26 = vld [vmem:[#allocation11 + $0x50] sm:$0xf]  ;;  %v5433_v1 = vld [vmem:[#allocation11 + $0x3dc] sm:$0xf] }
 0x74c   :  { %v1861_v60 = vsub.f32 1.5, %v1860_v22  ;;  %2833 = vmatpush.bf16.msrb.mxu1 %v4833_v32  ;;  %v4773_v48 = vor.u32 %v5400_v35, %v4770_v61  ;;  %v4450_v32 = vld [vmem:[#allocation11 + $0x70] sm:$0xf0]  ;;  %v4672_v9 = vld [vmem:[#allocation11 + $0x210] sm:$0xf] }
 0x74d   :  { %2853 = vmatpush.bf16.msrb.mxu2 %v4549_v38  ;;  %v5384_v46 = vld [vmem:[#allocation11 + $0x254] sm:$0xf]  ;;  %v5380_v0 = vld [vmem:[#allocation11 + $0x22c] sm:$0xf0]  ;;  %v4904_v38 = vld [vmem:[#allocation11 + $0x3d8] sm:$0xf] }
 0x74e   :  { %v1862_v10 = vmul.f32 %v5570_v13, %v1861_v60  ;;  %2814 = vmatpush.bf16.msrb.mxu0 %v4577_v43  ;;  %v4769_v60 = vor.u32 %v5404_v4, %v4768_v41  ;;  %2873 = vmatpush.bf16.msrb.mxu3 %v4773_v48  ;;  %v4709_v47 = vor.u32 %v5384_v46, %v4706_v63  ;;  %v5312_v29 = vld [vmem:[#allocation11 + $0x14] sm:$0xf]  ;;  %v4650_v41 = vld [vmem:[#allocation11 + $0x1f8] sm:$0xf0]  ;;  %v5365_v35 = vld [vmem:[#allocation11 + $0x1b4] sm:$0xf0] }
 0x74f   :  { %v4673_v53 = vor.u32 %v5380_v0, %v4672_v9  ;;  %v4906_v39 = vld [vmem:[#allocation11 + $0x3f8] sm:$0xf0]  ;;  %v4872_v61 = vld [vmem:[#allocation11 + $0x398] sm:$0xf] }
 0x750   :  { %v1866_v19 = vsel %vm6625_vm12, %v5570_v13, %v1862_v10  ;;  %v1885_v13 = vmul.f32 %v6571_v12, %v1872_v45  ;;  %2834 = vmatpush.bf16.msrb.mxu1 %v4801_v51  ;;  %v5328_v10 = vld [vmem:[#allocation11 + $0x94] sm:$0xf]  ;;  %v5324_v45 = vld [vmem:[#allocation11 + $0x6c] sm:$0xf0]  ;;  %v5373_v51 = vld [vmem:[#allocation11 + $0x1f4] sm:$0xf0]  ;;  %v4873_v6 = vor.u32 %v5429_v27, %v4872_v61 }
 0x751   :  { %v1873_v3 = vmul.f32 %v1866_v19, %v6595_v58  ;;  %v1874_v16 = vmul.f32 %v1866_v19, %v6597_v49  ;;  %2854 = vmatpush.bf16.msrb.mxu2 %v4517_v30  ;;  %v4485_v43 = vor.u32 %v5328_v10, %v4482_v24  ;;  %v5320_v19 = vld [vmem:[#allocation11 + $0x54] sm:$0xf]  ;;  %v4449_v7 = vor.u32 %v5324_v45, %v4448_v26  ;;  %v5361_v34 = vld [vmem:[#allocation11 + $0x19c] sm:$0xf]  ;;  %v4840_v26 = vld [vmem:[#allocation11 + $0x358] sm:$0xf] }
 0x752   :  { %2815 = vmatpush.bf16.msrb.mxu0 %v4545_v15  ;;  %2874 = vmatpush.bf16.msrb.mxu3 %v4741_v17  ;;  %v4453_v8 = vor.u32 %v5320_v19, %v4450_v32  ;;  %v4648_v15 = vld [vmem:[#allocation11 + $0x1d8] sm:$0xf]  ;;  %v4909_v30 = vor.u32 %v5433_v1, %v4906_v39  ;;  %v4618_v36 = vld [vmem:[#allocation11 + $0x1b8] sm:$0xf0]  ;;  %v5112_v49 = vld [vmem:[#allocation13 + $0x170] sm:$0xf] }
 0x753   :  { %v1886_v2 = vmul.f32 %v6569_v20, %v1873_v3  ;;  %v1887_v40 = vmul.f32 %v6571_v12, %v1874_v16  ;;  %v4512_v20 = vld [vmem:[#allocation11 + $0xd0] sm:$0xf]  ;;  %v4705_v3 = vor.u32 %v5388_v11, %v4704_v14  ;;  %v4649_v37 = vor.u32 %v5373_v51, %v4648_v15  ;;  %v5425_v10 = vld [vmem:[#allocation11 + $0x39c] sm:$0xf]  ;;  %v5421_v45 = vld [vmem:[#allocation11 + $0x374] sm:$0xf0] }
 0x754   :  { %v5340_v12 = vld [vmem:[#allocation11 + $0xec] sm:$0xf0]  ;;  %2835 = vmatpush.bf16.msrb.mxu1 %v4769_v60  ;;  %v4616_v60 = vld [vmem:[#allocation11 + $0x198] sm:$0xf]  ;;  %v4621_v24 = vor.u32 %v5361_v34, %v4618_v36  ;;  %v4877_v42 = vor.u32 %v5425_v10, %v4874_v5  ;;  %v4586_v14 = vld [vmem:[#allocation11 + $0x178] sm:$0xf0]  ;;  %v4841_v32 = vor.u32 %v5421_v45, %v4840_v26 }
 0x755   :  { %v6639_v33 = vpack.c.bf16 %v1886_v2, %v1884_v56  ;;  %v6641_v22 = vpack.c.bf16 %v1887_v40, %v1885_v13  ;;  %v4513_v55 = vor.u32 %v5340_v12, %v4512_v20  ;;  %v4416_v16 = vld [vmem:[#allocation11 + $0x10] sm:$0xf]  ;;  %2855 = vmatpush.bf16.msrb.mxu2 %v4485_v43  ;;  %v4418_v56 = vld [vmem:[#allocation11 + $0x30] sm:$0xf0]  ;;  %v5437_v20 = vld [vmem:[#allocation11 + $0x3f4] sm:$0xf0]  ;;  %v4617_v48 = vor.u32 %v5365_v35, %v4616_v60 }
 0x756   :  { %v5376_v13 = vld [vmem:[#allocation11 + $0x214] sm:$0xf]  ;;  %v4417_v40 = vor.u32 %v5316_v25, %v4416_v16  ;;  %2875 = vmatpush.bf16.msrb.mxu3 %v4709_v47  ;;  %v4421_v18 = vor.u32 %v5312_v29, %v4418_v56  ;;  %v5369_v12 = vld [vmem:[#allocation11 + $0x1dc] sm:$0xf]  ;;  %v4808_v16 = vld [vmem:[#allocation11 + $0x318] sm:$0xf] }
 0x757   :  { %2673 = vmatmul.bf16.gmra.mxu0 %v6639_v33  ;;  %2692 = vmatmul.bf16.gmra.mxu1 %v6641_v22  ;;  %v4674_v2 = vld [vmem:[#allocation11 + $0x230] sm:$0xf0]  ;;  %v4653_v4 = vor.u32 %v5369_v12, %v4650_v41  ;;  %v5353_v43 = vld [vmem:[#allocation11 + $0x15c] sm:$0xf]  ;;  %v5413_v25 = vld [vmem:[#allocation11 + $0x334] sm:$0xf0] }
 0x758   :  { %2711 = vmatmul.bf16.gmra.mxu2 %v6639_v33  ;;  %2730 = vmatmul.bf16.gmra.mxu3 %v6641_v22  ;;  %v4677_v62 = vor.u32 %v5376_v13, %v4674_v2  ;;  %v5417_v11 = vld [vmem:[#allocation11 + $0x35c] sm:$0xf]  ;;  %v4589_v46 = vor.u32 %v5353_v43, %v4586_v14  ;;  %v4809_v56 = vor.u32 %v5413_v25, %v4808_v16  ;;  %v5405_v15 = vld [vmem:[#allocation11 + $0x2f4] sm:$0xf0] }
 0x759   :  { %2816 = vmatpush.bf16.msrb.mxu0 %v4513_v55  ;;  %2836 = vmatpush.bf16.msrb.mxu1 %v4737_v50  ;;  %v4905_v55 = vor.u32 %v5437_v20, %v4904_v38  ;;  %v5357_v50 = vld [vmem:[#allocation11 + $0x174] sm:$0xf0]  ;;  %v4842_v19 = vld [vmem:[#allocation11 + $0x378] sm:$0xf0] }
 0x75a   :  { %2856 = vmatpush.bf16.msrb.mxu2 %v4453_v8  ;;  %2876 = vmatpush.bf16.msrb.mxu3 %v4677_v62  ;;  %v4845_v63 = vor.u32 %v5417_v11, %v4842_v19  ;;  %v5345_v8 = vld [vmem:[#allocation11 + $0x11c] sm:$0xf]  ;;  %v5333_v1 = vld [vmem:[#allocation11 + $0xb4] sm:$0xf0] }
 0x75b   :  { %v4554_v47 = vld [vmem:[#allocation11 + $0x138] sm:$0xf0]  ;;  %v4744_v39 = vld [vmem:[#allocation11 + $0x298] sm:$0xf] }
 0x75c   :  { %v5409_v9 = vld [vmem:[#allocation11 + $0x31c] sm:$0xf]  ;;  %v4557_v13 = vor.u32 %v5345_v8, %v4554_v47  ;;  %v5397_v60 = vld [vmem:[#allocation11 + $0x2b4] sm:$0xf0] }
 0x75d   :  { %2817 = vmatpush.bf16.msrb.mxu0 %v4481_v57  ;;  %2837 = vmatpush.bf16.msrb.mxu1 %v4705_v3  ;;  %v4584_v57 = vld [vmem:[#allocation11 + $0x158] sm:$0xf]  ;;  %v4810_v0 = vld [vmem:[#allocation11 + $0x338] sm:$0xf0] }
 0x75e   :  { %2857 = vmatpush.bf16.msrb.mxu2 %v4421_v18  ;;  %v4585_v17 = vor.u32 %v5357_v50, %v4584_v57  ;;  %v5349_v3 = vld [vmem:[#allocation11 + $0x134] sm:$0xf0]  ;;  %v4813_v2 = vor.u32 %v5409_v9, %v4810_v0  ;;  %v5337_v51 = vld [vmem:[#allocation11 + $0xdc] sm:$0xf] }
 0x75f   :  { %v4776_v18 = vld [vmem:[#allocation11 + $0x2d8] sm:$0xf]  ;;  %v4522_v38 = vld [vmem:[#allocation11 + $0xf8] sm:$0xf0] }
 0x760   :  { %v4525_v20 = vor.u32 %v5337_v51, %v4522_v38  ;;  %v5401_v12 = vld [vmem:[#allocation11 + $0x2dc] sm:$0xf]  ;;  %v4456_v34 = vld [vmem:[#allocation11 + $0x58] sm:$0xf] }
 0x761   :  { %2818 = vmatpush.bf16.msrb.mxu0 %v4449_v7  ;;  %2838 = vmatpush.bf16.msrb.mxu1 %v4673_v53  ;;  %v4552_v7 = vld [vmem:[#allocation11 + $0x118] sm:$0xf]  ;;  %v4778_v41 = vld [vmem:[#allocation11 + $0x2f8] sm:$0xf0] }
 0x762   :  { %v4553_v29 = vor.u32 %v5349_v3, %v4552_v7  ;;  %v5341_v53 = vld [vmem:[#allocation11 + $0xf4] sm:$0xf0]  ;;  %v4490_v35 = vld [vmem:[#allocation11 + $0xb8] sm:$0xf0] }
 0x763   :  { %v5393_v61 = vld [vmem:[#allocation11 + $0x29c] sm:$0xf]  ;;  %v5325_v36 = vld [vmem:[#allocation11 + $0x74] sm:$0xf0] }
 0x764   :  { %v4712_v5 = vld [vmem:[#allocation11 + $0x258] sm:$0xf]  ;;  %v5321_v50 = vld [vmem:[#allocation11 + $0x5c] sm:$0xf]  ;;  %v4457_v43 = vor.u32 %v5325_v36, %v4456_v34  ;;  %v5451_v34 = vld [vmem:[#allocation13 + $0x64] sm:$0xf0] }
 0x765   :  { %2819 = vmatpush.bf16.msrb.mxu0 %v4417_v40  ;;  %v4520_v40 = vld [vmem:[#allocation11 + $0xd8] sm:$0xf]  ;;  %v5385_v26 = vld [vmem:[#allocation11 + $0x25c] sm:$0xf] }
 0x766   :  { %v4521_v62 = vor.u32 %v5341_v53, %v4520_v40  ;;  %v5389_v57 = vld [vmem:[#allocation11 + $0x274] sm:$0xf0]  ;;  %v4714_v45 = vld [vmem:[#allocation11 + $0x278] sm:$0xf0] }
 0x767   :  { %2744 = vmatmul.bf16.vlgmr.msra.gmra.mxu0 %v6579_v59  ;;  %2763 = vmatmul.bf16.vlgmr.msra.gmra.mxu1 %v6581_v23  ;;  %v4424_v14 = vld [vmem:[#allocation11 + $0x18] sm:$0xf]  ;;  %v5313_v7 = vld [vmem:[#allocation11 + $0x1c] sm:$0xf] }
 0x768   :  { %2782 = vmatmul.bf16.vlgmr.msra.gmra.mxu2 %v6579_v59  ;;  %2801 = vmatmul.bf16.vlgmr.msra.gmra.mxu3 %v6581_v23  ;;  %v5317_v11 = vld [vmem:[#allocation11 + $0x34] sm:$0xf0]  ;;  %v4426_v3 = vld [vmem:[#allocation11 + $0x38] sm:$0xf0] }
 0x769   :  { %2888 = vmatpush.bf16.msra.mxu0 %v4649_v37  ;;  %2907 = vmatpush.bf16.msra.mxu1 %v4905_v55  ;;  %v4777_v37 = vor.u32 %v5405_v15, %v4776_v18  ;;  %v4488_v55 = vld [vmem:[#allocation11 + $0x98] sm:$0xf]  ;;  %v5377_v16 = vld [vmem:[#allocation11 + $0x21c] sm:$0xf]  ;;  %v4425_v8 = vor.u32 %v5317_v11, %v4424_v14  ;;  %v4429_v9 = vor.u32 %v5313_v7, %v4426_v3 }
 0x76a   :  { %2926 = vmatpush.bf16.msra.mxu2 %v4653_v4  ;;  %2945 = vmatpush.bf16.msra.mxu3 %v4909_v30  ;;  %v4781_v4 = vor.u32 %v5401_v12, %v4778_v41  ;;  %v5329_v30 = vld [vmem:[#allocation11 + $0x9c] sm:$0xf]  ;;  %v4489_v27 = vor.u32 %v5333_v1, %v4488_v55  ;;  %v4984_v55 = vld [vmem:[#allocation13 + $0x70] sm:$0xf]  ;;  %v5485_v21 = vld [vmem:[#allocation13 + $0x174] sm:$0xf0] }
 0x76b   :  { %v4493_v10 = vor.u32 %v5329_v30, %v4490_v35  ;;  %v4682_v25 = vld [vmem:[#allocation11 + $0x238] sm:$0xf0]  ;;  %v5113_v28 = vor.u32 %v5485_v21, %v5112_v49 }
 0x76c   :  { %v4685_v0 = vor.u32 %v5377_v16, %v4682_v25  ;;  %v5040_v25 = vld [vmem:[#allocation13 + $0xe0] sm:$0xf] }
 0x76d   :  { %2889 = vmatpush.bf16.msra.mxu0 %v4617_v48  ;;  %2908 = vmatpush.bf16.msra.mxu1 %v4873_v6  ;;  %v4745_v48 = vor.u32 %v5397_v60, %v4744_v39  ;;  %v4746_v6 = vld [vmem:[#allocation11 + $0x2b8] sm:$0xf0] }
 0x76e   :  { %2927 = vmatpush.bf16.msra.mxu2 %v4621_v24  ;;  %2946 = vmatpush.bf16.msra.mxu3 %v4877_v42  ;;  %v4749_v24 = vor.u32 %v5393_v61, %v4746_v6  ;;  %v4458_v42 = vld [vmem:[#allocation11 + $0x78] sm:$0xf0]  ;;  %v4976_v6 = vld [vmem:[#allocation13 + $0x60] sm:$0xf] }
 0x76f   :  { %v4461_v19 = vor.u32 %v5321_v50, %v4458_v42  ;;  %v5048_v50 = vld [vmem:[#allocation13 + $0xf0] sm:$0xf]  ;;  %v5469_v42 = vld [vmem:[#allocation13 + $0xf4] sm:$0xf0] }
 0x771   :  { %2890 = vmatpush.bf16.msra.mxu0 %v4585_v17  ;;  %2909 = vmatpush.bf16.msra.mxu1 %v4841_v32  ;;  %v4713_v17 = vor.u32 %v5389_v57, %v4712_v5  ;;  %v4717_v32 = vor.u32 %v5385_v26, %v4714_v45  ;;  %v5049_v45 = vor.u32 %v5469_v42, %v5048_v50 }
 0x772   :  { %2928 = vmatpush.bf16.msra.mxu2 %v4589_v46  ;;  %2947 = vmatpush.bf16.msra.mxu3 %v4845_v63  ;;  %v4680_v46 = vld [vmem:[#allocation11 + $0x218] sm:$0xf] }
 0x773   :  { %v5381_v63 = vld [vmem:[#allocation11 + $0x234] sm:$0xf0] }
 0x774   :  { %v4681_v47 = vor.u32 %v5381_v63, %v4680_v46  ;;  %v5449_v46 = vld [vmem:[#allocation13 + $0x54] sm:$0xf0] }
 0x775   :  { %2891 = vmatpush.bf16.msra.mxu0 %v4553_v29  ;;  %2910 = vmatpush.bf16.msra.mxu1 %v4809_v56  ;;  %v2669_v29 = vpop.f32.mrf.mxu0  ;;  %v2688_v56 = vpop.f32.mrf.mxu1 }
 0x776   :  { %2929 = vmatpush.bf16.msra.mxu2 %v4557_v13  ;;  %2948 = vmatpush.bf16.msra.mxu3 %v4813_v2  ;;  %v2707_v13 = vpop.f32.mrf.mxu2  ;;  %v2726_v2 = vpop.f32.mrf.mxu3 }
 0x777   :  { %2749 = vmatmul.bf16.gmra.mxu0 %v6639_v33  ;;  %2768 = vmatmul.bf16.gmra.mxu1 %v6641_v22  ;;  %v6671_v40 = vadd.f32 %v2726_v2, %v2707_v13  ;;  %v5447_v13 = vld [vmem:[#allocation13 + $0x44] sm:$0xf0] }
 0x778   :  { %2787 = vmatmul.bf16.gmra.mxu2 %v6639_v33  ;;  %2806 = vmatmul.bf16.gmra.mxu3 %v6641_v22 }
 0x779   :  { %2892 = vmatpush.bf16.msra.mxu0 %v4521_v62  ;;  %2911 = vmatpush.bf16.msra.mxu1 %v4777_v37  ;;  %v6673_v62 = vadd.f32 %v2688_v56, %v2669_v29  ;;  %v4911_v15 = vmul.f32 -1.442695, %v6671_v40  ;;  %v4960_v56 = vld [vmem:[#allocation13 + $0x40] sm:$0xf] }
 0x77a   :  { %2930 = vmatpush.bf16.msra.mxu2 %v4525_v20  ;;  %2949 = vmatpush.bf16.msra.mxu3 %v4781_v4  ;;  %v5453_v4 = vld [vmem:[#allocation13 + $0x74] sm:$0xf0] }
 0x77b   :  { %5571 = vpow2.f32 %v4911_v15  ;;  %v4985_v60 = vor.u32 %v5453_v4, %v4984_v55  ;;  %v5032_v15 = vld [vmem:[#allocation13 + $0xd0] sm:$0xf]  ;;  %v5445_v55 = vld [vmem:[#allocation13 + $0x34] sm:$0xf0] }
 0x77d   :  { %2893 = vmatpush.bf16.msra.mxu0 %v4489_v27  ;;  %2912 = vmatpush.bf16.msra.mxu1 %v4745_v48  ;;  %v2671_v53 = vpop.f32.mrf.mxu0  ;;  %v2690_v18 = vpop.f32.mrf.mxu1 }
 0x77e   :  { %2931 = vmatpush.bf16.msra.mxu2 %v4493_v10  ;;  %2950 = vmatpush.bf16.msra.mxu3 %v4749_v24  ;;  %v6676_v51 = vadd.f32 %v2690_v18, %v2671_v53  ;;  %v4977_v10 = vor.u32 %v5451_v34, %v4976_v6 }
 0x780   :  { %v4914_v20 = vmul.f32 -1.442695, %v6676_v51 }
 0x781   :  { %2894 = vmatpush.bf16.msra.mxu0 %v4457_v43  ;;  %2913 = vmatpush.bf16.msra.mxu1 %v4713_v17  ;;  %v5572_v41 = vpop.eup %5571 }
 0x782   :  { %2932 = vmatpush.bf16.msra.mxu2 %v4461_v19  ;;  %2951 = vmatpush.bf16.msra.mxu3 %v4717_v32  ;;  %v6683_v27 = vadd.f32 1.0, %v5572_v41  ;;  %v4968_v32 = vld [vmem:[#allocation13 + $0x50] sm:$0xf]  ;;  %v4961_v41 = vor.u32 %v5447_v13, %v4960_v56 }
 0x783   :  { %v4969_v16 = vor.u32 %v5449_v46, %v4968_v32 }
 0x784   :  { %v3054_v50 = vand.u32 2147483648, %v6683_v27  ;;  %vm3048_vm15 = vweird.f32 %v6683_v27 }
 0x785   :  { %2895 = vmatpush.bf16.msra.mxu0 %v4425_v8  ;;  %2914 = vmatpush.bf16.msra.mxu1 %v4681_v47  ;;  %v5467_v8 = vld [vmem:[#allocation13 + $0xe4] sm:$0xf0] }
 0x786   :  { %2933 = vmatpush.bf16.msra.mxu2 %v4429_v9  ;;  %2952 = vmatpush.bf16.msra.mxu3 %v4685_v0  ;;  %v5041_v47 = vor.u32 %v5467_v8, %v5040_v25 }
 0x787   :  { %2820 = vmatmul.bf16.vlgmr.msrb.gmra.mxu0 %v6579_v59  ;;  %2839 = vmatmul.bf16.vlgmr.msrb.gmra.mxu1 %v6581_v23 }
 0x788   :  { %2858 = vmatmul.bf16.vlgmr.msrb.gmra.mxu2 %v6579_v59  ;;  %2877 = vmatmul.bf16.vlgmr.msrb.gmra.mxu3 %v6581_v23 }
 0x789   :  { %3692 = vmatpush.bf16.msrb.mxu0 %v4985_v60  ;;  %3711 = vmatpush.bf16.msrb.mxu1 %v5049_v45  ;;  %v5024_v60 = vld [vmem:[#allocation13 + $0xc0] sm:$0xf] }
 0x78a   :  { %3730 = vmatpush.bf16.msrb.mxu2 %v5113_v28 }
 0x78d   :  { %3693 = vmatpush.bf16.msrb.mxu0 %v4977_v10  ;;  %3712 = vmatpush.bf16.msrb.mxu1 %v5041_v47  ;;  %v3055_v47 = vor.u32 1.1754944e-38, %v3054_v50 }
 0x791   :  { %3694 = vmatpush.bf16.msrb.mxu0 %v4969_v16 }
 0x795   :  { %3695 = vmatpush.bf16.msrb.mxu0 %v4961_v41 }
 0x797   :  { %2825 = vmatmul.bf16.gmra.mxu0 %v6639_v33  ;;  %2844 = vmatmul.bf16.gmra.mxu1 %v6641_v22 }
 0x798   :  { %2863 = vmatmul.bf16.gmra.mxu2 %v6639_v33  ;;  %2882 = vmatmul.bf16.gmra.mxu3 %v6641_v22 }
 0x7a7   :  { %2896 = vmatmul.bf16.vlgmr.msra.gmra.mxu0 %v6579_v59  ;;  %2915 = vmatmul.bf16.vlgmr.msra.gmra.mxu1 %v6581_v23 }
 0x7a8   :  { %2934 = vmatmul.bf16.vlgmr.msra.gmra.mxu2 %v6579_v59  ;;  %2953 = vmatmul.bf16.vlgmr.msra.gmra.mxu3 %v6581_v23  ;;  %v2709_v59 = vpop.f32.mrf.mxu2  ;;  %v2728_v23 = vpop.f32.mrf.mxu3 }
 0x7a9   :  { %v6678_v38 = vadd.f32 %v2728_v23, %v2709_v59 }
 0x7ab   :  { %v4915_v12 = vmul.f32 -1.442695, %v6678_v38 }
 0x7b7   :  { %2901 = vmatmul.bf16.gmra.mxu0 %v6639_v33  ;;  %2920 = vmatmul.bf16.gmra.mxu1 %v6641_v22 }
 0x7b8   :  { %2939 = vmatmul.bf16.gmra.mxu2 %v6639_v33  ;;  %2958 = vmatmul.bf16.gmra.mxu3 %v6641_v22  ;;  %v4910_v33 = vmul.f32 -1.442695, %v6673_v62 }
 0x7ba   :  { %5573 = vpow2.f32 %v4910_v33  ;;  %v5465_v33 = vld [vmem:[#allocation13 + $0xd4] sm:$0xf0] }
 0x7bb   :  { %5575 = vpow2.f32 %v4914_v20  ;;  %v5033_v34 = vor.u32 %v5465_v33, %v5032_v15 }
 0x7bc   :  { %5577 = vpow2.f32 %v4915_v12 }
 0x7bd   :  { %5579 = vrcp.f32 %v6683_v27  ;;  %3713 = vmatpush.bf16.msrb.mxu1 %v5033_v34 }
 0x7c0   :  { %v5574_v61 = vpop.eup %5573 }
 0x7c1   :  { %v5576_v36 = vpop.eup %5575  ;;  %v6687_v5 = vadd.f32 1.0, %v5574_v61 }
 0x7c2   :  { %v5578_v24 = vpop.eup %5577  ;;  %v6693_v43 = vadd.f32 1.0, %v5576_v36 }
 0x7c3   :  { %v6695_v17 = vadd.f32 1.0, %v5578_v24  ;;  %5581 = vrcp.f32 %v6687_v5  ;;  %v6706_v9 = vpop.eup %5579  ;;  %v3052_v24 = vand.u32 2147483647, %v6683_v27  ;;  %v3039_v32 = vand.u32 2147483648, %v6687_v5 }
 0x7c4   :  { %v3044_v53 = vmul.f32 %v6706_v9, %v6683_v27  ;;  %vm3033_vm13 = vweird.f32 %v6687_v5  ;;  %vm3049_vm14 = vweird.f32 %v6706_v9  ;;  %vm3093_vm4 = vweird.f32 %v6693_v43 }
 0x7c5   :  { %vm6750_vm0 = vcmp.eq.f32.partialorder %v3052_v24, 8.507059e+37  ;;  %vm3108_vm3 = vweird.f32 %v6695_v17  ;;  %v3114_v34 = vand.u32 2147483648, %v6695_v17  ;;  %vm6779_vm5 = vmor %vm3048_vm15, %vm3049_vm14  ;;  %v3099_v27 = vand.u32 2147483648, %v6693_v43 }
 0x7c6   :  { %v3045_v61 = vsub.f32 1.0, %v3044_v53  ;;  %v4944_v53 = vld [vmem:[#allocation13 + $0x20] sm:$0xf] }
 0x7c8   :  { %v3046_v46 = vmul.f32 %v6706_v9, %v3045_v61  ;;  %v3112_v61 = vand.u32 2147483647, %v6695_v17 }
 0x7c9   :  { %v6712_v2 = vpop.eup %5581 }
 0x7ca   :  { %vm3034_vm1 = vweird.f32 %v6712_v2  ;;  %vm6816_vm9 = vcmp.eq.f32.partialorder %v3112_v61, 8.507059e+37  ;;  %v3100_v61 = vor.u32 1.1754944e-38, %v3099_v27 }
 0x7cb   :  { %vm6811_vm7 = vmor %vm3033_vm13, %vm3034_vm1 }
 0x7d4   :  { %v2674_v22 = vpop.f32.mrf.mxu0  ;;  %v2693_v37 = vpop.f32.mrf.mxu1 }
 0x7d5   :  { %v6685_v48 = vadd.f32 %v2693_v37, %v2674_v22  ;;  %v4952_v22 = vld [vmem:[#allocation13 + $0x30] sm:$0xf] }
 0x7d6   :  { %v4953_v36 = vor.u32 %v5445_v55, %v4952_v22  ;;  %v3040_v55 = vor.u32 1.1754944e-38, %v3039_v32 }
 0x7d7   :  { %v4918_v26 = vmul.f32 -1.442695, %v6685_v48 }
 0x7d8   :  { %3696 = vmatpush.bf16.msrb.mxu0 %v4953_v36 }
 0x7d9   :  { %5583 = vpow2.f32 %v4918_v26 }
 0x7da   :  { %5585 = vrcp.f32 %v6693_v43 }
 0x7db   :  { %v2712_v1 = vpop.f32.mrf.mxu2  ;;  %v2731_v39 = vpop.f32.mrf.mxu3  ;;  %5587 = vrcp.f32 %v6695_v17 }
 0x7dc   :  { %v2676_v30 = vpop.f32.mrf.mxu0  ;;  %v2695_v35 = vpop.f32.mrf.mxu1  ;;  %v6689_v57 = vadd.f32 %v2731_v39, %v2712_v1  ;;  %v3029_v1 = vmul.f32 %v6712_v2, %v6687_v5 }
 0x7dd   :  { %v6697_v14 = vadd.f32 %v2695_v35, %v2676_v30  ;;  %v5463_v30 = vld [vmem:[#allocation13 + $0xc4] sm:$0xf0] }
 0x7de   :  { %v4919_v63 = vmul.f32 -1.442695, %v6689_v57  ;;  %v5025_v42 = vor.u32 %v5463_v30, %v5024_v60  ;;  %v3030_v45 = vsub.f32 1.0, %v3029_v1  ;;  %v3047_v1 = vadd.f32 %v6706_v9, %v3046_v46 }
 0x7df   :  { %v4922_v0 = vmul.f32 -1.442695, %v6697_v14  ;;  %v5584_v18 = vpop.eup %5583 }
 0x7e0   :  { %5589 = vpow2.f32 %v4919_v63  ;;  %v6720_v37 = vpop.eup %5585  ;;  %v6727_v6 = vadd.f32 1.0, %v5584_v18  ;;  %v3037_v63 = vand.u32 2147483647, %v6687_v5  ;;  %3714 = vmatpush.bf16.msrb.mxu1 %v5025_v42  ;;  %v5443_v18 = vld [vmem:[#allocation13 + $0x24] sm:$0xf0]  ;;  %v3031_v15 = vmul.f32 %v6712_v2, %v3030_v45 }
 0x7e1   :  { %5591 = vpow2.f32 %v4922_v0  ;;  %v6722_v4 = vpop.eup %5587  ;;  %v3089_v10 = vmul.f32 %v6720_v37, %v6693_v43  ;;  %v3051_v50 = vsel %vm6779_vm5, %v6706_v9, %v3047_v1  ;;  %v3097_v42 = vand.u32 2147483647, %v6693_v43  ;;  %v5461_v1 = vld [vmem:[#allocation13 + $0xb4] sm:$0xf0] }
 0x7e2   :  { %vm6762_vm2 = vcmp.eq.f32.partialorder %v3037_v63, 8.507059e+37  ;;  %v3032_v36 = vadd.f32 %v6712_v2, %v3031_v15  ;;  %vm3094_vm6 = vweird.f32 %v6720_v37  ;;  %vm3109_vm8 = vweird.f32 %v6722_v4 }
 0x7e3   :  { %v2714_v11 = vpop.f32.mrf.mxu2  ;;  %v2733_v19 = vpop.f32.mrf.mxu3  ;;  %v3090_v16 = vsub.f32 1.0, %v3089_v10  ;;  %vm6839_vm10 = vmor %vm3093_vm4, %vm3094_vm6  ;;  %v5441_v10 = vld [vmem:[#allocation13 + $0x14] sm:$0xf0]  ;;  %vm3098_vm12 = vcmp.eq.f32.partialorder %v3097_v42, 8.507059e+37  ;;  %vm3153_vm13 = vweird.f32 %v6727_v6 }
 0x7e4   :  { %v6701_v7 = vpop.f32.mrf.mxu0  ;;  %v6703_v3 = vpop.f32.mrf.mxu1  ;;  %v6710_v29 = vadd.f32 %v2733_v19, %v2714_v11  ;;  %v3104_v11 = vmul.f32 %v6722_v4, %v6695_v17  ;;  %v3036_v5 = vsel %vm6811_vm7, %v6712_v2, %v3032_v36  ;;  %v4936_v36 = vld [vmem:[#allocation13 + $0x10] sm:$0xf]  ;;  %vm6855_vm11 = vmor %vm3108_vm3, %vm3109_vm8 }
 0x7e5   :  { %v6757_v41 = vadd.f32 %v6703_v3, %v6701_v7  ;;  %v3091_v30 = vmul.f32 %v6720_v37, %v3090_v16  ;;  %v4945_v7 = vor.u32 %v5443_v18, %v4944_v53  ;;  %v3115_v16 = vor.u32 1.1754944e-38, %v3114_v34 }
 0x7e6   :  { %v4923_v39 = vmul.f32 -1.442695, %v6710_v29  ;;  %v5590_v35 = vpop.eup %5589  ;;  %v3105_v22 = vsub.f32 1.0, %v3104_v11  ;;  %v3041_v43 = vsel %vm6762_vm2, %v3040_v55, %v3036_v5 }
 0x7e7   :  { %v5592_v26 = vpop.eup %5591  ;;  %v6735_v19 = vadd.f32 1.0, %v5590_v35  ;;  %3697 = vmatpush.bf16.msrb.mxu0 %v4945_v7  ;;  %v3092_v11 = vadd.f32 %v6720_v37, %v3091_v30  ;;  %v6870_v46 = vmul.f32 %v3041_v43, %v6673_v62 }
 0x7e8   :  { %5593 = vpow2.f32 %v4923_v39  ;;  %v6743_v0 = vadd.f32 1.0, %v5592_v26 }
 0x7e9   :  { %5595 = vrcp.f32 %v6727_v6  ;;  %v3096_v34 = vsel %vm6839_vm10, %v6720_v37, %v3092_v11  ;;  %v5459_v37 = vld [vmem:[#allocation13 + $0xa4] sm:$0xf0]  ;;  %v3159_v11 = vand.u32 2147483648, %v6727_v6  ;;  %vm3168_vm1 = vweird.f32 %v6735_v19 }
 0x7ea   :  { %5597 = vrcp.f32 %v6735_v19  ;;  %v3101_v60 = vsel %vm3098_vm12, %v3100_v61, %v3096_v34  ;;  %vm3213_vm2 = vweird.f32 %v6743_v0 }
 0x7eb   :  { %v6716_v59 = vpop.f32.mrf.mxu2  ;;  %v6718_v23 = vpop.f32.mrf.mxu3  ;;  %5599 = vrcp.f32 %v6743_v0  ;;  %v6890_v63 = vor.u32 1.1754944e-38, %v3159_v11 }
 0x7ec   :  { %v2747_v20 = vpop.f32.mrf.mxu0  ;;  %v2766_v12 = vpop.f32.mrf.mxu1  ;;  %v6787_v24 = vadd.f32 %v6718_v23, %v6716_v59 }
 0x7ed   :  { %v6768_v35 = vadd.f32 %v2766_v12, %v2747_v20  ;;  %v3106_v20 = vmul.f32 %v6722_v4, %v3105_v22  ;;  %v4912_v12 = vmul.f32 -1.442695, %v6757_v41  ;;  %v5016_v22 = vld [vmem:[#allocation13 + $0xb0] sm:$0xf] }
 0x7ee   :  { %v5594_v39 = vpop.eup %5593  ;;  %v4913_v30 = vmul.f32 -1.442695, %v6787_v24 }
 0x7ef   :  { %v6770_v3 = vpop.eup %5595  ;;  %v6794_v26 = vadd.f32 1.0, %v5594_v39  ;;  %v4916_v23 = vmul.f32 -1.442695, %v6768_v35  ;;  %v3107_v39 = vadd.f32 %v6722_v4, %v3106_v20  ;;  %5601 = vpow2.f32 %v4912_v12 }
 0x7f0   :  { %v6796_v45 = vpop.eup %5597  ;;  %v3149_v59 = vmul.f32 %v6770_v3, %v6727_v6  ;;  %vm3154_vm15 = vweird.f32 %v6770_v3 }
 0x7f1   :  { %v6831_v7 = vpop.eup %5599  ;;  %v3164_v2 = vmul.f32 %v6796_v45, %v6735_v19  ;;  %5603 = vrcp.f32 %v6794_v26  ;;  %v3111_v27 = vsel %vm6855_vm11, %v6722_v4, %v3107_v39  ;;  %vm3169_vm14 = vweird.f32 %v6796_v45  ;;  %vm6926_vm3 = vmor %vm3153_vm13, %vm3154_vm15 }
 0x7f2   :  { %v3150_v33 = vsub.f32 1.0, %v3149_v59  ;;  %5605 = vpow2.f32 %v4916_v23  ;;  %v3209_v55 = vmul.f32 %v6831_v7, %v6743_v0  ;;  %vm3214_vm5 = vweird.f32 %v6831_v7  ;;  %vm6958_vm6 = vmor %vm3168_vm1, %vm3169_vm14 }
 0x7f3   :  { %v2785_v25 = vpop.f32.mrf.mxu2  ;;  %v2804_v8 = vpop.f32.mrf.mxu3  ;;  %5607 = vpow2.f32 %v4913_v30  ;;  %v3165_v59 = vsub.f32 1.0, %v3164_v2  ;;  %v3157_v30 = vand.u32 2147483647, %v6727_v6  ;;  %v6886_v2 = vmul.f32 %v3101_v60, %v6676_v51  ;;  %v5439_v60 = vld [vmem:[#allocation13 + $0x4] sm:$0xf0]  ;;  %vm7001_vm8 = vmor %vm3213_vm2, %vm3214_vm5 }
 0x7f4   :  { %v6745_v56 = vpop.f32.mrf.mxu0  ;;  %v6747_v13 = vpop.f32.mrf.mxu1  ;;  %v6820_v53 = vadd.f32 %v2804_v8, %v2785_v25  ;;  %v3056_v25 = vsel %vm6750_vm0, %v3055_v47, %v3051_v50  ;;  %v5017_v47 = vor.u32 %v5461_v1, %v5016_v22  ;;  %v5008_v50 = vld [vmem:[#allocation13 + $0xa0] sm:$0xf]  ;;  %v3151_v42 = vmul.f32 %v6770_v3, %v3150_v33  ;;  %v5457_v6 = vld [vmem:[#allocation13 + $0x94] sm:$0xf0] }
 0x7f5   :  { %v6866_v17 = vmul.f32 %v3056_v25, %v6671_v40  ;;  %v5602_v23 = vpop.eup %5601  ;;  %v4937_v1 = vor.u32 %v5441_v10, %v4936_v36  ;;  %v5009_v5 = vor.u32 %v5459_v37, %v5008_v50  ;;  %v6881_v40 = vsel %vm6816_vm9, %v3115_v16, %v3111_v27 }
 0x7f6   :  { %v4917_v12 = vmul.f32 -1.442695, %v6820_v53  ;;  %3715 = vmatpush.bf16.msrb.mxu1 %v5017_v47  ;;  %v3174_v25 = vand.u32 2147483648, %v6735_v19  ;;  %v3210_v34 = vsub.f32 1.0, %v3209_v55  ;;  %v3219_v33 = vand.u32 2147483648, %v6743_v0 }
 0x7f7   :  { %v6877_v39 = vpop.eup %5603  ;;  %3698 = vmatpush.bf16.msrb.mxu0 %v4937_v1  ;;  %v3166_v16 = vmul.f32 %v6796_v45, %v3165_v59  ;;  %v3172_v47 = vand.u32 2147483647, %v6735_v19  ;;  %v6894_v36 = vadd.f32 1.0, %v5602_v23  ;;  %v6897_v43 = vadd.f32 %v6770_v3, %v3151_v42  ;;  %v4928_v55 = vld [vmem:[#allocation13] sm:$0xf] }
 0x7f8   :  { %5609 = vpow2.f32 %v4917_v12  ;;  %v5606_v61 = vpop.eup %5605  ;;  %v3217_v51 = vand.u32 2147483647, %v6743_v0  ;;  %v3224_v20 = vmul.f32 %v6877_v39, %v6794_v26  ;;  %vm6903_vm0 = vcmp.eq.f32.partialorder %v3157_v30, 8.507059e+37  ;;  %v5042_v0 = vld [vmem:[#allocation13 + $0xe8] sm:$0xf0] }
 0x7f9   :  { %v5608_v10 = vpop.eup %5607  ;;  %v6908_v50 = vor.u32 1.1754944e-38, %v3174_v25  ;;  %v6910_v37 = vadd.f32 1.0, %v5606_v61  ;;  %v6914_v27 = vadd.f32 %v6747_v13, %v6745_v56  ;;  %v3211_v11 = vmul.f32 %v6831_v7, %v3210_v34  ;;  %v5000_v25 = vld [vmem:[#allocation13 + $0x90] sm:$0xf] }
 0x7fa   :  { %3716 = vmatpush.bf16.msrb.mxu1 %v5009_v5  ;;  %v6919_v59 = vor.u32 1.1754944e-38, %v3219_v33  ;;  %v3232_v23 = vand.u32 2147483647, %v6794_v26  ;;  %v3167_v13 = vadd.f32 %v6796_v45, %v3166_v16  ;;  %vm6931_vm4 = vcmp.eq.f32.partialorder %v3172_v47, 8.507059e+37 }
 0x7fb   :  { %v6803_v32 = vpop.f32.mrf.mxu2  ;;  %v6805_v9 = vpop.f32.mrf.mxu3  ;;  %7486 = vst [vmem:[#allocation35_spill] sm:$0xff] %v6914_v27  ;;  %5611 = vrcp.f32 %v6894_v36  ;;  %v6936_v5 = vadd.f32 1.0, %v5608_v10  ;;  %v3156_v61 = vsel %vm6926_vm3, %v6770_v3, %v6897_v43  ;;  %v3225_v34 = vsub.f32 1.0, %v3224_v20  ;;  %v5452_v3 = vld [vmem:[#allocation13 + $0x74] sm:$0xf] }
 0x7fc   :  { %v6822_v18 = vpop.f32.mrf.mxu0  ;;  %v6824_v15 = vpop.f32.mrf.mxu1  ;;  %v3234_v33 = vand.u32 2147483648, %v6794_v26  ;;  %v4929_v10 = vor.u32 %v5439_v60, %v4928_v55  ;;  %5613 = vrcp.f32 %v6910_v37  ;;  %v4986_v43 = vld [vmem:[#allocation13 + $0x78] sm:$0xf0]  ;;  %v3212_v55 = vadd.f32 %v6831_v7, %v3211_v11 }
 0x7fd   :  { %v6940_v30 = vadd.f32 %v6824_v15, %v6822_v18  ;;  %v4920_v18 = vmul.f32 -1.442695, %v6914_v27  ;;  %vm6963_vm7 = vcmp.eq.f32.partialorder %v3217_v51, 8.507059e+37  ;;  %v3171_v19 = vsel %vm6958_vm6, %v6796_v45, %v3167_v13 }
 0x7fe   :  { %v5610_v42 = vpop.eup %5609  ;;  %3699 = vmatpush.bf16.msrb.mxu0 %v4929_v10  ;;  %5615 = vrcp.f32 %v6936_v5  ;;  %v3084_v58 = vand.u32 2147483648, %v6936_v5  ;;  %v5001_v31 = vor.u32 %v5457_v6, %v5000_v25  ;;  %v4989_v44 = vor.u32 %v5452_v3, %v4986_v43  ;;  %v4992_v25 = vld [vmem:[#allocation13 + $0x80] sm:$0xf]  ;;  %v5450_v3 = vld [vmem:[#allocation13 + $0x64] sm:$0xf] }
 0x7ff   :  { %v4924_v11 = vmul.f32 -1.442695, %v6940_v30  ;;  %5617 = vpow2.f32 %v4920_v18  ;;  %v3161_v13 = vsel %vm6903_vm0, %v6890_v63, %v3156_v61  ;;  %v6988_v10 = vor.u32 1.1754944e-38, %v3234_v33  ;;  %v5455_v33 = vld [vmem:[#allocation13 + $0x84] sm:$0xf0] }
 0x800   :  { %3717 = vmatpush.bf16.msrb.mxu1 %v5001_v31  ;;  %vm3229_vm9 = vweird.f32 %v6877_v39  ;;  %v3176_v28 = vsel %vm6931_vm4, %v6908_v50, %v3171_v19  ;;  %v3216_v31 = vsel %vm7001_vm8, %v6831_v7, %v3212_v55  ;;  %vm7015_vm10 = vcmp.eq.f32.partialorder %v3232_v23, 8.507059e+37  ;;  %v4978_v43 = vld [vmem:[#allocation13 + $0x68] sm:$0xf0] }
 0x801   :  { %v6977_v27 = vpop.eup %5611  ;;  %v7027_v50 = vor.u32 1.1754944e-38, %v3084_v58  ;;  %v3273_v6 = vmul.f32 %v6881_v40, %v6678_v38  ;;  %vm3228_vm11 = vweird.f32 %v6794_v26  ;;  %v5104_v58 = vld [vmem:[#allocation13 + $0x160] sm:$0xf]  ;;  %v3221_v38 = vsel %vm6963_vm7, %v6919_v59, %v3216_v31  ;;  %v5483_v40 = vld [vmem:[#allocation13 + $0x164] sm:$0xf0] }
 0x802   :  { %v6995_v21 = vpop.eup %5613  ;;  %3768 = vmatpush.bf16.msra.mxu0 %v4989_v44  ;;  %vm7052_vm12 = vmor %vm3228_vm11, %vm3229_vm9  ;;  %v3127_v59 = vand.u32 2147483647, %v6910_v37  ;;  %v4993_v19 = vor.u32 %v5455_v33, %v4992_v25  ;;  %vm3063_vm13 = vweird.f32 %v6894_v36  ;;  %v5096_v33 = vld [vmem:[#allocation13 + $0x150] sm:$0xf]  ;;  %vm3064_vm15 = vweird.f32 %v6977_v27 }
 0x803   :  { %v6873_v22 = vpop.f32.mrf.mxu2  ;;  %v6875_v4 = vpop.f32.mrf.mxu3  ;;  %v3119_v61 = vmul.f32 %v6995_v21, %v6910_v37  ;;  %vm3123_vm0 = vweird.f32 %v6910_v37  ;;  %vm3078_vm2 = vweird.f32 %v6936_v5  ;;  %vm3124_vm3 = vweird.f32 %v6995_v21  ;;  %vm7125_vm4 = vmor %vm3063_vm13, %vm3064_vm15 }
 0x804   :  { %v2821_v62 = vpop.f32.mrf.mxu0  ;;  %v2840_v8 = vpop.f32.mrf.mxu1  ;;  %3718 = vmatpush.bf16.msrb.mxu1 %v4993_v19  ;;  %vm7161_vm6 = vmor %vm3123_vm0, %vm3124_vm3  ;;  %vm3128_vm9 = vcmp.eq.f32.partialorder %v3127_v59, 8.507059e+37  ;;  %v5440_v59 = vld [vmem:[#allocation13 + $0x14] sm:$0xf] }
 0x805   :  { %v2841_v15 = vadd.f32 %v2840_v8, %v2821_v62  ;;  %v3069_v62 = vand.u32 2147483648, %v6894_v36  ;;  %v6968_v8 = vadd.f32 1.0, %v5610_v42  ;;  %v6982_v42 = vadd.f32 %v6875_v4, %v6873_v22  ;;  %v7022_v44 = vpop.eup %5615 }
 0x806   :  { %v5618_v18 = vpop.eup %5617  ;;  %v7058_v55 = vmul.f32 %v7022_v44, %v6936_v5  ;;  %vm3079_vm1 = vweird.f32 %v7022_v44 }
 0x807   :  { %v3284_v45 = vmul.f32 %v6870_v46, %v2841_v15  ;;  %5619 = vrcp.f32 %v6968_v8  ;;  %v3067_v46 = vand.u32 2147483647, %v6894_v36  ;;  %v7025_v12 = vor.u32 1.1754944e-38, %v3069_v62  ;;  %vm7193_vm8 = vmor %vm3078_vm2, %vm3079_vm1 }
 0x808   :  { %5621 = vpow2.f32 %v4924_v11  ;;  %v4925_v7 = vmul.f32 -1.442695, %v6982_v42  ;;  %v7038_v15 = vmul.f32 %v3161_v13, %v6685_v48  ;;  %v3120_v11 = vsub.f32 1.0, %v3119_v61  ;;  %v5501_v13 = vld [vmem:[#allocation13 + $0x1f4] sm:$0xf0] }
 0x809   :  { %vm7105_vm14 = vcmp.eq.f32.partialorder %v3067_v46, 8.507059e+37 }
 0x80a   :  { %5623 = vpow2.f32 %v4925_v7  ;;  %v3075_v7 = vsub.f32 1.0, %v7058_v55  ;;  %v5499_v55 = vld [vmem:[#allocation13 + $0x1e4] sm:$0xf0] }
 0x80b   :  { %v6947_v16 = vpop.f32.mrf.mxu2  ;;  %v6949_v47 = vpop.f32.mrf.mxu3 }
 0x80c   :  { %v2823_v52 = vpop.f32.mrf.mxu0  ;;  %v2842_v56 = vpop.f32.mrf.mxu1  ;;  %v2879_v26 = vadd.f32 %v6949_v47, %v6947_v16  ;;  %v3129_v16 = vand.u32 2147483648, %v6910_v37 }
 0x80d   :  { %v2843_v54 = vadd.f32 %v2842_v56, %v2823_v52  ;;  %v3226_v52 = vmul.f32 %v6877_v39, %v3225_v34  ;;  %v7041_v56 = vmul.f32 %v3176_v28, %v6689_v57  ;;  %v7048_v20 = vpop.eup %5619  ;;  %v7070_v28 = vadd.f32 1.0, %v5618_v18 }
 0x80e   :  { %v5622_v47 = vpop.eup %5621  ;;  %v7068_v49 = vmul.f32 %v7048_v20, %v6968_v8  ;;  %v3285_v31 = vmul.f32 %v6866_v17, %v2879_v26  ;;  %v5481_v17 = vld [vmem:[#allocation13 + $0x154] sm:$0xf0]  ;;  %v4970_v26 = vld [vmem:[#allocation13 + $0x58] sm:$0xf0]  ;;  %vm3139_vm7 = vweird.f32 %v7048_v20 }
 0x80f   :  { %v3288_v51 = vmul.f32 %v6886_v2, %v2843_v54  ;;  %v6993_v54 = vadd.f32 %v6805_v9, %v6803_v32  ;;  %v3059_v32 = vmul.f32 %v6977_v27, %v6894_v36  ;;  %v3082_v9 = vand.u32 2147483647, %v6936_v5 }
 0x810   :  { %v3227_v63 = vadd.f32 %v6877_v39, %v3226_v52  ;;  %v4981_v52 = vor.u32 %v5450_v3, %v4978_v43  ;;  %v7076_v25 = vadd.f32 1.0, %v5622_v47  ;;  %v3121_v3 = vmul.f32 %v6995_v21, %v3120_v11  ;;  %v5466_v47 = vld [vmem:[#allocation13 + $0xe4] sm:$0xf] }
 0x811   :  { %v7007_v22 = vpack.c.bf16 %v3288_v51, %v3284_v45  ;;  %v4921_v34 = vmul.f32 -1.442695, %v6993_v54  ;;  %v3060_v57 = vsub.f32 1.0, %v3059_v32  ;;  %v5105_v51 = vor.u32 %v5483_v40, %v5104_v58  ;;  %v5176_v45 = vld [vmem:[#allocation13 + $0x1f0] sm:$0xf] }
 0x812   :  { %v3231_v60 = vsel %vm7052_vm12, %v6877_v39, %v3227_v63  ;;  %v5468_v32 = vld [vmem:[#allocation13 + $0xf4] sm:$0xf]  ;;  %3769 = vmatpush.bf16.msra.mxu0 %v4981_v52  ;;  %v5168_v40 = vld [vmem:[#allocation13 + $0x1e0] sm:$0xf]  ;;  %v5177_v48 = vor.u32 %v5501_v13, %v5176_v45  ;;  %v5097_v19 = vor.u32 %v5481_v17, %v5096_v33  ;;  %v5479_v52 = vld [vmem:[#allocation13 + $0x144] sm:$0xf0]  ;;  %v5045_v46 = vor.u32 %v5466_v47, %v5042_v0 }
 0x813   :  { %v2861_v4 = vpop.f32.mrf.mxu2  ;;  %v2880_v2 = vpop.f32.mrf.mxu3  ;;  %3700 = vmatmul.bf16.vlgmr.msrb.gmra.mxu0 %v7007_v22  ;;  %5625 = vpow2.f32 %v4921_v34  ;;  %v3061_v63 = vmul.f32 %v6977_v27, %v3060_v57  ;;  %3731 = vmatpush.bf16.msrb.mxu2 %v5105_v51  ;;  %v5088_v51 = vld [vmem:[#allocation13 + $0x140] sm:$0xf]  ;;  %v5446_v13 = vld [vmem:[#allocation13 + $0x44] sm:$0xf]  ;;  %v5464_v33 = vld [vmem:[#allocation13 + $0xd4] sm:$0xf]  ;;  %vm3183_vm15 = vweird.f32 %v7070_v28  ;;  %vm3243_vm1 = vweird.f32 %v7076_v25 }
 0x814   :  { %v2826_v23 = vpop.f32.mrf.mxu0  ;;  %v2845_v1 = vpop.f32.mrf.mxu1  ;;  %v2881_v62 = vadd.f32 %v2880_v2, %v2861_v4  ;;  %v5050_v4 = vld [vmem:[#allocation13 + $0xf8] sm:$0xf0]  ;;  %v3280_v2 = vmul.f32 %v3221_v38, %v6697_v14  ;;  %v5448_v38 = vld [vmem:[#allocation13 + $0x54] sm:$0xf]  ;;  %5627 = vrcp.f32 %v7070_v28  ;;  %3749 = vmatpush.bf16.msrb.mxu3 %v5177_v48  ;;  %vm7142_vm5 = vcmp.eq.f32.partialorder %v3082_v9, 8.507059e+37 }
 0x815   :  { %v2846_v43 = vadd.f32 %v2845_v1, %v2826_v23  ;;  %v5053_v57 = vor.u32 %v5468_v32, %v5050_v4  ;;  %v7098_v1 = vadd.f32 %v6977_v27, %v3061_v63  ;;  %5629 = vrcp.f32 %v7076_v25  ;;  %v5497_v63 = vld [vmem:[#allocation13 + $0x1d4] sm:$0xf0]  ;;  %v5034_v17 = vld [vmem:[#allocation13 + $0xd8] sm:$0xf0] }
 0x816   :  { %v3289_v39 = vmul.f32 %v3273_v6, %v2881_v62  ;;  %v3236_v6 = vsel %vm7015_vm10, %v6988_v10, %v3231_v60  ;;  %v5624_v10 = vpop.eup %5623  ;;  %v3135_v60 = vsub.f32 1.0, %v7068_v49  ;;  %v4973_v45 = vor.u32 %v5448_v38, %v4970_v26  ;;  %v4962_v49 = vld [vmem:[#allocation13 + $0x48] sm:$0xf0]  ;;  %v5080_v38 = vld [vmem:[#allocation13 + $0x130] sm:$0xf] }
 0x817   :  { %v7095_v23 = vmul.f32 %v3236_v6, %v6710_v29  ;;  %3787 = vmatpush.bf16.msra.mxu1 %v5053_v57  ;;  %v3076_v29 = vmul.f32 %v7022_v44, %v3075_v7  ;;  %3732 = vmatpush.bf16.msrb.mxu2 %v5097_v19  ;;  %v5169_v4 = vor.u32 %v5499_v55, %v5168_v40  ;;  %v7112_v6 = vadd.f32 1.0, %v5624_v10  ;;  %v5477_v26 = vld [vmem:[#allocation13 + $0x134] sm:$0xf0]  ;;  %v5444_v57 = vld [vmem:[#allocation13 + $0x34] sm:$0xf] }
 0x818   :  { %v7087_v14 = vpack.c.bf16 %v3289_v39, %v3285_v31  ;;  %v7101_v31 = vld [vmem:[#allocation13 + $0x1d0] sm:$0xf]  ;;  %3770 = vmatpush.bf16.msra.mxu0 %v4973_v45  ;;  %v7116_v7 = vadd.f32 %v6995_v21, %v3121_v3  ;;  %v3136_v48 = vmul.f32 %v7048_v20, %v3135_v60  ;;  %v4965_v40 = vor.u32 %v5446_v13, %v4962_v49  ;;  %v4954_v55 = vld [vmem:[#allocation13 + $0x38] sm:$0xf0]  ;;  %v5495_v49 = vld [vmem:[#allocation13 + $0x1c4] sm:$0xf0] }
 0x819   :  { %v5626_v11 = vpop.eup %5625  ;;  %3750 = vmatpush.bf16.msrb.mxu3 %v5169_v4  ;;  %v5161_v0 = vor.u32 %v5497_v63, %v7101_v31  ;;  %v5037_v10 = vor.u32 %v5464_v33, %v5034_v17  ;;  %v3066_v36 = vsel %vm7125_vm4, %v6977_v27, %v7098_v1  ;;  %v5081_v13 = vor.u32 %v5477_v26, %v5080_v38  ;;  %v5462_v31 = vld [vmem:[#allocation13 + $0xc4] sm:$0xf]  ;;  %v5072_v4 = vld [vmem:[#allocation13 + $0x120] sm:$0xf]  ;;  %v5475_v63 = vld [vmem:[#allocation13 + $0x124] sm:$0xf0] }
 0x81a   :  { %3719 = vmatmul.bf16.vlgmr.msrb.gmra.mxu1 %v7087_v14  ;;  %v7134_v19 = vpop.eup %5627  ;;  %v7155_v9 = vadd.f32 %v7022_v44, %v3076_v29  ;;  %5631 = vrcp.f32 %v7112_v6  ;;  %v4957_v1 = vor.u32 %v5444_v57, %v4954_v55  ;;  %v3126_v29 = vsel %vm7161_vm6, %v6995_v21, %v7116_v7  ;;  %v5460_v55 = vld [vmem:[#allocation13 + $0xb4] sm:$0xf] }
 0x81b   :  { %v7078_v61 = vpop.f32.mrf.mxu2  ;;  %v7080_v34 = vpop.f32.mrf.mxu3  ;;  %3788 = vmatpush.bf16.msra.mxu1 %v5045_v46  ;;  %v3144_v33 = vand.u32 2147483648, %v6968_v8  ;;  %v4946_v46 = vld [vmem:[#allocation13 + $0x28] sm:$0xf0]  ;;  %v7179_v21 = vmul.f32 %v7134_v19, %v7070_v28  ;;  %v5073_v57 = vor.u32 %v5475_v63, %v5072_v4  ;;  %vm3138_vm10 = vweird.f32 %v6968_v8  ;;  %v5458_v63 = vld [vmem:[#allocation13 + $0xa4] sm:$0xf] }
 0x81c   :  { %v2828_v58 = vpop.f32.mrf.mxu0  ;;  %v2847_v18 = vpop.f32.mrf.mxu1  ;;  %3771 = vmatpush.bf16.msra.mxu0 %v4965_v40  ;;  %v5144_v40 = vld [vmem:[#allocation13 + $0x1b0] sm:$0xf]  ;;  %vm7206_vm11 = vmor %vm3138_vm10, %vm3139_vm7  ;;  %vm3184_vm0 = vweird.f32 %v7134_v19  ;;  %vm3258_vm7 = vweird.f32 %v7112_v6 }
 0x81d   :  { %v2848_v62 = vadd.f32 %v2847_v18, %v2828_v58  ;;  %v3292_v58 = vmul.f32 %v7038_v15, %v2846_v43  ;;  %v5089_v18 = vor.u32 %v5479_v52, %v5088_v51  ;;  %v3130_v43 = vor.u32 1.1754944e-38, %v3129_v16  ;;  %v7152_v27 = vpop.eup %5629  ;;  %3751 = vmatpush.bf16.msrb.mxu3 %v5161_v0  ;;  %v5018_v15 = vld [vmem:[#allocation13 + $0xb8] sm:$0xf0]  ;;  %v5064_v0 = vld [vmem:[#allocation13 + $0x110] sm:$0xf]  ;;  %vm7286_vm3 = vmor %vm3183_vm15, %vm3184_vm0 }
 0x81e   :  { %v2884_v51 = vadd.f32 %v7080_v34, %v7078_v61  ;;  %v3142_v34 = vand.u32 2147483647, %v6968_v8  ;;  %v3180_v61 = vsub.f32 1.0, %v7179_v21  ;;  %v5484_v16 = vld [vmem:[#allocation13 + $0x174] sm:$0xf]  ;;  %vm3244_vm13 = vweird.f32 %v7152_v27 }
 0x81f   :  { %v3296_v32 = vmul.f32 %v3280_v2, %v2848_v62  ;;  %v7119_v2 = vadd.f32 1.0, %v5626_v11  ;;  %v5152_v62 = vld [vmem:[#allocation13 + $0x1c0] sm:$0xf]  ;;  %3733 = vmatpush.bf16.msrb.mxu2 %v5089_v18  ;;  %v3137_v18 = vadd.f32 %v7048_v20, %v3136_v48  ;;  %3789 = vmatpush.bf16.msra.mxu1 %v5037_v10  ;;  %v5493_v48 = vld [vmem:[#allocation13 + $0x1b4] sm:$0xf0]  ;;  %v3131_v39 = vsel %vm3128_vm9, %v3130_v43, %v3126_v29  ;;  %vm7273_vm2 = vmor %vm3243_vm1, %vm3244_vm13 }
 0x820   :  { %v5153_v38 = vor.u32 %v5495_v49, %v5152_v62  ;;  %v3293_v7 = vmul.f32 %v7041_v56, %v2884_v51  ;;  %3772 = vmatpush.bf16.msra.mxu0 %v4957_v1  ;;  %v5473_v10 = vld [vmem:[#allocation13 + $0x114] sm:$0xf0]  ;;  %vm7210_vm12 = vcmp.eq.f32.partialorder %v3142_v34, 8.507059e+37  ;;  %v4938_v62 = vld [vmem:[#allocation13 + $0x18] sm:$0xf0]  ;;  %v3145_v43 = vor.u32 1.1754944e-38, %v3144_v33 }
 0x821   :  { %v7132_v60 = vpack.c.bf16 %v3296_v32, %v3292_v58  ;;  %v5026_v32 = vld [vmem:[#allocation13 + $0xc8] sm:$0xf0]  ;;  %5633 = vrcp.f32 %v7119_v2  ;;  %v5442_v58 = vld [vmem:[#allocation13 + $0x24] sm:$0xf]  ;;  %v5021_v49 = vor.u32 %v5460_v55, %v5018_v15  ;;  %v5065_v4 = vor.u32 %v5473_v10, %v5064_v0  ;;  %v5128_v15 = vld [vmem:[#allocation13 + $0x190] sm:$0xf] }
 0x822   :  { %v5029_v26 = vor.u32 %v5462_v31, %v5026_v32  ;;  %v4949_v56 = vor.u32 %v5442_v58, %v4946_v46  ;;  %3752 = vmatpush.bf16.msrb.mxu3 %v5153_v38  ;;  %v5136_v31 = vld [vmem:[#allocation13 + $0x1a0] sm:$0xf]  ;;  %v5491_v32 = vld [vmem:[#allocation13 + $0x1a4] sm:$0xf0]  ;;  %v5010_v29 = vld [vmem:[#allocation13 + $0xa8] sm:$0xf0]  ;;  %v4941_v46 = vor.u32 %v5440_v59, %v4938_v62  ;;  %v3181_v62 = vmul.f32 %v7134_v19, %v3180_v61 }
 0x823   :  { %v2866_v3 = vpop.f32.mrf.mxu2  ;;  %v2885_v47 = vpop.f32.mrf.mxu3  ;;  %3705 = vmatmul.bf16.gmra.mxu0 %v7132_v60  ;;  %3734 = vmatpush.bf16.msrb.mxu2 %v5081_v13  ;;  %v5145_v13 = vor.u32 %v5493_v48, %v5144_v40  ;;  %v5471_v38 = vld [vmem:[#allocation13 + $0x104] sm:$0xf0]  ;;  %v3274_v40 = vmul.f32 %v3131_v39, %v6768_v35  ;;  %v5137_v35 = vor.u32 %v5491_v32, %v5136_v31  ;;  %v5456_v0 = vld [vmem:[#allocation13 + $0x94] sm:$0xf]  ;;  %v5002_v10 = vld [vmem:[#allocation13 + $0x98] sm:$0xf0]  ;;  %vm3198_vm9 = vweird.f32 %v7119_v2 }
 0x824   :  { %v2886_v52 = vadd.f32 %v2885_v47, %v2866_v3  ;;  %v7148_v11 = vpop.f32.mrf.mxu0  ;;  %v7150_v45 = vpop.f32.mrf.mxu1  ;;  %v3071_v3 = vsel %vm7105_vm14, %v7025_v12, %v3066_v36  ;;  %v3081_v12 = vsel %vm7193_vm8, %v7022_v44, %v7155_v9  ;;  %v3141_v44 = vsel %vm7206_vm11, %v7048_v20, %v3137_v18  ;;  %3790 = vmatpush.bf16.msra.mxu1 %v5029_v26  ;;  %v5056_v18 = vld [vmem:[#allocation13 + $0x100] sm:$0xf]  ;;  %v5438_v26 = vld [vmem:[#allocation13 + $0x4] sm:$0xf] }
 0x825   :  { %v7216_v36 = vpop.eup %5631  ;;  %v3270_v33 = vmul.f32 %v3071_v3, %v6757_v41  ;;  %3773 = vmatpush.bf16.msra.mxu0 %v4949_v56  ;;  %v3146_v21 = vsel %vm7210_vm12, %v3145_v43, %v3141_v44  ;;  %v2917_v41 = vadd.f32 %v7150_v45, %v7148_v11  ;;  %v5013_v55 = vor.u32 %v5458_v63, %v5010_v29  ;;  %v5489_v56 = vld [vmem:[#allocation13 + $0x194] sm:$0xf0]  ;;  %v5482_v43 = vld [vmem:[#allocation13 + $0x164] sm:$0xf] }
 0x826   :  { %v3297_v17 = vmul.f32 %v7095_v23, %v2886_v52  ;;  %v7183_v23 = vmul.f32 %v7152_v27, %v7076_v25  ;;  %3753 = vmatpush.bf16.msrb.mxu3 %v5145_v13  ;;  %v5057_v45 = vor.u32 %v5471_v38, %v5056_v18  ;;  %v3247_v39 = vand.u32 2147483647, %v7076_v25  ;;  %v5106_v13 = vld [vmem:[#allocation13 + $0x168] sm:$0xf0]  ;;  %v5178_v38 = vld [vmem:[#allocation13 + $0x1f8] sm:$0xf0] }
 0x827   :  { %v7225_v9 = vpop.eup %5633  ;;  %3735 = vmatpush.bf16.msrb.mxu2 %v5073_v57  ;;  %v3187_v57 = vand.u32 2147483647, %v7070_v28  ;;  %v3275_v59 = vmul.f32 %v3146_v21, %v6820_v53  ;;  %v3286_v44 = vmul.f32 %v3270_v33, %v2917_v41  ;;  %v3249_v18 = vand.u32 2147483648, %v7076_v25  ;;  %v5098_v41 = vld [vmem:[#allocation13 + $0x158] sm:$0xf0] }
 0x828   :  { %v7214_v8 = vpack.c.bf16 %v3297_v17, %v3293_v7  ;;  %v3240_v34 = vsub.f32 1.0, %v7183_v23  ;;  %v3086_v17 = vsel %vm7142_vm5, %v7027_v50, %v3081_v12  ;;  %v3254_v23 = vmul.f32 %v7216_v36, %v7112_v6  ;;  %v4930_v50 = vld [vmem:[#allocation13 + $0x8] sm:$0xf0]  ;;  %v5114_v7 = vld [vmem:[#allocation13 + $0x178] sm:$0xf0]  ;;  %3791 = vmatpush.bf16.msra.mxu1 %v5021_v49 }
 0x829   :  { %v3194_v48 = vmul.f32 %v7225_v9, %v7119_v2  ;;  %v3271_v3 = vmul.f32 %v3086_v17, %v6787_v24  ;;  %v3189_v12 = vand.u32 2147483648, %v7070_v28  ;;  %3774 = vmatpush.bf16.msra.mxu0 %v4941_v46  ;;  %v4933_v5 = vor.u32 %v5438_v26, %v4930_v50  ;;  %v5487_v17 = vld [vmem:[#allocation13 + $0x184] sm:$0xf0]  ;;  %v4994_v46 = vld [vmem:[#allocation13 + $0x88] sm:$0xf0] }
 0x82a   :  { %3724 = vmatmul.bf16.gmra.mxu1 %v7214_v8  ;;  %v3241_v47 = vmul.f32 %v7152_v27, %v3240_v34  ;;  %v5117_v37 = vor.u32 %v5484_v16, %v5114_v7  ;;  %v3255_v24 = vsub.f32 1.0, %v3254_v23  ;;  %3754 = vmatpush.bf16.msrb.mxu3 %v5137_v35  ;;  %v5129_v34 = vor.u32 %v5489_v56, %v5128_v15  ;;  %v5480_v23 = vld [vmem:[#allocation13 + $0x154] sm:$0xf]  ;;  %v5498_v56 = vld [vmem:[#allocation13 + $0x1e4] sm:$0xf] }
 0x82b   :  { %v7221_v51 = vpop.f32.mrf.mxu2  ;;  %v7223_v52 = vpop.f32.mrf.mxu3  ;;  %3736 = vmatpush.bf16.msrb.mxu2 %v5065_v4  ;;  %v3195_v49 = vsub.f32 1.0, %v3194_v48  ;;  %v3182_v26 = vadd.f32 %v7134_v19, %v3181_v62  ;;  %vm7266_vm14 = vcmp.eq.f32.partialorder %v3187_v57, 8.507059e+37  ;;  %v3190_v35 = vor.u32 1.1754944e-38, %v3189_v12  ;;  %v5478_v28 = vld [vmem:[#allocation13 + $0x144] sm:$0xf] }
 0x82c   :  { %v2899_v1 = vpop.f32.mrf.mxu0  ;;  %v2918_v20 = vpop.f32.mrf.mxu1  ;;  %3792 = vmatpush.bf16.msra.mxu1 %v5013_v55  ;;  %v3242_v4 = vadd.f32 %v7152_v27, %v3241_v47  ;;  %v2955_v53 = vadd.f32 %v7223_v52, %v7221_v51  ;;  %v5109_v51 = vor.u32 %v5482_v43, %v5106_v13  ;;  %v5500_v52 = vld [vmem:[#allocation13 + $0x1f4] sm:$0xf]  ;;  %vm3248_vm4 = vcmp.eq.f32.partialorder %v3247_v39, 8.507059e+37  ;;  %v5146_v47 = vld [vmem:[#allocation13 + $0x1b8] sm:$0xf0] }
 0x82d   :  { %v2919_v58 = vadd.f32 %v2918_v20, %v2899_v1  ;;  %v5005_v1 = vor.u32 %v5456_v0, %v5002_v10  ;;  %v5120_v20 = vld [vmem:[#allocation13 + $0x180] sm:$0xf]  ;;  %3775 = vmatpush.bf16.msra.mxu0 %v4933_v5  ;;  %v3196_v16 = vmul.f32 %v7225_v9, %v3195_v49  ;;  %v5181_v15 = vor.u32 %v5500_v52, %v5178_v38  ;;  %v5090_v10 = vld [vmem:[#allocation13 + $0x148] sm:$0xf0]  ;;  %v5494_v52 = vld [vmem:[#allocation13 + $0x1c4] sm:$0xf] }
 0x82e   :  { %3755 = vmatpush.bf16.msrb.mxu3 %v5129_v34  ;;  %v5121_v25 = vor.u32 %v5487_v17, %v5120_v20  ;;  %v3246_v57 = vsel %vm7273_vm2, %v7152_v27, %v3242_v4  ;;  %v3287_v55 = vmul.f32 %v3271_v3, %v2955_v53  ;;  %v5170_v27 = vld [vmem:[#allocation13 + $0x1e8] sm:$0xf0]  ;;  %v3186_v3 = vsel %vm7286_vm3, %v7134_v19, %v3182_v26  ;;  %v5082_v17 = vld [vmem:[#allocation13 + $0x138] sm:$0xf0] }
 0x82f   :  { %v3290_v11 = vmul.f32 %v3274_v40, %v2919_v58  ;;  %3737 = vmatpush.bf16.msrb.mxu2 %v5057_v45  ;;  %v5454_v58 = vld [vmem:[#allocation13 + $0x84] sm:$0xf]  ;;  %v3256_v40 = vmul.f32 %v7216_v36, %v3255_v24  ;;  %v5101_v45 = vor.u32 %v5480_v23, %v5098_v41  ;;  %vm3259_vm5 = vweird.f32 %v7216_v36  ;;  %v5154_v26 = vld [vmem:[#allocation13 + $0x1c8] sm:$0xf0] }
 0x830   :  { %3793 = vmatpush.bf16.msra.mxu1 %v5005_v1  ;;  %v4997_v48 = vor.u32 %v5454_v58, %v4994_v46  ;;  %v3202_v12 = vand.u32 2147483647, %v7119_v2  ;;  %v3262_v5 = vand.u32 2147483647, %v7112_v6  ;;  %v3197_v19 = vadd.f32 %v7225_v9, %v3196_v16  ;;  %vm7308_vm8 = vmor %vm3258_vm7, %vm3259_vm5  ;;  %v5496_v1 = vld [vmem:[#allocation13 + $0x1d4] sm:$0xf] }
 0x831   :  { %v7254_v61 = vpack.c.bf16 %v3290_v11, %v3286_v44  ;;  %v3250_v11 = vor.u32 1.1754944e-38, %v3249_v18  ;;  %vm3199_vm6 = vweird.f32 %v7225_v9  ;;  %v5173_v43 = vor.u32 %v5498_v56, %v5170_v27 }
 0x832   :  { %3756 = vmatpush.bf16.msrb.mxu3 %v5121_v25  ;;  %v3191_v13 = vsel %vm7266_vm14, %v3190_v35, %v3186_v3  ;;  %v3204_v49 = vand.u32 2147483648, %v7119_v2  ;;  %v5093_v34 = vor.u32 %v5478_v28, %v5090_v10  ;;  %vm7323_vm10 = vmor %vm3198_vm9, %vm3199_vm6  ;;  %vm3263_vm11 = vcmp.eq.f32.partialorder %v3262_v5, 8.507059e+37  ;;  %v7525_v2 = vld [vmem:[#allocation35_spill] sm:$0xff]  ;;  %v5490_v3 = vld [vmem:[#allocation13 + $0x1a4] sm:$0xf] }
 0x833   :  { %v2937_v31 = vpop.f32.mrf.mxu2  ;;  %v2956_v32 = vpop.f32.mrf.mxu3  ;;  %3806 = vmatpush.bf16.msra.mxu2 %v5117_v37  ;;  %3776 = vmatmul.bf16.vlgmr.msra.gmra.mxu0 %v7007_v22  ;;  %v3257_v22 = vadd.f32 %v7216_v36, %v3256_v40  ;;  %v3251_v39 = vsel %vm3248_vm4, %v3250_v11, %v3246_v57  ;;  %v3264_v37 = vand.u32 2147483648, %v7112_v6  ;;  %v5162_v6 = vld [vmem:[#allocation13 + $0x1d8] sm:$0xf0]  ;;  %v3278_v46 = vmul.f32 %v3191_v13, %v7525_v2  ;;  %v5474_v40 = vld [vmem:[#allocation13 + $0x124] sm:$0xf] }
 0x834   :  { %v2957_v63 = vadd.f32 %v2956_v32, %v2937_v31  ;;  %v7256_v29 = vpop.f32.mrf.mxu0  ;;  %v7258_v33 = vpop.f32.mrf.mxu1  ;;  %3738 = vmatmul.bf16.vlgmr.msrb.gmra.mxu2 %v7254_v61  ;;  %3794 = vmatpush.bf16.msra.mxu1 %v4997_v48  ;;  %v3282_v20 = vmul.f32 %v3251_v39, %v6940_v30  ;;  %vm3203_vm12 = vcmp.eq.f32.partialorder %v3202_v12, 8.507059e+37  ;;  %v5157_v48 = vor.u32 %v5494_v52, %v5154_v26  ;;  %v5492_v57 = vld [vmem:[#allocation13 + $0x1b4] sm:$0xf]  ;;  %v5138_v28 = vld [vmem:[#allocation13 + $0x1a8] sm:$0xf0]  ;;  %v7527_v2 = vld [vmem:[#allocation27_spill] sm:$0xff] }
 0x835   :  { %v3261_v4 = vsel %vm7308_vm8, %v7216_v36, %v3257_v22  ;;  %v2922_v53 = vadd.f32 %v7258_v33, %v7256_v29  ;;  %v3265_v30 = vor.u32 1.1754944e-38, %v3264_v37  ;;  %v3201_v36 = vsel %vm7323_vm10, %v7225_v9, %v3197_v19  ;;  %v5472_v11 = vld [vmem:[#allocation13 + $0x114] sm:$0xf]  ;;  %v5470_v10 = vld [vmem:[#allocation13 + $0x104] sm:$0xf]  ;;  %v7528_v52 = vld [vmem:[#allocation31_spill] sm:$0xff] }
 0x836   :  { %v3291_v21 = vmul.f32 %v3275_v59, %v2957_v63  ;;  %3825 = vmatpush.bf16.msra.mxu3 %v5181_v15  ;;  %v5476_v63 = vld [vmem:[#allocation13 + $0x134] sm:$0xf]  ;;  %v5165_v33 = vor.u32 %v5496_v1, %v5162_v6  ;;  %v5058_v12 = vld [vmem:[#allocation13 + $0x108] sm:$0xf0]  ;;  %v5130_v37 = vld [vmem:[#allocation13 + $0x198] sm:$0xf0] }
 0x837   :  { %3807 = vmatpush.bf16.msra.mxu2 %v5109_v51  ;;  %v3266_v18 = vsel %vm3263_vm11, %v3265_v30, %v3261_v4  ;;  %v5085_v51 = vor.u32 %v5476_v63, %v5082_v17  ;;  %v3294_v38 = vmul.f32 %v3278_v46, %v2922_v53  ;;  %v5061_v39 = vor.u32 %v5470_v10, %v5058_v12  ;;  %v5488_v5 = vld [vmem:[#allocation13 + $0x194] sm:$0xf]  ;;  %v7526_v4 = vld [vmem:[#allocation29_spill] sm:$0xff]  ;;  %v7531_v12 = vld [vmem:[#allocation23_spill] sm:$0xff] }
 0x838   :  { %v7295_v0 = vpack.c.bf16 %v3291_v21, %v3287_v55  ;;  %v5074_v21 = vld [vmem:[#allocation13 + $0x128] sm:$0xf0]  ;;  %v3283_v16 = vmul.f32 %v3266_v18, %v6982_v42  ;;  %v5149_v42 = vor.u32 %v5492_v57, %v5146_v47 }
 0x839   :  { %v5077_v35 = vor.u32 %v5474_v40, %v5074_v21 }
 0x83a   :  { %3757 = vmatmul.bf16.vlgmr.msrb.gmra.mxu3 %v7295_v0  ;;  %3795 = vmatmul.bf16.vlgmr.msra.gmra.mxu1 %v7087_v14  ;;  %v3205_v14 = vor.u32 1.1754944e-38, %v3204_v49 }
 0x83b   :  { %v2940_v59 = vpop.f32.mrf.mxu2  ;;  %v2959_v62 = vpop.f32.mrf.mxu3  ;;  %3808 = vmatpush.bf16.msra.mxu2 %v5101_v45  ;;  %3826 = vmatpush.bf16.msra.mxu3 %v5173_v43  ;;  %v5066_v45 = vld [vmem:[#allocation13 + $0x118] sm:$0xf0] }
 0x83c   :  { %v2904_v24 = vpop.f32.mrf.mxu0  ;;  %v2923_v44 = vpop.f32.mrf.mxu1  ;;  %v3206_v23 = vsel %vm3203_vm12, %v3205_v14, %v3201_v36  ;;  %v2960_v7 = vadd.f32 %v2959_v62, %v2940_v59  ;;  %v5069_v27 = vor.u32 %v5472_v11, %v5066_v45  ;;  %v5486_v59 = vld [vmem:[#allocation13 + $0x184] sm:$0xf]  ;;  %v5122_v62 = vld [vmem:[#allocation13 + $0x188] sm:$0xf0]  ;;  %v7530_v11 = vld [vmem:[#allocation26_spill] sm:$0xff] }
 0x83d   :  { %v2924_v32 = vadd.f32 %v2923_v44, %v2904_v24  ;;  %v3279_v55 = vmul.f32 %v3206_v23, %v6993_v54  ;;  %v5141_v54 = vor.u32 %v5490_v3, %v5138_v28  ;;  %v5125_v19 = vor.u32 %v5486_v59, %v5122_v62  ;;  %v7532_v62 = vld [vmem:[#allocation24_spill] sm:$0xff] }
 0x83f   :  { %v3298_v29 = vmul.f32 %v3282_v20, %v2924_v32  ;;  %3809 = vmatpush.bf16.msra.mxu2 %v5093_v34  ;;  %3827 = vmatpush.bf16.msra.mxu3 %v5165_v33  ;;  %v3295_v56 = vmul.f32 %v3279_v55, %v2960_v7  ;;  %v7529_v7 = vld [vmem:[#allocation33_spill] sm:$0xff] }
 0x841   :  { %v3306_v25 = vpack.c.bf16 %v3298_v29, %v3294_v38 }
 0x843   :  { %v2942_v41 = vpop.f32.mrf.mxu2  ;;  %v2961_v50 = vpop.f32.mrf.mxu3  ;;  %3810 = vmatpush.bf16.msra.mxu2 %v5085_v51  ;;  %3781 = vmatmul.bf16.gmra.mxu0 %v7132_v60  ;;  %v5133_v60 = vor.u32 %v5488_v5, %v5130_v37 }
 0x844   :  { %v2962_v9 = vadd.f32 %v2961_v50, %v2942_v41  ;;  %3743 = vmatmul.bf16.gmra.mxu2 %v3306_v25  ;;  %3828 = vmatpush.bf16.msra.mxu3 %v5157_v48 }
 0x846   :  { %v3299_v15 = vmul.f32 %v3283_v16, %v2962_v9 }
 0x847   :  { %3811 = vmatpush.bf16.msra.mxu2 %v5077_v35 }
 0x848   :  { %v3307_v22 = vpack.c.bf16 %v3299_v15, %v3295_v56  ;;  %3829 = vmatpush.bf16.msra.mxu3 %v5149_v42 }
 0x84a   :  { %3762 = vmatmul.bf16.gmra.mxu3 %v3307_v22  ;;  %3800 = vmatmul.bf16.gmra.mxu1 %v7214_v8 }
 0x84b   :  { %3812 = vmatpush.bf16.msra.mxu2 %v5069_v27 }
 0x84c   :  { %3830 = vmatpush.bf16.msra.mxu3 %v5141_v54 }
 0x84f   :  { %3813 = vmatpush.bf16.msra.mxu2 %v5061_v39 }
 0x850   :  { %3831 = vmatpush.bf16.msra.mxu3 %v5133_v60 }
 0x854   :  { %3814 = vmatmul.bf16.vlgmr.msra.gmra.mxu2 %v7254_v61  ;;  %3832 = vmatpush.bf16.msra.mxu3 %v5125_v19 }
 0x85a   :  { %3833 = vmatmul.bf16.vlgmr.msra.gmra.mxu3 %v7295_v0 }
 0x864   :  { %3819 = vmatmul.bf16.gmra.mxu2 %v3306_v25 }
 0x86a   :  { %3838 = vmatmul.bf16.gmra.mxu3 %v3307_v22 }
 0x890   :  { %v3701_v44 = vpop.f32.mrf.mxu0 }
 0x897   :  { %v3720_v24 = vpop.f32.mrf.mxu1 }
 0x898   :  { %v3703_v8 = vpop.f32.mrf.mxu0  ;;  %v3721_v49 = vadd.f32 %v3720_v24, %v3701_v44 }
 0x89f   :  { %v3722_v43 = vpop.f32.mrf.mxu1 }
 0x8a0   :  { %v3706_v6 = vpop.f32.mrf.mxu0  ;;  %v3723_v61 = vadd.f32 %v3722_v43, %v3703_v8 }
 0x8a7   :  { %v3725_v32 = vpop.f32.mrf.mxu1 }
 0x8a8   :  { %v3708_v36 = vpop.f32.mrf.mxu0  ;;  %v3726_v29 = vadd.f32 %v3725_v32, %v3706_v6 }
 0x8af   :  { %v3727_v58 = vpop.f32.mrf.mxu1 }
 0x8b0   :  { %v3728_v40 = vadd.f32 %v3727_v58, %v3708_v36  ;;  %v3777_v21 = vpop.f32.mrf.mxu0 }
 0x8b7   :  { %v3739_v13 = vpop.f32.mrf.mxu2  ;;  %v3796_v26 = vpop.f32.mrf.mxu1 }
 0x8b8   :  { %v3740_v31 = vadd.f32 %v3739_v13, %v3721_v49  ;;  %v3797_v25 = vadd.f32 %v3796_v26, %v3777_v21  ;;  %v3779_v57 = vpop.f32.mrf.mxu0 }
 0x8bd   :  { %v3758_v34 = vpop.f32.mrf.mxu3 }
 0x8be   :  { %v3759_v1 = vadd.f32 %v3758_v34, %v3740_v31  ;;  %v7533_v31 = vld [vmem:[#allocation30_spill] sm:$0xff] }
 0x8bf   :  { %v3741_v20 = vpop.f32.mrf.mxu2  ;;  %v3798_v48 = vpop.f32.mrf.mxu1 }
 0x8c0   :  { %v3844_v53 = vadd.f32 %v3759_v1, %v7526_v4  ;;  %v3742_v63 = vadd.f32 %v3741_v20, %v3723_v61  ;;  %v3799_v56 = vadd.f32 %v3798_v48, %v3779_v57  ;;  %v3782_v28 = vpop.f32.mrf.mxu0 }
 0x8c2   :  { %3852 = vst [vmem:[#allocation14] sm:$0xff] %v3844_v53 }
 0x8c5   :  { %v3760_v0 = vpop.f32.mrf.mxu3 }
 0x8c6   :  { %v3761_v17 = vadd.f32 %v3760_v0, %v3742_v63 }
 0x8c7   :  { %v3744_v30 = vpop.f32.mrf.mxu2  ;;  %v3801_v27 = vpop.f32.mrf.mxu1 }
 0x8c8   :  { %v3846_v46 = vadd.f32 %v3761_v17, %v7527_v2  ;;  %v3745_v33 = vadd.f32 %v3744_v30, %v3726_v29  ;;  %v3802_v39 = vadd.f32 %v3801_v27, %v3782_v28  ;;  %v3784_v24 = vpop.f32.mrf.mxu0 }
 0x8ca   :  { %3854 = vst [vmem:[#allocation14 + $0x10] sm:$0xff] %v3846_v46 }
 0x8cd   :  { %v3763_v14 = vpop.f32.mrf.mxu3 }
 0x8ce   :  { %v3764_v18 = vadd.f32 %v3763_v14, %v3745_v33 }
 0x8cf   :  { %v3746_v51 = vpop.f32.mrf.mxu2  ;;  %v3803_v59 = vpop.f32.mrf.mxu1 }
 0x8d0   :  { %v3848_v38 = vadd.f32 %v3764_v18, %v7528_v52  ;;  %v3747_v23 = vadd.f32 %v3746_v51, %v3728_v40  ;;  %v3804_v43 = vadd.f32 %v3803_v59, %v3784_v24 }
 0x8d2   :  { %3856 = vst [vmem:[#allocation14 + $0x20] sm:$0xff] %v3848_v38 }
 0x8d5   :  { %v3765_v41 = vpop.f32.mrf.mxu3 }
 0x8d6   :  { %v3766_v50 = vadd.f32 %v3765_v41, %v3747_v23 }
 0x8d7   :  { %v3815_v16 = vpop.f32.mrf.mxu2 }
 0x8d8   :  { %v3850_v9 = vadd.f32 %v3766_v50, %v7529_v7  ;;  %v3816_v35 = vadd.f32 %v3815_v16, %v3797_v25 }
 0x8da   :  { %3858 = vst [vmem:[#allocation14 + $0x30] sm:$0xff] %v3850_v9 }
 0x8dd   :  { %v3834_v55 = vpop.f32.mrf.mxu3 }
 0x8de   :  { %v3835_v15 = vadd.f32 %v3834_v55, %v3816_v35 }
 0x8df   :  { %v3817_v47 = vpop.f32.mrf.mxu2 }
 0x8e0   :  { %v3845_v45 = vadd.f32 %v3835_v15, %v7530_v11  ;;  %v3818_v42 = vadd.f32 %v3817_v47, %v3799_v56 }
 0x8e2   :  { %3853 = vst [vmem:[#allocation14 + $0x8] sm:$0xff] %v3845_v45 }
 0x8e5   :  { %v3836_v3 = vpop.f32.mrf.mxu3 }
 0x8e6   :  { %v3837_v22 = vadd.f32 %v3836_v3, %v3818_v42 }
 0x8e7   :  { %v3820_v10 = vpop.f32.mrf.mxu2 }
 0x8e8   :  { %v3847_v54 = vadd.f32 %v3837_v22, %v7531_v12  ;;  %v3821_v5 = vadd.f32 %v3820_v10, %v3802_v39 }
 0x8ea   :  { %3855 = vst [vmem:[#allocation14 + $0x18] sm:$0xff] %v3847_v54 }
 0x8ed   :  { %v3839_v37 = vpop.f32.mrf.mxu3 }
 0x8ee   :  { %v3840_v60 = vadd.f32 %v3839_v37, %v3821_v5 }
 0x8ef   :  { %v3822_v44 = vpop.f32.mrf.mxu2 }
 0x8f0   :  { %v3849_v19 = vadd.f32 %v3840_v60, %v7532_v62  ;;  %v3823_v8 = vadd.f32 %v3822_v44, %v3804_v43 }
 0x8f2   :  { %3857 = vst [vmem:[#allocation14 + $0x28] sm:$0xff] %v3849_v19 }
 0x8f5   :  { %v3841_v13 = vpop.f32.mrf.mxu3 }
 0x8f6   :  { %v3842_v49 = vadd.f32 %v3841_v13, %v3823_v8 }
 0x8f8   :  { %v3851_v32 = vadd.f32 %v3842_v49, %v7533_v31 }
 0x8fa   :  { %3859 = vst [vmem:[#allocation14 + $0x38] sm:$0xff] %v3851_v32 }
 0x8fb   :  { %3872 = dma.vmem_to_hbm [thread:$0]  %s3865_s26, 1024, %s3867_s29, [#allocation4], %s5855_s12, %s5855_s12, %s5856_s13  }
 0x8fc   :  { %5843 = dma.done.wait [#allocation4], 1024  }
 0x8fd   :  { %5844 = vsyncadd [#allocation4], 4294966272 }
 0x8fe   :  { %3877 = vsyncpa [#allocation3], 1 }
 0x8ff   :  { %3878 = vsyncpa [#allocation6], 1 }
 0x900   :  { %3879 = vsyncpa [#allocation9], 1 }
 0x901   :  { %3880 = vsyncpa [#allocation12], 1 }
 0x902   :  { %3881 = vsyncpa [#allocation4], 1 }

</bundles_post_ra>
